<compile_context>
chip_gen: v7x
topology: tpu7x:2x2x1
jax: 0.10.0
libtpu: 0.0.40
codegen_flags: <defaults>
</compile_context>

<pallas_src>
import jax
import jax.numpy as jnp
from jax.experimental import pallas as pl
from jax.experimental.pallas import tpu as pltpu


# ----------------------------- fused Pallas kernel ------------------------------

def _build_fused_kernel(H, W, all_ch, kernel_sizes, proj):
    """Builds a kernel computing the full residual block for one image.

    Kernel ref order:
      x_ref, w_0..w_{L-1}, b_0..b_{L-1}, [ws_ref], o_ref, pad_0..pad_{L-1}
    where w_i is (k_i*k_i, Cin_i, Cout_i) (tap-major), b_i is (1, Cout_i),
    ws is (Cin_0, Cout_{L-1}) and pad_i is VMEM scratch holding the
    zero-padded ('same' conv) input of layer i.
    """
    n_conv = len(kernel_sizes)

    def kernel(*refs):
        idx = 0
        x_ref = refs[idx]; idx += 1
        w_refs = refs[idx:idx + n_conv]; idx += n_conv
        b_refs = refs[idx:idx + n_conv]; idx += n_conv
        ws_ref = None
        if proj:
            ws_ref = refs[idx]; idx += 1
        o_ref = refs[idx]; idx += 1
        pad_refs = refs[idx:idx + n_conv]

        x = x_ref[0]                                    # (H, W, Cin) f32
        h = x
        for i in range(n_conv):
            k = kernel_sizes[i]
            p = k // 2
            cin = all_ch[i]
            cout = all_ch[i + 1]
            pad_ref = pad_refs[i]

            # Zero-padded copy of this layer's input, kept in VMEM scratch.
            pad_ref[...] = jnp.zeros_like(pad_ref)
            pad_ref[p:p + H, p:p + W, :] = h

            # In-kernel im2col: one small MXU matmul per tap, f32 accumulate.
            acc = jnp.zeros((H * W, cout), jnp.float32)
            for di in range(k):
                for dj in range(k):
                    tap = pad_ref[di:di + H, dj:dj + W, :].reshape(H * W, cin)
                    w_tap = w_refs[i][di * k + dj]      # (cin, cout), resident
                    acc = acc + jnp.dot(tap, w_tap,
                                        preferred_element_type=jnp.float32)
            acc = acc + b_refs[i][...]                  # (1, cout) broadcast

            if i < n_conv - 1:
                # Hidden activation never leaves VMEM.
                h = jnp.maximum(acc, 0.0).reshape(H, W, cout)
            else:
                # Shortcut add (in-register) + final relu.
                if proj:
                    s = jnp.dot(x.reshape(H * W, all_ch[0]), ws_ref[...],
                                preferred_element_type=jnp.float32)
                else:
                    s = x.reshape(H * W, all_ch[0])
                o_ref[0] = jnp.maximum(acc + s, 0.0).reshape(H, W, cout)

    return kernel


# ------------------------------ module wrapper -------------------------------

class ResidualBlockPallas:
    """JAX/Pallas equivalent of the PyTorch ResidualBlock
    (activation='relu', batchnorm=False, dropout=0.0)."""

    def __init__(self, in_channels, channels, kernel_sizes, key):
        assert channels and kernel_sizes
        assert len(channels) == len(kernel_sizes)
        assert all(k % 2 == 1 for k in kernel_sizes)
        self.in_channels = in_channels
        self.channels = list(channels)
        self.kernel_sizes = list(kernel_sizes)
        all_ch = [in_channels] + list(channels)

        self.weights = []   # OIHW (PyTorch convention)
        self.biases = []
        for i, k in enumerate(kernel_sizes):
            key, kw, kb = jax.random.split(key, 3)
            fan_in = all_ch[i] * k * k
            bound = 1.0 / (fan_in ** 0.5)
            self.weights.append(
                jax.random.uniform(kw, (all_ch[i + 1], all_ch[i], k, k),
                                   jnp.float32, -bound, bound))
            self.biases.append(
                jax.random.uniform(kb, (all_ch[i + 1],),
                                   jnp.float32, -bound, bound))

        if all_ch[0] != all_ch[-1]:
            key, ks = jax.random.split(key)
            bound = 1.0 / (all_ch[0] ** 0.5)
            self.w_short = jax.random.uniform(
                ks, (all_ch[-1], all_ch[0], 1, 1), jnp.float32, -bound, bound)
        else:
            self.w_short = None

    # ---- Pallas forward ----
    def __call__(self, x_nchw):
        x = jnp.transpose(x_nchw, (0, 2, 3, 1)).astype(jnp.float32)   # -> NHWC
        N, H, W, Cin = x.shape
        all_ch = [self.in_channels] + self.channels
        n_conv = len(self.channels)
        proj = self.w_short is not None

        # Resident weights: OIHW -> (k*k, Cin, Cout), tap-major (row-major taps),
        # matching the in-kernel (di, dj) loop order.
        w_taps = [
            jnp.transpose(self.weights[i], (2, 3, 1, 0)).reshape(
                self.kernel_sizes[i] ** 2, all_ch[i], all_ch[i + 1])
            for i in range(n_conv)
        ]
        b_mats = [b.reshape(1, -1) for b in self.biases]

        inputs = [x] + w_taps + b_mats
        in_specs = [pl.BlockSpec((1, H, W, Cin), lambda n: (n, 0, 0, 0))]
        in_specs += [pl.BlockSpec(w.shape, lambda n: (0, 0, 0)) for w in w_taps]
        in_specs += [pl.BlockSpec(b.shape, lambda n: (0, 0)) for b in b_mats]
        if proj:
            ws = self.w_short[:, :, 0, 0].T             # (Cin, Cout_last)
            inputs.append(ws)
            in_specs.append(pl.BlockSpec(ws.shape, lambda n: (0, 0)))

        # Per-layer zero-padded halo buffers (VMEM scratch, persistent per step).
        scratch_shapes = [
            pltpu.VMEM((H + 2 * (k // 2), W + 2 * (k // 2), all_ch[i]),
                       jnp.float32)
            for i, k in enumerate(self.kernel_sizes)
        ]

        kernel = _build_fused_kernel(H, W, all_ch, self.kernel_sizes, proj)

        out = pl.pallas_call(
            kernel,
            out_shape=jax.ShapeDtypeStruct((N, H, W, all_ch[-1]), jnp.float32),
            grid_spec=pltpu.PrefetchScalarGridSpec(
                num_scalar_prefetch=0,
                grid=(N,),                               # one image per step
                in_specs=in_specs,
                out_specs=pl.BlockSpec((1, H, W, all_ch[-1]),
                                       lambda n: (n, 0, 0, 0)),
                scratch_shapes=scratch_shapes,
            ),
            compiler_params=pltpu.CompilerParams(
                dimension_semantics=("parallel",),       # megacore-shardable
            ),
        )(*inputs)

        return jnp.transpose(out, (0, 3, 1, 2))          # -> NCHW

    # ---- pure-JAX reference (for verification) ----
    def reference(self, x_nchw):
        def conv(x, w, b, pad):
            y = jax.lax.conv_general_dilated(
                x, w, (1, 1), [(pad, pad), (pad, pad)],
                dimension_numbers=('NCHW', 'OIHW', 'NCHW'),
                precision=jax.lax.Precision.HIGHEST)
            if b is not None:
                y = y + b.reshape(1, -1, 1, 1)
            return y

        h = x_nchw
        n_conv = len(self.channels)
        for i in range(n_conv - 1):
            h = conv(h, self.weights[i], self.biases[i], self.kernel_sizes[i] // 2)
            h = jnp.maximum(h, 0.0)
        h = conv(h, self.weights[-1], self.biases[-1],
                 (self.kernel_sizes[-1] - 1) // 2)
        s = x_nchw if self.w_short is None else conv(x_nchw, self.w_short, None, 0)
        return jnp.maximum(h + s, 0.0)


if __name__ == "__main__":
    key = jax.random.PRNGKey(0)
    kx, kp1, kp2 = jax.random.split(key, 3)

    # NCHW input, consistent with the PyTorch module.
    x = jax.random.normal(kx, (2, 4, 16, 16), jnp.float32)

    # 1) projection (1x1-conv) shortcut: in_channels != channels[-1]
    blk1 = ResidualBlockPallas(in_channels=4, channels=[8, 6],
                               kernel_sizes=[3, 3], key=kp1)
    out1 = jax.block_until_ready(blk1(x))
    ref1 = blk1.reference(x)
    assert out1.shape == ref1.shape == (2, 6, 16, 16)
    err1 = float(jnp.max(jnp.abs(out1 - ref1)))
    assert err1 < 5e-2, f"projection-shortcut mismatch, max abs err {err1}"

    # 2) identity shortcut: in_channels == channels[-1]
    blk2 = ResidualBlockPallas(in_channels=4, channels=[8, 4],
                               kernel_sizes=[3, 3], key=kp2)
    out2 = jax.block_until_ready(blk2(x))
    ref2 = blk2.reference(x)
    assert out2.shape == ref2.shape == (2, 4, 16, 16)
    err2 = float(jnp.max(jnp.abs(out2 - ref2)))
    assert err2 < 5e-2, f"identity-shortcut mismatch, max abs err {err2}"

    print("KERNEL_OK")
</pallas_src>

<mosaic_0001>
module attributes {stable_mosaic.version = 11 : i64} {
  func.func @kernel(%arg0: i32, %arg1: memref<1x16x16x4xf32, #tpu.memory_space<vmem>>, %arg2: memref<9x4x8xf32, #tpu.memory_space<vmem>>, %arg3: memref<9x8x6xf32, #tpu.memory_space<vmem>>, %arg4: memref<1x8xf32, #tpu.memory_space<vmem>>, %arg5: memref<1x6xf32, #tpu.memory_space<vmem>>, %arg6: memref<4x6xf32, #tpu.memory_space<vmem>>, %arg7: memref<1x16x16x6xf32, #tpu.memory_space<vmem>>, %arg8: memref<18x18x4xf32, #tpu.memory_space<vmem>>, %arg9: memref<18x18x8xf32, #tpu.memory_space<vmem>>) attributes {dimension_semantics = [#tpu.dimension_semantics<parallel>], iteration_bounds = array<i64: 2>, scalar_prefetch = 0 : i64, scratch_operands = 2 : i64, tpu.core_type = #tpu.core_type<tc>, window_params = [{transform_indices = @transform_0, window_bounds = array<i64: 1, 16, 16, 4>}, {pipeline_mode = #tpu.pipeline_mode<synchronous>, transform_indices = @transform_1, window_bounds = array<i64: 9, 4, 8>}, {pipeline_mode = #tpu.pipeline_mode<synchronous>, transform_indices = @transform_2, window_bounds = array<i64: 9, 8, 6>}, {pipeline_mode = #tpu.pipeline_mode<synchronous>, transform_indices = @transform_3, window_bounds = array<i64: 1, 8>}, {pipeline_mode = #tpu.pipeline_mode<synchronous>, transform_indices = @transform_4, window_bounds = array<i64: 1, 6>}, {pipeline_mode = #tpu.pipeline_mode<synchronous>, transform_indices = @transform_5, window_bounds = array<i64: 4, 6>}, {transform_indices = @transform_6, window_bounds = array<i64: 1, 16, 16, 6>}]} {
    %c0 = arith.constant 0 : index
    %c0_0 = arith.constant 0 : index
    %c0_1 = arith.constant 0 : index
    %c0_2 = arith.constant 0 : index
    %0 = vector.load %arg1[%c0, %c0_0, %c0_1, %c0_2] : memref<1x16x16x4xf32, #tpu.memory_space<vmem>>, vector<1x16x16x4xf32>
    %1 = vector.shape_cast %0 : vector<1x16x16x4xf32> to vector<16x16x4xf32>
    %cst = arith.constant 0.000000e+00 : f32
    %2 = vector.broadcast %cst : f32 to vector<18x18x4xf32>
    %c0_3 = arith.constant 0 : index
    %c0_4 = arith.constant 0 : index
    %c0_5 = arith.constant 0 : index
    %3 = vector.load %arg8[%c0_3, %c0_4, %c0_5] : memref<18x18x4xf32, #tpu.memory_space<vmem>>, vector<18x18x4xf32>
    tpu.vector_store %arg8[%c0_3, %c0_4, %c0_5], %2 {strides = array<i32>} : memref<18x18x4xf32, #tpu.memory_space<vmem>>, vector<18x18x4xf32>,
    %c1 = arith.constant 1 : index
    %c1_6 = arith.constant 1 : index
    %c0_7 = arith.constant 0 : index
    %4 = vector.load %arg8[%c1, %c1_6, %c0_7] : memref<18x18x4xf32, #tpu.memory_space<vmem>>, vector<16x16x4xf32>
    tpu.vector_store %arg8[%c1, %c1_6, %c0_7], %1 {strides = array<i32>} : memref<18x18x4xf32, #tpu.memory_space<vmem>>, vector<16x16x4xf32>,
    %cst_8 = arith.constant 0.000000e+00 : f32
    %5 = vector.broadcast %cst_8 : f32 to vector<256x8xf32>
    %c0_9 = arith.constant 0 : index
    %c0_10 = arith.constant 0 : index
    %c0_11 = arith.constant 0 : index
    %6 = vector.load %arg8[%c0_9, %c0_10, %c0_11] : memref<18x18x4xf32, #tpu.memory_space<vmem>>, vector<16x16x4xf32>
    %7 = vector.shape_cast %6 : vector<16x16x4xf32> to vector<256x4xf32>
    %c0_12 = arith.constant 0 : index
    %c0_13 = arith.constant 0 : index
    %c0_14 = arith.constant 0 : index
    %8 = vector.load %arg2[%c0_12, %c0_13, %c0_14] : memref<9x4x8xf32, #tpu.memory_space<vmem>>, vector<1x4x8xf32>
    %9 = vector.shape_cast %8 : vector<1x4x8xf32> to vector<4x8xf32>
    %cst_15 = arith.constant dense<0.000000e+00> : vector<256x8xf32>
    %10 = tpu.matmul %7, %9, %cst_15 {dimension_numbers = #tpu.dot_dimension_numbers<[1], [0], [0], [1], [0, 0, 1, 1], [], []>} : vector<256x4xf32>, vector<4x8xf32>, vector<256x8xf32> -> vector<256x8xf32>
    %11 = arith.addf %5, %10 : vector<256x8xf32>
    %c0_16 = arith.constant 0 : index
    %c1_17 = arith.constant 1 : index
    %c0_18 = arith.constant 0 : index
    %12 = vector.load %arg8[%c0_16, %c1_17, %c0_18] : memref<18x18x4xf32, #tpu.memory_space<vmem>>, vector<16x16x4xf32>
    %13 = vector.shape_cast %12 : vector<16x16x4xf32> to vector<256x4xf32>
    %c1_19 = arith.constant 1 : index
    %c0_20 = arith.constant 0 : index
    %c0_21 = arith.constant 0 : index
    %14 = vector.load %arg2[%c1_19, %c0_20, %c0_21] : memref<9x4x8xf32, #tpu.memory_space<vmem>>, vector<1x4x8xf32>
    %15 = vector.shape_cast %14 : vector<1x4x8xf32> to vector<4x8xf32>
    %cst_22 = arith.constant dense<0.000000e+00> : vector<256x8xf32>
    %16 = tpu.matmul %13, %15, %cst_22 {dimension_numbers = #tpu.dot_dimension_numbers<[1], [0], [0], [1], [0, 0, 1, 1], [], []>} : vector<256x4xf32>, vector<4x8xf32>, vector<256x8xf32> -> vector<256x8xf32>
    %17 = arith.addf %11, %16 : vector<256x8xf32>
    %c0_23 = arith.constant 0 : index
    %c2 = arith.constant 2 : index
    %c0_24 = arith.constant 0 : index
    %18 = vector.load %arg8[%c0_23, %c2, %c0_24] : memref<18x18x4xf32, #tpu.memory_space<vmem>>, vector<16x16x4xf32>
    %19 = vector.shape_cast %18 : vector<16x16x4xf32> to vector<256x4xf32>
    %c2_25 = arith.constant 2 : index
    %c0_26 = arith.constant 0 : index
    %c0_27 = arith.constant 0 : index
    %20 = vector.load %arg2[%c2_25, %c0_26, %c0_27] : memref<9x4x8xf32, #tpu.memory_space<vmem>>, vector<1x4x8xf32>
    %21 = vector.shape_cast %20 : vector<1x4x8xf32> to vector<4x8xf32>
    %cst_28 = arith.constant dense<0.000000e+00> : vector<256x8xf32>
    %22 = tpu.matmul %19, %21, %cst_28 {dimension_numbers = #tpu.dot_dimension_numbers<[1], [0], [0], [1], [0, 0, 1, 1], [], []>} : vector<256x4xf32>, vector<4x8xf32>, vector<256x8xf32> -> vector<256x8xf32>
    %23 = arith.addf %17, %22 : vector<256x8xf32>
    %c1_29 = arith.constant 1 : index
    %c0_30 = arith.constant 0 : index
    %c0_31 = arith.constant 0 : index
    %24 = vector.load %arg8[%c1_29, %c0_30, %c0_31] : memref<18x18x4xf32, #tpu.memory_space<vmem>>, vector<16x16x4xf32>
    %25 = vector.shape_cast %24 : vector<16x16x4xf32> to vector<256x4xf32>
    %c3 = arith.constant 3 : index
    %c0_32 = arith.constant 0 : index
    %c0_33 = arith.constant 0 : index
    %26 = vector.load %arg2[%c3, %c0_32, %c0_33] : memref<9x4x8xf32, #tpu.memory_space<vmem>>, vector<1x4x8xf32>
    %27 = vector.shape_cast %26 : vector<1x4x8xf32> to vector<4x8xf32>
    %cst_34 = arith.constant dense<0.000000e+00> : vector<256x8xf32>
    %28 = tpu.matmul %25, %27, %cst_34 {dimension_numbers = #tpu.dot_dimension_numbers<[1], [0], [0], [1], [0, 0, 1, 1], [], []>} : vector<256x4xf32>, vector<4x8xf32>, vector<256x8xf32> -> vector<256x8xf32>
    %29 = arith.addf %23, %28 : vector<256x8xf32>
    %c1_35 = arith.constant 1 : index
    %c1_36 = arith.constant 1 : index
    %c0_37 = arith.constant 0 : index
    %30 = vector.load %arg8[%c1_35, %c1_36, %c0_37] : memref<18x18x4xf32, #tpu.memory_space<vmem>>, vector<16x16x4xf32>
    %31 = vector.shape_cast %30 : vector<16x16x4xf32> to vector<256x4xf32>
    %c4 = arith.constant 4 : index
    %c0_38 = arith.constant 0 : index
    %c0_39 = arith.constant 0 : index
    %32 = vector.load %arg2[%c4, %c0_38, %c0_39] : memref<9x4x8xf32, #tpu.memory_space<vmem>>, vector<1x4x8xf32>
    %33 = vector.shape_cast %32 : vector<1x4x8xf32> to vector<4x8xf32>
    %cst_40 = arith.constant dense<0.000000e+00> : vector<256x8xf32>
    %34 = tpu.matmul %31, %33, %cst_40 {dimension_numbers = #tpu.dot_dimension_numbers<[1], [0], [0], [1], [0, 0, 1, 1], [], []>} : vector<256x4xf32>, vector<4x8xf32>, vector<256x8xf32> -> vector<256x8xf32>
    %35 = arith.addf %29, %34 : vector<256x8xf32>
    %c1_41 = arith.constant 1 : index
    %c2_42 = arith.constant 2 : index
    %c0_43 = arith.constant 0 : index
    %36 = vector.load %arg8[%c1_41, %c2_42, %c0_43] : memref<18x18x4xf32, #tpu.memory_space<vmem>>, vector<16x16x4xf32>
    %37 = vector.shape_cast %36 : vector<16x16x4xf32> to vector<256x4xf32>
    %c5 = arith.constant 5 : index
    %c0_44 = arith.constant 0 : index
    %c0_45 = arith.constant 0 : index
    %38 = vector.load %arg2[%c5, %c0_44, %c0_45] : memref<9x4x8xf32, #tpu.memory_space<vmem>>, vector<1x4x8xf32>
    %39 = vector.shape_cast %38 : vector<1x4x8xf32> to vector<4x8xf32>
    %cst_46 = arith.constant dense<0.000000e+00> : vector<256x8xf32>
    %40 = tpu.matmul %37, %39, %cst_46 {dimension_numbers = #tpu.dot_dimension_numbers<[1], [0], [0], [1], [0, 0, 1, 1], [], []>} : vector<256x4xf32>, vector<4x8xf32>, vector<256x8xf32> -> vector<256x8xf32>
    %41 = arith.addf %35, %40 : vector<256x8xf32>
    %c2_47 = arith.constant 2 : index
    %c0_48 = arith.constant 0 : index
    %c0_49 = arith.constant 0 : index
    %42 = vector.load %arg8[%c2_47, %c0_48, %c0_49] : memref<18x18x4xf32, #tpu.memory_space<vmem>>, vector<16x16x4xf32>
    %43 = vector.shape_cast %42 : vector<16x16x4xf32> to vector<256x4xf32>
    %c6 = arith.constant 6 : index
    %c0_50 = arith.constant 0 : index
    %c0_51 = arith.constant 0 : index
    %44 = vector.load %arg2[%c6, %c0_50, %c0_51] : memref<9x4x8xf32, #tpu.memory_space<vmem>>, vector<1x4x8xf32>
    %45 = vector.shape_cast %44 : vector<1x4x8xf32> to vector<4x8xf32>
    %cst_52 = arith.constant dense<0.000000e+00> : vector<256x8xf32>
    %46 = tpu.matmul %43, %45, %cst_52 {dimension_numbers = #tpu.dot_dimension_numbers<[1], [0], [0], [1], [0, 0, 1, 1], [], []>} : vector<256x4xf32>, vector<4x8xf32>, vector<256x8xf32> -> vector<256x8xf32>
    %47 = arith.addf %41, %46 : vector<256x8xf32>
    %c2_53 = arith.constant 2 : index
    %c1_54 = arith.constant 1 : index
    %c0_55 = arith.constant 0 : index
    %48 = vector.load %arg8[%c2_53, %c1_54, %c0_55] : memref<18x18x4xf32, #tpu.memory_space<vmem>>, vector<16x16x4xf32>
    %49 = vector.shape_cast %48 : vector<16x16x4xf32> to vector<256x4xf32>
    %c7 = arith.constant 7 : index
    %c0_56 = arith.constant 0 : index
    %c0_57 = arith.constant 0 : index
    %50 = vector.load %arg2[%c7, %c0_56, %c0_57] : memref<9x4x8xf32, #tpu.memory_space<vmem>>, vector<1x4x8xf32>
    %51 = vector.shape_cast %50 : vector<1x4x8xf32> to vector<4x8xf32>
    %cst_58 = arith.constant dense<0.000000e+00> : vector<256x8xf32>
    %52 = tpu.matmul %49, %51, %cst_58 {dimension_numbers = #tpu.dot_dimension_numbers<[1], [0], [0], [1], [0, 0, 1, 1], [], []>} : vector<256x4xf32>, vector<4x8xf32>, vector<256x8xf32> -> vector<256x8xf32>
    %53 = arith.addf %47, %52 : vector<256x8xf32>
    %c2_59 = arith.constant 2 : index
    %c2_60 = arith.constant 2 : index
    %c0_61 = arith.constant 0 : index
    %54 = vector.load %arg8[%c2_59, %c2_60, %c0_61] : memref<18x18x4xf32, #tpu.memory_space<vmem>>, vector<16x16x4xf32>
    %55 = vector.shape_cast %54 : vector<16x16x4xf32> to vector<256x4xf32>
    %c8 = arith.constant 8 : index
    %c0_62 = arith.constant 0 : index
    %c0_63 = arith.constant 0 : index
    %56 = vector.load %arg2[%c8, %c0_62, %c0_63] : memref<9x4x8xf32, #tpu.memory_space<vmem>>, vector<1x4x8xf32>
    %57 = vector.shape_cast %56 : vector<1x4x8xf32> to vector<4x8xf32>
    %cst_64 = arith.constant dense<0.000000e+00> : vector<256x8xf32>
    %58 = tpu.matmul %55, %57, %cst_64 {dimension_numbers = #tpu.dot_dimension_numbers<[1], [0], [0], [1], [0, 0, 1, 1], [], []>} : vector<256x4xf32>, vector<4x8xf32>, vector<256x8xf32> -> vector<256x8xf32>
    %59 = arith.addf %53, %58 : vector<256x8xf32>
    %c0_65 = arith.constant 0 : index
    %c0_66 = arith.constant 0 : index
    %60 = vector.load %arg4[%c0_65, %c0_66] : memref<1x8xf32, #tpu.memory_space<vmem>>, vector<1x8xf32>
    %61 = vector.broadcast %60 : vector<1x8xf32> to vector<256x8xf32>
    %62 = arith.addf %59, %61 : vector<256x8xf32>
    %cst_67 = arith.constant 0.000000e+00 : f32
    %63 = vector.broadcast %cst_67 : f32 to vector<256x8xf32>
    %64 = arith.maximumf %62, %63 : vector<256x8xf32>
    %65 = vector.shape_cast %64 : vector<256x8xf32> to vector<16x16x8xf32>
    %cst_68 = arith.constant 0.000000e+00 : f32
    %66 = vector.broadcast %cst_68 : f32 to vector<18x18x8xf32>
    %c0_69 = arith.constant 0 : index
    %c0_70 = arith.constant 0 : index
    %c0_71 = arith.constant 0 : index
    %67 = vector.load %arg9[%c0_69, %c0_70, %c0_71] : memref<18x18x8xf32, #tpu.memory_space<vmem>>, vector<18x18x8xf32>
    tpu.vector_store %arg9[%c0_69, %c0_70, %c0_71], %66 {strides = array<i32>} : memref<18x18x8xf32, #tpu.memory_space<vmem>>, vector<18x18x8xf32>,
    %c1_72 = arith.constant 1 : index
    %c1_73 = arith.constant 1 : index
    %c0_74 = arith.constant 0 : index
    %68 = vector.load %arg9[%c1_72, %c1_73, %c0_74] : memref<18x18x8xf32, #tpu.memory_space<vmem>>, vector<16x16x8xf32>
    tpu.vector_store %arg9[%c1_72, %c1_73, %c0_74], %65 {strides = array<i32>} : memref<18x18x8xf32, #tpu.memory_space<vmem>>, vector<16x16x8xf32>,
    %cst_75 = arith.constant 0.000000e+00 : f32
    %69 = vector.broadcast %cst_75 : f32 to vector<256x6xf32>
    %c0_76 = arith.constant 0 : index
    %c0_77 = arith.constant 0 : index
    %c0_78 = arith.constant 0 : index
    %70 = vector.load %arg9[%c0_76, %c0_77, %c0_78] : memref<18x18x8xf32, #tpu.memory_space<vmem>>, vector<16x16x8xf32>
    %71 = vector.shape_cast %70 : vector<16x16x8xf32> to vector<256x8xf32>
    %c0_79 = arith.constant 0 : index
    %c0_80 = arith.constant 0 : index
    %c0_81 = arith.constant 0 : index
    %72 = vector.load %arg3[%c0_79, %c0_80, %c0_81] : memref<9x8x6xf32, #tpu.memory_space<vmem>>, vector<1x8x6xf32>
    %73 = vector.shape_cast %72 : vector<1x8x6xf32> to vector<8x6xf32>
    %cst_82 = arith.constant dense<0.000000e+00> : vector<256x6xf32>
    %74 = tpu.matmul %71, %73, %cst_82 {dimension_numbers = #tpu.dot_dimension_numbers<[1], [0], [0], [1], [0, 0, 1, 1], [], []>} : vector<256x8xf32>, vector<8x6xf32>, vector<256x6xf32> -> vector<256x6xf32>
    %75 = arith.addf %69, %74 : vector<256x6xf32>
    %c0_83 = arith.constant 0 : index
    %c1_84 = arith.constant 1 : index
    %c0_85 = arith.constant 0 : index
    %76 = vector.load %arg9[%c0_83, %c1_84, %c0_85] : memref<18x18x8xf32, #tpu.memory_space<vmem>>, vector<16x16x8xf32>
    %77 = vector.shape_cast %76 : vector<16x16x8xf32> to vector<256x8xf32>
    %c1_86 = arith.constant 1 : index
    %c0_87 = arith.constant 0 : index
    %c0_88 = arith.constant 0 : index
    %78 = vector.load %arg3[%c1_86, %c0_87, %c0_88] : memref<9x8x6xf32, #tpu.memory_space<vmem>>, vector<1x8x6xf32>
    %79 = vector.shape_cast %78 : vector<1x8x6xf32> to vector<8x6xf32>
    %cst_89 = arith.constant dense<0.000000e+00> : vector<256x6xf32>
    %80 = tpu.matmul %77, %79, %cst_89 {dimension_numbers = #tpu.dot_dimension_numbers<[1], [0], [0], [1], [0, 0, 1, 1], [], []>} : vector<256x8xf32>, vector<8x6xf32>, vector<256x6xf32> -> vector<256x6xf32>
    %81 = arith.addf %75, %80 : vector<256x6xf32>
    %c0_90 = arith.constant 0 : index
    %c2_91 = arith.constant 2 : index
    %c0_92 = arith.constant 0 : index
    %82 = vector.load %arg9[%c0_90, %c2_91, %c0_92] : memref<18x18x8xf32, #tpu.memory_space<vmem>>, vector<16x16x8xf32>
    %83 = vector.shape_cast %82 : vector<16x16x8xf32> to vector<256x8xf32>
    %c2_93 = arith.constant 2 : index
    %c0_94 = arith.constant 0 : index
    %c0_95 = arith.constant 0 : index
    %84 = vector.load %arg3[%c2_93, %c0_94, %c0_95] : memref<9x8x6xf32, #tpu.memory_space<vmem>>, vector<1x8x6xf32>
    %85 = vector.shape_cast %84 : vector<1x8x6xf32> to vector<8x6xf32>
    %cst_96 = arith.constant dense<0.000000e+00> : vector<256x6xf32>
    %86 = tpu.matmul %83, %85, %cst_96 {dimension_numbers = #tpu.dot_dimension_numbers<[1], [0], [0], [1], [0, 0, 1, 1], [], []>} : vector<256x8xf32>, vector<8x6xf32>, vector<256x6xf32> -> vector<256x6xf32>
    %87 = arith.addf %81, %86 : vector<256x6xf32>
    %c1_97 = arith.constant 1 : index
    %c0_98 = arith.constant 0 : index
    %c0_99 = arith.constant 0 : index
    %88 = vector.load %arg9[%c1_97, %c0_98, %c0_99] : memref<18x18x8xf32, #tpu.memory_space<vmem>>, vector<16x16x8xf32>
    %89 = vector.shape_cast %88 : vector<16x16x8xf32> to vector<256x8xf32>
    %c3_100 = arith.constant 3 : index
    %c0_101 = arith.constant 0 : index
    %c0_102 = arith.constant 0 : index
    %90 = vector.load %arg3[%c3_100, %c0_101, %c0_102] : memref<9x8x6xf32, #tpu.memory_space<vmem>>, vector<1x8x6xf32>
    %91 = vector.shape_cast %90 : vector<1x8x6xf32> to vector<8x6xf32>
    %cst_103 = arith.constant dense<0.000000e+00> : vector<256x6xf32>
    %92 = tpu.matmul %89, %91, %cst_103 {dimension_numbers = #tpu.dot_dimension_numbers<[1], [0], [0], [1], [0, 0, 1, 1], [], []>} : vector<256x8xf32>, vector<8x6xf32>, vector<256x6xf32> -> vector<256x6xf32>
    %93 = arith.addf %87, %92 : vector<256x6xf32>
    %c1_104 = arith.constant 1 : index
    %c1_105 = arith.constant 1 : index
    %c0_106 = arith.constant 0 : index
    %94 = vector.load %arg9[%c1_104, %c1_105, %c0_106] : memref<18x18x8xf32, #tpu.memory_space<vmem>>, vector<16x16x8xf32>
    %95 = vector.shape_cast %94 : vector<16x16x8xf32> to vector<256x8xf32>
    %c4_107 = arith.constant 4 : index
    %c0_108 = arith.constant 0 : index
    %c0_109 = arith.constant 0 : index
    %96 = vector.load %arg3[%c4_107, %c0_108, %c0_109] : memref<9x8x6xf32, #tpu.memory_space<vmem>>, vector<1x8x6xf32>
    %97 = vector.shape_cast %96 : vector<1x8x6xf32> to vector<8x6xf32>
    %cst_110 = arith.constant dense<0.000000e+00> : vector<256x6xf32>
    %98 = tpu.matmul %95, %97, %cst_110 {dimension_numbers = #tpu.dot_dimension_numbers<[1], [0], [0], [1], [0, 0, 1, 1], [], []>} : vector<256x8xf32>, vector<8x6xf32>, vector<256x6xf32> -> vector<256x6xf32>
    %99 = arith.addf %93, %98 : vector<256x6xf32>
    %c1_111 = arith.constant 1 : index
    %c2_112 = arith.constant 2 : index
    %c0_113 = arith.constant 0 : index
    %100 = vector.load %arg9[%c1_111, %c2_112, %c0_113] : memref<18x18x8xf32, #tpu.memory_space<vmem>>, vector<16x16x8xf32>
    %101 = vector.shape_cast %100 : vector<16x16x8xf32> to vector<256x8xf32>
    %c5_114 = arith.constant 5 : index
    %c0_115 = arith.constant 0 : index
    %c0_116 = arith.constant 0 : index
    %102 = vector.load %arg3[%c5_114, %c0_115, %c0_116] : memref<9x8x6xf32, #tpu.memory_space<vmem>>, vector<1x8x6xf32>
    %103 = vector.shape_cast %102 : vector<1x8x6xf32> to vector<8x6xf32>
    %cst_117 = arith.constant dense<0.000000e+00> : vector<256x6xf32>
    %104 = tpu.matmul %101, %103, %cst_117 {dimension_numbers = #tpu.dot_dimension_numbers<[1], [0], [0], [1], [0, 0, 1, 1], [], []>} : vector<256x8xf32>, vector<8x6xf32>, vector<256x6xf32> -> vector<256x6xf32>
    %105 = arith.addf %99, %104 : vector<256x6xf32>
    %c2_118 = arith.constant 2 : index
    %c0_119 = arith.constant 0 : index
    %c0_120 = arith.constant 0 : index
    %106 = vector.load %arg9[%c2_118, %c0_119, %c0_120] : memref<18x18x8xf32, #tpu.memory_space<vmem>>, vector<16x16x8xf32>
    %107 = vector.shape_cast %106 : vector<16x16x8xf32> to vector<256x8xf32>
    %c6_121 = arith.constant 6 : index
    %c0_122 = arith.constant 0 : index
    %c0_123 = arith.constant 0 : index
    %108 = vector.load %arg3[%c6_121, %c0_122, %c0_123] : memref<9x8x6xf32, #tpu.memory_space<vmem>>, vector<1x8x6xf32>
    %109 = vector.shape_cast %108 : vector<1x8x6xf32> to vector<8x6xf32>
    %cst_124 = arith.constant dense<0.000000e+00> : vector<256x6xf32>
    %110 = tpu.matmul %107, %109, %cst_124 {dimension_numbers = #tpu.dot_dimension_numbers<[1], [0], [0], [1], [0, 0, 1, 1], [], []>} : vector<256x8xf32>, vector<8x6xf32>, vector<256x6xf32> -> vector<256x6xf32>
    %111 = arith.addf %105, %110 : vector<256x6xf32>
    %c2_125 = arith.constant 2 : index
    %c1_126 = arith.constant 1 : index
    %c0_127 = arith.constant 0 : index
    %112 = vector.load %arg9[%c2_125, %c1_126, %c0_127] : memref<18x18x8xf32, #tpu.memory_space<vmem>>, vector<16x16x8xf32>
    %113 = vector.shape_cast %112 : vector<16x16x8xf32> to vector<256x8xf32>
    %c7_128 = arith.constant 7 : index
    %c0_129 = arith.constant 0 : index
    %c0_130 = arith.constant 0 : index
    %114 = vector.load %arg3[%c7_128, %c0_129, %c0_130] : memref<9x8x6xf32, #tpu.memory_space<vmem>>, vector<1x8x6xf32>
    %115 = vector.shape_cast %114 : vector<1x8x6xf32> to vector<8x6xf32>
    %cst_131 = arith.constant dense<0.000000e+00> : vector<256x6xf32>
    %116 = tpu.matmul %113, %115, %cst_131 {dimension_numbers = #tpu.dot_dimension_numbers<[1], [0], [0], [1], [0, 0, 1, 1], [], []>} : vector<256x8xf32>, vector<8x6xf32>, vector<256x6xf32> -> vector<256x6xf32>
    %117 = arith.addf %111, %116 : vector<256x6xf32>
    %c2_132 = arith.constant 2 : index
    %c2_133 = arith.constant 2 : index
    %c0_134 = arith.constant 0 : index
    %118 = vector.load %arg9[%c2_132, %c2_133, %c0_134] : memref<18x18x8xf32, #tpu.memory_space<vmem>>, vector<16x16x8xf32>
    %119 = vector.shape_cast %118 : vector<16x16x8xf32> to vector<256x8xf32>
    %c8_135 = arith.constant 8 : index
    %c0_136 = arith.constant 0 : index
    %c0_137 = arith.constant 0 : index
    %120 = vector.load %arg3[%c8_135, %c0_136, %c0_137] : memref<9x8x6xf32, #tpu.memory_space<vmem>>, vector<1x8x6xf32>
    %121 = vector.shape_cast %120 : vector<1x8x6xf32> to vector<8x6xf32>
    %cst_138 = arith.constant dense<0.000000e+00> : vector<256x6xf32>
    %122 = tpu.matmul %119, %121, %cst_138 {dimension_numbers = #tpu.dot_dimension_numbers<[1], [0], [0], [1], [0, 0, 1, 1], [], []>} : vector<256x8xf32>, vector<8x6xf32>, vector<256x6xf32> -> vector<256x6xf32>
    %123 = arith.addf %117, %122 : vector<256x6xf32>
    %c0_139 = arith.constant 0 : index
    %c0_140 = arith.constant 0 : index
    %124 = vector.load %arg5[%c0_139, %c0_140] : memref<1x6xf32, #tpu.memory_space<vmem>>, vector<1x6xf32>
    %125 = vector.broadcast %124 : vector<1x6xf32> to vector<256x6xf32>
    %126 = arith.addf %123, %125 : vector<256x6xf32>
    %127 = vector.shape_cast %1 : vector<16x16x4xf32> to vector<256x4xf32>
    %c0_141 = arith.constant 0 : index
    %c0_142 = arith.constant 0 : index
    %128 = vector.load %arg6[%c0_141, %c0_142] : memref<4x6xf32, #tpu.memory_space<vmem>>, vector<4x6xf32>
    %cst_143 = arith.constant dense<0.000000e+00> : vector<256x6xf32>
    %129 = tpu.matmul %127, %128, %cst_143 {dimension_numbers = #tpu.dot_dimension_numbers<[1], [0], [0], [1], [0, 0, 1, 1], [], []>} : vector<256x4xf32>, vector<4x6xf32>, vector<256x6xf32> -> vector<256x6xf32>
    %130 = arith.addf %126, %129 : vector<256x6xf32>
    %cst_144 = arith.constant 0.000000e+00 : f32
    %131 = vector.broadcast %cst_144 : f32 to vector<256x6xf32>
    %132 = arith.maximumf %130, %131 : vector<256x6xf32>
    %133 = vector.shape_cast %132 : vector<256x6xf32> to vector<16x16x6xf32>
    %c0_145 = arith.constant 0 : index
    %c0_146 = arith.constant 0 : index
    %c0_147 = arith.constant 0 : index
    %c0_148 = arith.constant 0 : index
    %134 = vector.load %arg7[%c0_145, %c0_146, %c0_147, %c0_148] : memref<1x16x16x6xf32, #tpu.memory_space<vmem>>, vector<1x16x16x6xf32>
    %135 = vector.shape_cast %134 : vector<1x16x16x6xf32> to vector<16x16x6xf32>
    %136 = vector.shape_cast %133 : vector<16x16x6xf32> to vector<1x16x16x6xf32>
    tpu.vector_store %arg7[%c0_145, %c0_146, %c0_147, %c0_148], %136 {strides = array<i32>} : memref<1x16x16x6xf32, #tpu.memory_space<vmem>>, vector<1x16x16x6xf32>,
    return
  }
  func.func @transform_0(%arg0: i32) -> (i32, i32, i32, i32) {
    %c0_i32 = arith.constant 0 : i32
    %c0_i32_0 = arith.constant 0 : i32
    %c0_i32_1 = arith.constant 0 : i32
    %c0_i32_2 = arith.constant 0 : i32
    return %arg0, %c0_i32, %c0_i32_0, %c0_i32_1 : i32, i32, i32, i32
  }
  func.func @transform_1(%arg0: i32) -> (i32, i32, i32) {
    %c0_i32 = arith.constant 0 : i32
    %c0_i32_0 = arith.constant 0 : i32
    %c0_i32_1 = arith.constant 0 : i32
    %c0_i32_2 = arith.constant 0 : i32
    return %c0_i32, %c0_i32_0, %c0_i32_1 : i32, i32, i32
  }
  func.func @transform_2(%arg0: i32) -> (i32, i32, i32) {
    %c0_i32 = arith.constant 0 : i32
    %c0_i32_0 = arith.constant 0 : i32
    %c0_i32_1 = arith.constant 0 : i32
    %c0_i32_2 = arith.constant 0 : i32
    return %c0_i32, %c0_i32_0, %c0_i32_1 : i32, i32, i32
  }
  func.func @transform_3(%arg0: i32) -> (i32, i32) {
    %c0_i32 = arith.constant 0 : i32
    %c0_i32_0 = arith.constant 0 : i32
    %c0_i32_1 = arith.constant 0 : i32
    return %c0_i32, %c0_i32_0 : i32, i32
  }
  func.func @transform_4(%arg0: i32) -> (i32, i32) {
    %c0_i32 = arith.constant 0 : i32
    %c0_i32_0 = arith.constant 0 : i32
    %c0_i32_1 = arith.constant 0 : i32
    return %c0_i32, %c0_i32_0 : i32, i32
  }
  func.func @transform_5(%arg0: i32) -> (i32, i32) {
    %c0_i32 = arith.constant 0 : i32
    %c0_i32_0 = arith.constant 0 : i32
    %c0_i32_1 = arith.constant 0 : i32
    return %c0_i32, %c0_i32_0 : i32, i32
  }
  func.func @transform_6(%arg0: i32) -> (i32, i32, i32, i32) {
    %c0_i32 = arith.constant 0 : i32
    %c0_i32_0 = arith.constant 0 : i32
    %c0_i32_1 = arith.constant 0 : i32
    %c0_i32_2 = arith.constant 0 : i32
    return %arg0, %c0_i32, %c0_i32_0, %c0_i32_1 : i32, i32, i32, i32
  }
}

</mosaic_0001>

<bundles_post_ra>
// kernel: tpu_custom_call.1
= control target key start
LH: loop header
LB: loop body
LE: loop exit
PB: predicated region body
PF: predicated region fallthrough
CT: control target
= control target key end

     0   :  { %s10772_s21 = smov 0   ;;  %s13057_s0 = inlined_call_operand.vmem [shape: f32[2,16,16,4], index: 0, kind: input, shape index: {}]   ;;  %s13058_s1 = inlined_call_operand.vmem [shape: f32[9,4,8], index: 1, kind: input, shape index: {}]   ;;  %s13059_s2 = inlined_call_operand.vmem [shape: f32[9,8,6], index: 2, kind: input, shape index: {}]   ;;  %s13060_s3 = inlined_call_operand.vmem [shape: f32[1,8], index: 3, kind: input, shape index: {}]   ;;  %s13061_s4 = inlined_call_operand.vmem [shape: f32[1,6], index: 4, kind: input, shape index: {}]   ;;  %s13062_s5 = inlined_call_operand.vmem [shape: f32[4,6], index: 5, kind: input, shape index: {}]   ;;  %s13063_s6 = inlined_call_operand.vmem [shape: f32[2,16,16,6], index: 6, kind: output, shape index: {}]  }
   0x1 LB: > { %s7915_s22 = sadd.s32 4294967295, %s10734_s21   ;;  %p7919_p0 = scmp.ge.s32.totalorder %s10734_s21, 1  ;;  %s10734_s21 = sphi %s10772_s21, %s16_s21  }
   0x2   : > { %p212_p1 = scmp.lt.s32.totalorder %s10734_s21, 3 }
   0x4   : > { %p213_p2 = pnand %p7919_p0, %p212_p1 }
   0x6   : > { %216 = sbr.rel (%p213_p2) target bundleno = 1635 (0x663), region = 44 }
   0xd   : > { %v7924_v0 = vld [vmem:[%s13058_s1 + $0x4] sm:$0xf]  ;;  %vm536_vm0 = vcmask 1043456   ;;  %vm284_vm1 = vcmask 31744   ;;  %vm287_vm2 = vcmask 25600   ;;  %v13064_v1 = vmov 0.0  }
   0xe   : > { %9191 = vmatprep.subr.msk.mxu0 %vm536_vm0, %v7924_v0  ;;  %285 = vst.msk [vmem:[#allocation2] sm:$0xff] %vm284_vm1, %v13064_v1  ;;  %286 = vst.msk [vmem:[#allocation2 + $0x8] sm:$0xff] %vm284_vm1, %v13064_v1  ;;  %v405_v2 = vld [vmem:[%s13058_s1] sm:$0xf]  ;;  %p242_p3 = scmp.lt.s32.totalorder %s7915_s22, 1  ;;  %vm3891_vm3 = vcmask 64512  }
   0xf   : > { %289 = vst.msk [vmem:[#allocation2 + $0x18] sm:$0xff] %vm284_vm1, %v13064_v1  ;;  %290 = vst.msk [vmem:[#allocation2 + $0x20] sm:$0xff] %vm284_vm1, %v13064_v1  ;;  %9192 = vmatpush3.msk.msra.mxu0 %vm536_vm0, %v7924_v0  ;;  %v10923_v6 = vld [vmem:[%s13058_s1 + $0x8] sm:$0xf]  ;;  %vm3894_vm4 = vcmask 58368   ;;  %vm7827_vm5 = vcmask 48128  }
  0x10   : > { %292 = vst.msk [vmem:[#allocation2 + $0x30] sm:$0xff] %vm284_vm1, %v13064_v1  ;;  %293 = vst.msk [vmem:[#allocation2 + $0x38] sm:$0xff] %vm284_vm1, %v13064_v1  ;;  %9241 = vmatprep.subr.msk.mxu0 %vm536_vm0, %v405_v2  ;;  %s13464_s22 = smov (!%p242_p3, %s7915_s22), 1 }
  0x11   : > { %295 = vst.msk [vmem:[#allocation2 + $0x48] sm:$0xff] %vm284_vm1, %v13064_v1  ;;  %296 = vst.msk [vmem:[#allocation2 + $0x50] sm:$0xff] %vm284_vm1, %v13064_v1  ;;  %s8562_s27 = sshll.u32 %s13464_s22, 8 }
  0x12   : > { %298 = vst.msk [vmem:[#allocation2 + $0x60] sm:$0xff] %vm284_vm1, %v13064_v1  ;;  %299 = vst.msk [vmem:[#allocation2 + $0x68] sm:$0xff] %vm284_vm1, %v13064_v1  ;;  %s10909_s30 = scalar_lea.vmem %s13057_s0, %s8562_s27  ;;  %s12944_s29 = scalar_lea.vmem %s13063_s6, %s8562_s27 }
  0x13   : > { %301 = vst.msk [vmem:[#allocation2 + $0x78] sm:$0xff] %vm284_vm1, %v13064_v1  ;;  %302 = vst.msk [vmem:[#allocation2 + $0x80] sm:$0xff] %vm284_vm1, %v13064_v1  ;;  %v10912_v3 = vld [vmem:[%s10909_s30] sm:$0xff]  ;;  %v10915_v4 = vld [vmem:[%s10909_s30 + $0x8] sm:$0xff] }
  0x14   : > { %304 = vst.msk [vmem:[#allocation2 + $0x90] sm:$0xff] %vm284_vm1, %v13064_v1  ;;  %305 = vst.msk [vmem:[#allocation2 + $0x98] sm:$0xff] %vm284_vm1, %v13064_v1  ;;  %v10918_v5 = vld [vmem:[%s10909_s30 + $0x10] sm:$0xff]  ;;  %v10932_v9 = vld [vmem:[%s10909_s30 + $0x18] sm:$0xff] }
  0x15   : > { %307 = vst.msk [vmem:[#allocation2 + $0xa8] sm:$0xff] %vm284_vm1, %v13064_v1  ;;  %308 = vst.msk [vmem:[#allocation2 + $0xb0] sm:$0xff] %vm284_vm1, %v13064_v1  ;;  %v406_v7 = vld [vmem:[#allocation2 + $0x1] sm:$0xff]  ;;  %v10944_v12 = vld [vmem:[%s10909_s30 + $0x30] sm:$0xff] }
  0x16   : > { %310 = vst.msk [vmem:[#allocation2 + $0xc0] sm:$0xff] %vm284_vm1, %v13064_v1  ;;  %311 = vst.msk [vmem:[#allocation2 + $0xc8] sm:$0xff] %vm284_vm1, %v13064_v1  ;;  %9193 = vmatprep.mubr.msk.f32.mxu0 %vm284_vm1, %v406_v7  ;;  %v10938_v10 = vld [vmem:[%s10909_s30 + $0x20] sm:$0xff]  ;;  %v10941_v11 = vld [vmem:[%s10909_s30 + $0x28] sm:$0xff] }
  0x17   : > { %313 = vst.msk [vmem:[#allocation2 + $0xd8] sm:$0xff] %vm284_vm1, %v13064_v1  ;;  %314 = vst.msk [vmem:[#allocation2 + $0xe0] sm:$0xff] %vm284_vm1, %v13064_v1  ;;  %v10954_v13 = vld [vmem:[%s10909_s30 + $0x38] sm:$0xff]  ;;  %v10957_v14 = vld [vmem:[%s10909_s30 + $0x40] sm:$0xff] }
  0x18   : > { %316 = vst.msk [vmem:[#allocation2 + $0xf0] sm:$0xff] %vm284_vm1, %v13064_v1  ;;  %317 = vst.msk [vmem:[#allocation2 + $0xf8] sm:$0xff] %vm284_vm1, %v13064_v1  ;;  %v10960_v15 = vld [vmem:[%s10909_s30 + $0x48] sm:$0xff]  ;;  %v10970_v16 = vld [vmem:[%s10909_s30 + $0x50] sm:$0xff] }
  0x19   : > { %319 = vst.msk [vmem:[#allocation2 + $0x108] sm:$0xff] %vm284_vm1, %v13064_v1  ;;  %320 = vst.msk [vmem:[#allocation2 + $0x110] sm:$0xff] %vm284_vm1, %v13064_v1  ;;  %v10973_v17 = vld [vmem:[%s10909_s30 + $0x58] sm:$0xff]  ;;  %v10976_v18 = vld [vmem:[%s10909_s30 + $0x60] sm:$0xff] }
  0x1a   : > { %322 = vst.msk [vmem:[#allocation2 + $0x120] sm:$0xff] %vm284_vm1, %v13064_v1  ;;  %323 = vst.msk [vmem:[#allocation2 + $0x128] sm:$0xff] %vm284_vm1, %v13064_v1  ;;  %v10985_v19 = vld [vmem:[%s10909_s30 + $0x68] sm:$0xff]  ;;  %v10988_v20 = vld [vmem:[%s10909_s30 + $0x70] sm:$0xff] }
  0x1b   : > { %325 = vst.msk [vmem:[#allocation2 + $0x138] sm:$0xff] %vm284_vm1, %v13064_v1  ;;  %326 = vst.msk [vmem:[#allocation2 + $0x140] sm:$0xff] %vm284_vm1, %v13064_v1  ;;  %v10991_v21 = vld [vmem:[%s10909_s30 + $0x78] sm:$0xff]  ;;  %v11002_v22 = vld [vmem:[%s10909_s30 + $0x80] sm:$0xff] }
  0x1c   : > { %328 = vst.msk [vmem:[#allocation2 + $0x150] sm:$0xff] %vm284_vm1, %v13064_v1  ;;  %329 = vst.msk [vmem:[#allocation2 + $0x158] sm:$0xff] %vm284_vm1, %v13064_v1  ;;  %v11005_v23 = vld [vmem:[%s10909_s30 + $0x88] sm:$0xff]  ;;  %v11008_v24 = vld [vmem:[%s10909_s30 + $0x90] sm:$0xff] }
  0x1d   : > { %331 = vst.msk [vmem:[#allocation2 + $0x168] sm:$0xff] %vm284_vm1, %v13064_v1  ;;  %332 = vst.msk [vmem:[#allocation2 + $0x170] sm:$0xff] %vm284_vm1, %v13064_v1  ;;  %v11017_v25 = vld [vmem:[%s10909_s30 + $0x98] sm:$0xff]  ;;  %v11020_v26 = vld [vmem:[%s10909_s30 + $0xa0] sm:$0xff] }
  0x1e   : > { %334 = vst.msk [vmem:[#allocation2 + $0x180] sm:$0xff] %vm284_vm1, %v13064_v1  ;;  %335 = vst.msk [vmem:[#allocation2 + $0x188] sm:$0xff] %vm284_vm1, %v13064_v1  ;;  %v11023_v27 = vld [vmem:[%s10909_s30 + $0xa8] sm:$0xff]  ;;  %v11040_v31 = vld [vmem:[%s10909_s30 + $0xb0] sm:$0xff] }
  0x1f   : > { %337 = vst.msk [vmem:[#allocation2 + $0x198] sm:$0xff] %vm284_vm1, %v13064_v1  ;;  %338 = vst.msk [vmem:[#allocation2 + $0x1a0] sm:$0xff] %vm284_vm1, %v13064_v1  ;;  %v11043_v32 = vld [vmem:[%s10909_s30 + $0xb8] sm:$0xff]  ;;  %v11066_v37 = vld [vmem:[%s10909_s30 + $0xc0] sm:$0xff] }
  0x20   : > { %288 = vst.msk [vmem:[#allocation2 + $0x10] sm:$0x3] %vm287_vm2, %v13064_v1  ;;  %291 = vst.msk [vmem:[#allocation2 + $0x28] sm:$0x3] %vm287_vm2, %v13064_v1  ;;  %v11069_v38 = vld [vmem:[%s10909_s30 + $0xc8] sm:$0xff]  ;;  %v11072_v39 = vld [vmem:[%s10909_s30 + $0xd0] sm:$0xff] }
  0x21   : > { %294 = vst.msk [vmem:[#allocation2 + $0x40] sm:$0x3] %vm287_vm2, %v13064_v1  ;;  %297 = vst.msk [vmem:[#allocation2 + $0x58] sm:$0x3] %vm287_vm2, %v13064_v1  ;;  %v11081_v40 = vld [vmem:[%s10909_s30 + $0xd8] sm:$0xff]  ;;  %v11088_v41 = vld [vmem:[%s10909_s30 + $0xe0] sm:$0xff] }
  0x22   : > { %300 = vst.msk [vmem:[#allocation2 + $0x70] sm:$0x3] %vm287_vm2, %v13064_v1  ;;  %303 = vst.msk [vmem:[#allocation2 + $0x88] sm:$0x3] %vm287_vm2, %v13064_v1  ;;  %v11091_v42 = vld [vmem:[%s10909_s30 + $0xe8] sm:$0xff]  ;;  %v373_v7 = vld [vmem:[#allocation2] sm:$0xff] }
  0x23   : > { %306 = vst.msk [vmem:[#allocation2 + $0xa0] sm:$0x3] %vm287_vm2, %v13064_v1  ;;  %309 = vst.msk [vmem:[#allocation2 + $0xb8] sm:$0x3] %vm287_vm2, %v13064_v1 }
  0x24   : > { %312 = vst.msk [vmem:[#allocation2 + $0xd0] sm:$0x3] %vm287_vm2, %v13064_v1  ;;  %315 = vst.msk [vmem:[#allocation2 + $0xe8] sm:$0x3] %vm287_vm2, %v13064_v1 }
  0x25   : > { %318 = vst.msk [vmem:[#allocation2 + $0x100] sm:$0x3] %vm287_vm2, %v13064_v1  ;;  %321 = vst.msk [vmem:[#allocation2 + $0x118] sm:$0x3] %vm287_vm2, %v13064_v1 }
  0x26   : > { %324 = vst.msk [vmem:[#allocation2 + $0x130] sm:$0x3] %vm287_vm2, %v13064_v1  ;;  %327 = vst.msk [vmem:[#allocation2 + $0x148] sm:$0x3] %vm287_vm2, %v13064_v1 }
  0x27   : > { %330 = vst.msk [vmem:[#allocation2 + $0x160] sm:$0x3] %vm287_vm2, %v13064_v1  ;;  %333 = vst.msk [vmem:[#allocation2 + $0x178] sm:$0x3] %vm287_vm2, %v13064_v1  ;;  %v407_v8 = vld [vmem:[#allocation2 + $0x9] sm:$0xff] }
  0x28   : > { %336 = vst.msk [vmem:[#allocation2 + $0x190] sm:$0x3] %vm287_vm2, %v13064_v1  ;;  %339 = vst.msk [vmem:[#allocation2 + $0x1a8] sm:$0x3] %vm287_vm2, %v13064_v1  ;;  %9194 = vmatmul.mubr.msk.f32.vlgmr.msra.gmra.mrb[0].mxu0 %vm284_vm1, %v407_v8  ;;  %v374_v8 = vld [vmem:[#allocation2 + $0x8] sm:$0xff] }
  0x29   : > { %13213 = vst [vmem:[#allocation4_spill] sm:$0xff] %v10912_v3  ;;  %13214 = vst [vmem:[#allocation5_spill] sm:$0xff] %v10915_v4  ;;  %9242 = vmatpush3.msk.msra.mxu0 %vm536_vm0, %v405_v2 }
  0x2a   : > { %13215 = vst [vmem:[#allocation6_spill] sm:$0xff] %v10918_v5  ;;  %341 = vst.msk [vmem:[#allocation2 + $0x19] sm:$0xff] %vm284_vm1, %v10912_v3  ;;  %9291 = vmatprep.subr.msk.mxu0 %vm536_vm0, %v10923_v6 }
  0x2b   : > { %342 = vst.msk [vmem:[#allocation2 + $0x21] sm:$0xff] %vm284_vm1, %v10915_v4  ;;  %343 = vst.msk [vmem:[#allocation2 + $0x31] sm:$0xff] %vm284_vm1, %v10918_v5  ;;  %v1089_v4 = vld [vmem:[#allocation2 + $0x2] sm:$0xff] }
  0x2c   : > { %13216 = vst [vmem:[#allocation7_spill] sm:$0xff] %v10932_v9  ;;  %344 = vst.msk [vmem:[#allocation2 + $0x39] sm:$0xff] %vm284_vm1, %v10932_v9 }
  0x2d   : > { %13217 = vst [vmem:[#allocation8_spill] sm:$0xff] %v10938_v10  ;;  %13218 = vst [vmem:[#allocation9_spill] sm:$0xff] %v10941_v11 }
  0x2e   : > { %13219 = vst [vmem:[#allocation10_spill] sm:$0xff] %v10944_v12  ;;  %345 = vst.msk [vmem:[#allocation2 + $0x49] sm:$0xff] %vm284_vm1, %v10938_v10  ;;  %v11312_v10 = vld [vmem:[%s10909_s30 + $0xf8] sm:$0xff] }
  0x2f   : > { %346 = vst.msk [vmem:[#allocation2 + $0x51] sm:$0xff] %vm284_vm1, %v10941_v11  ;;  %347 = vst.msk [vmem:[#allocation2 + $0x61] sm:$0xff] %vm284_vm1, %v10944_v12  ;;  %v11307_v11 = vld [vmem:[%s10909_s30 + $0xf0] sm:$0xff] }
  0x30   : > { %13220 = vst [vmem:[#allocation11_spill] sm:$0xff] %v10954_v13  ;;  %13221 = vst [vmem:[#allocation12_spill] sm:$0xff] %v10957_v14 }
  0x31   : > { %13222 = vst [vmem:[#allocation13_spill] sm:$0xff] %v10960_v15  ;;  %348 = vst.msk [vmem:[#allocation2 + $0x69] sm:$0xff] %vm284_vm1, %v10954_v13  ;;  %v11025_v28 = vld [vmem:[#allocation2 + $0x19] sm:$0xff] }
  0x32   : > { %349 = vst.msk [vmem:[#allocation2 + $0x79] sm:$0xff] %vm284_vm1, %v10957_v14  ;;  %350 = vst.msk [vmem:[#allocation2 + $0x81] sm:$0xff] %vm284_vm1, %v10960_v15  ;;  %v11027_v29 = vld [vmem:[#allocation2 + $0x21] sm:$0xff]  ;;  %v11029_v30 = vld [vmem:[#allocation2 + $0x31] sm:$0xff]  ;;  %9196 = vmatprep.mubr.msk.f32.mxu0 %vm284_vm1, %v11025_v28 }
  0x33   : > { %13223 = vst [vmem:[#allocation14_spill] sm:$0xff] %v10970_v16  ;;  %13224 = vst [vmem:[#allocation15_spill] sm:$0xff] %v10973_v17  ;;  %9197 = vmatmul.mubr.msk.f32.gmra.mrb[2].mxu0 %vm284_vm1, %v11027_v29  ;;  %v11053_v33 = vld [vmem:[#allocation2 + $0x39] sm:$0xff] }
  0x34   : > { %13225 = vst [vmem:[#allocation16_spill] sm:$0xff] %v10976_v18  ;;  %351 = vst.msk [vmem:[#allocation2 + $0x91] sm:$0xff] %vm284_vm1, %v10970_v16  ;;  %9199 = vmatprep.mubr.msk.f32.mxu0 %vm284_vm1, %v11029_v30  ;;  %v11192_v1 = vld [vmem:[#allocation2 + $0x18] sm:$0xff] }
  0x35   : > { %352 = vst.msk [vmem:[#allocation2 + $0x99] sm:$0xff] %vm284_vm1, %v10973_v17  ;;  %353 = vst.msk [vmem:[#allocation2 + $0xa9] sm:$0xff] %vm284_vm1, %v10976_v18  ;;  %v11055_v34 = vld [vmem:[#allocation2 + $0x49] sm:$0xff]  ;;  %v11333_v3 = vld [vmem:[#allocation2 + $0x1a] sm:$0xff] }
  0x36   : > { %13226 = vst [vmem:[#allocation17_spill] sm:$0xff] %v10985_v19  ;;  %13227 = vst [vmem:[#allocation18_spill] sm:$0xff] %v10988_v20  ;;  %v11061_v35 = vld [vmem:[#allocation2 + $0x51] sm:$0xff]  ;;  %v11063_v36 = vld [vmem:[#allocation2 + $0x61] sm:$0xff] }
  0x37   : > { %13228 = vst [vmem:[#allocation19_spill] sm:$0xff] %v10991_v21  ;;  %354 = vst.msk [vmem:[#allocation2 + $0xb1] sm:$0xff] %vm284_vm1, %v10985_v19  ;;  %9200 = vmatmul.mubr.msk.f32.gmra.mrb[4].mxu0 %vm284_vm1, %v11053_v33 }
  0x38   : > { %355 = vst.msk [vmem:[#allocation2 + $0xc1] sm:$0xff] %vm284_vm1, %v10988_v20  ;;  %356 = vst.msk [vmem:[#allocation2 + $0xc9] sm:$0xff] %vm284_vm1, %v10991_v21  ;;  %9202 = vmatprep.mubr.msk.f32.mxu0 %vm284_vm1, %v11055_v34  ;;  %v11095_v43 = vld [vmem:[#allocation2 + $0x69] sm:$0xff] }
  0x39   : > { %13229 = vst [vmem:[#allocation20_spill] sm:$0xff] %v11002_v22  ;;  %13230 = vst [vmem:[#allocation21_spill] sm:$0xff] %v11005_v23  ;;  %v11101_v44 = vld [vmem:[#allocation2 + $0x79] sm:$0xff]  ;;  %v11107_v45 = vld [vmem:[#allocation2 + $0x81] sm:$0xff] }
  0x3a   : > { %13231 = vst [vmem:[#allocation22_spill] sm:$0xff] %v11008_v24  ;;  %357 = vst.msk [vmem:[#allocation2 + $0xd9] sm:$0xff] %vm284_vm1, %v11002_v22 }
  0x3b   : > { %358 = vst.msk [vmem:[#allocation2 + $0xe1] sm:$0xff] %vm284_vm1, %v11005_v23  ;;  %359 = vst.msk [vmem:[#allocation2 + $0xf1] sm:$0xff] %vm284_vm1, %v11008_v24  ;;  %9203 = vmatmul.mubr.msk.f32.gmra.mrb[6].mxu0 %vm284_vm1, %v11061_v35  ;;  %v11109_v46 = vld [vmem:[#allocation2 + $0x91] sm:$0xff] }
  0x3c   : > { %13232 = vst [vmem:[#allocation23_spill] sm:$0xff] %v11017_v25  ;;  %13233 = vst [vmem:[#allocation24_spill] sm:$0xff] %v11020_v26  ;;  %9205 = vmatprep.mubr.msk.f32.mxu0 %vm284_vm1, %v11063_v36  ;;  %v11115_v47 = vld [vmem:[#allocation2 + $0x99] sm:$0xff]  ;;  %v11117_v48 = vld [vmem:[#allocation2 + $0xa9] sm:$0xff] }
  0x3d   : > { %13234 = vst [vmem:[#allocation25_spill] sm:$0xff] %v11023_v27  ;;  %360 = vst.msk [vmem:[#allocation2 + $0xf9] sm:$0xff] %vm284_vm1, %v11017_v25 }
  0x3e   : > { %361 = vst.msk [vmem:[#allocation2 + $0x109] sm:$0xff] %vm284_vm1, %v11020_v26  ;;  %362 = vst.msk [vmem:[#allocation2 + $0x111] sm:$0xff] %vm284_vm1, %v11023_v27  ;;  %v11123_v49 = vld [vmem:[#allocation2 + $0xb1] sm:$0xff]  ;;  %v11248_v26 = vld [vmem:[#allocation2 + $0xa8] sm:$0xff] }
  0x3f   : > { %13235 = vst [vmem:[#allocation26_spill] sm:$0xff] %v11040_v31  ;;  %13236 = vst [vmem:[#allocation27_spill] sm:$0xff] %v11043_v32  ;;  %9206 = vmatmul.mubr.msk.f32.gmra.mrb[8].mxu0 %vm284_vm1, %v11095_v43  ;;  %v11125_v50 = vld [vmem:[#allocation2 + $0xc1] sm:$0xff]  ;;  %v11131_v51 = vld [vmem:[#allocation2 + $0xc9] sm:$0xff] }
  0x40   : > { %363 = vst.msk [vmem:[#allocation2 + $0x121] sm:$0xff] %vm284_vm1, %v11040_v31  ;;  %364 = vst.msk [vmem:[#allocation2 + $0x129] sm:$0xff] %vm284_vm1, %v11043_v32  ;;  %9208 = vmatprep.mubr.msk.f32.mxu0 %vm284_vm1, %v11101_v44  ;;  %v11238_v32 = vld [vmem:[#allocation2 + $0x80] sm:$0xff]  ;;  %v11240_v31 = vld [vmem:[#allocation2 + $0x90] sm:$0xff] }
  0x41   : > { %13237 = vst [vmem:[#allocation28_spill] sm:$0xff] %v11066_v37  ;;  %13238 = vst [vmem:[#allocation29_spill] sm:$0xff] %v11069_v38  ;;  %v11133_v52 = vld [vmem:[#allocation2 + $0xd9] sm:$0xff]  ;;  %v11254_v25 = vld [vmem:[#allocation2 + $0xb0] sm:$0xff] }
  0x42   : > { %13239 = vst [vmem:[#allocation30_spill] sm:$0xff] %v11072_v39  ;;  %365 = vst.msk [vmem:[#allocation2 + $0x139] sm:$0xff] %vm284_vm1, %v11066_v37  ;;  %v11139_v53 = vld [vmem:[#allocation2 + $0xe1] sm:$0xff]  ;;  %v11141_v54 = vld [vmem:[#allocation2 + $0xf1] sm:$0xff] }
  0x43   : > { %366 = vst.msk [vmem:[#allocation2 + $0x141] sm:$0xff] %vm284_vm1, %v11069_v38  ;;  %367 = vst.msk [vmem:[#allocation2 + $0x151] sm:$0xff] %vm284_vm1, %v11072_v39  ;;  %9209 = vmatmul.mubr.msk.f32.gmra.mrb[10].mxu0 %vm284_vm1, %v11107_v45  ;;  %v11224_v39 = vld [vmem:[#allocation2 + $0x60] sm:$0xff]  ;;  %v11230_v38 = vld [vmem:[#allocation2 + $0x68] sm:$0xff] }
  0x44   : > { %13240 = vst [vmem:[#allocation31_spill] sm:$0xff] %v11081_v40  ;;  %368 = vst.msk [vmem:[#allocation2 + $0x159] sm:$0xff] %vm284_vm1, %v11081_v40  ;;  %9211 = vmatprep.mubr.msk.f32.mxu0 %vm284_vm1, %v11109_v46  ;;  %v11147_v55 = vld [vmem:[#allocation2 + $0xf9] sm:$0xff]  ;;  %v11206_v40 = vld [vmem:[#allocation2 + $0x30] sm:$0xff] }
  0x45   : > { %13241 = vst [vmem:[#allocation32_spill] sm:$0xff] %v11088_v41  ;;  %13242 = vst [vmem:[#allocation33_spill] sm:$0xff] %v11091_v42  ;;  %v11149_v56 = vld [vmem:[#allocation2 + $0x109] sm:$0xff]  ;;  %v11155_v57 = vld [vmem:[#allocation2 + $0x111] sm:$0xff] }
  0x46   : > { %369 = vst.msk [vmem:[#allocation2 + $0x169] sm:$0xff] %vm284_vm1, %v11088_v41  ;;  %370 = vst.msk [vmem:[#allocation2 + $0x171] sm:$0xff] %vm284_vm1, %v11091_v42  ;;  %v11197_v42 = vld [vmem:[%s13058_s1 + $0xc] sm:$0xf]  ;;  %v11204_v41 = vld [vmem:[#allocation2 + $0x20] sm:$0xff] }
  0x47   : > { %9212 = vmatmul.mubr.msk.f32.gmra.mrb[12].mxu0 %vm284_vm1, %v11115_v47  ;;  %v11157_v58 = vld [vmem:[#allocation2 + $0x121] sm:$0xff]  ;;  %v11163_v59 = vld [vmem:[#allocation2 + $0x129] sm:$0xff]  ;;  %v11232_v37 = vld [vmem:[#allocation2 + $0x78] sm:$0xff]  ;;  %13247 = vst [vmem:[#allocation38_spill] sm:$0xff] %v11307_v11 }
  0x48   : > { %9214 = vmatprep.mubr.msk.f32.mxu0 %vm284_vm1, %v11117_v48  ;;  %v11246_v27 = vld [vmem:[#allocation2 + $0x98] sm:$0xff]  ;;  %v11256_v24 = vld [vmem:[#allocation2 + $0xc0] sm:$0xff]  ;;  %v11262_v23 = vld [vmem:[#allocation2 + $0xc8] sm:$0xff]  ;;  %371 = vst.msk [vmem:[#allocation2 + $0x181] sm:$0xff] %vm284_vm1, %v11307_v11 }
  0x49   : > { %v11165_v60 = vld [vmem:[#allocation2 + $0x139] sm:$0xff]  ;;  %v11272_v20 = vld [vmem:[#allocation2 + $0xf0] sm:$0xff]  ;;  %v11280_v18 = vld [vmem:[#allocation2 + $0x108] sm:$0xff]  ;;  %13248 = vst [vmem:[#allocation39_spill] sm:$0xff] %v11312_v10 }
  0x4a   : > { %v11171_v61 = vld [vmem:[#allocation2 + $0x141] sm:$0xff]  ;;  %v11173_v62 = vld [vmem:[#allocation2 + $0x151] sm:$0xff]  ;;  %372 = vst.msk [vmem:[#allocation2 + $0x189] sm:$0xff] %vm284_vm1, %v11312_v10  ;;  %13249 = vst [vmem:[#allocation40_spill] sm:$0xff] %v11333_v3 }
  0x4b   : > { %9215 = vmatmul.mubr.msk.f32.gmra.mrb[14].mxu0 %vm284_vm1, %v11123_v49  ;;  %13243 = vst [vmem:[#allocation34_spill] sm:$0xff] %v11173_v62  ;;  %v11179_v63 = vld [vmem:[#allocation2 + $0x159] sm:$0xff]  ;;  %v11286_v17 = vld [vmem:[#allocation2 + $0x110] sm:$0xff]  ;;  %v11294_v15 = vld [vmem:[#allocation2 + $0x128] sm:$0xff] }
  0x4c   : > { %9217 = vmatprep.mubr.msk.f32.mxu0 %vm284_vm1, %v11125_v50  ;;  %13244 = vst [vmem:[#allocation35_spill] sm:$0xff] %v11179_v63  ;;  %v11264_v22 = vld [vmem:[#allocation2 + $0xd8] sm:$0xff]  ;;  %v11270_v21 = vld [vmem:[#allocation2 + $0xe0] sm:$0xff]  ;;  %v11304_v12 = vld [vmem:[#allocation2 + $0x150] sm:$0xff] }
  0x4d   : > { %v11181_v0 = vld [vmem:[#allocation2 + $0x169] sm:$0xff]  ;;  %v11187_v2 = vld [vmem:[#allocation2 + $0x171] sm:$0xff]  ;;  %v11288_v16 = vld [vmem:[#allocation2 + $0x120] sm:$0xff] }
  0x4e   : > { %13245 = vst [vmem:[#allocation36_spill] sm:$0xff] %v11181_v0  ;;  %13246 = vst [vmem:[#allocation37_spill] sm:$0xff] %v11187_v2  ;;  %v11278_v19 = vld [vmem:[#allocation2 + $0xf8] sm:$0xff]  ;;  %v11302_v13 = vld [vmem:[#allocation2 + $0x140] sm:$0xff] }
  0x4f   : > { %9218 = vmatmul.mubr.msk.f32.gmra.mrb[16].mxu0 %vm284_vm1, %v11131_v51  ;;  %v11296_v14 = vld [vmem:[#allocation2 + $0x138] sm:$0xff]  ;;  %v11322_v5 = vld [vmem:[#allocation2 + $0x168] sm:$0xff]  ;;  %v11328_v11 = vld [vmem:[#allocation2 + $0x170] sm:$0xff] }
  0x50   : > { %9220 = vmatprep.mubr.msk.f32.mxu0 %vm284_vm1, %v11133_v52  ;;  %v11320_v9 = vld [vmem:[#allocation2 + $0x158] sm:$0xff]  ;;  %v1090_v10 = vld [vmem:[#allocation2 + $0xa] sm:$0xff] }
  0x53   : > { %9221 = vmatmul.mubr.msk.f32.gmra.mrb[18].mxu0 %vm284_vm1, %v11139_v53 }
  0x54   : > { %9223 = vmatprep.mubr.msk.f32.mxu0 %vm284_vm1, %v11141_v54 }
  0x57   : > { %9224 = vmatmul.mubr.msk.f32.gmra.mrb[20].mxu0 %vm284_vm1, %v11147_v55 }
  0x58   : > { %9226 = vmatprep.mubr.msk.f32.mxu0 %vm284_vm1, %v11149_v56 }
  0x5b   : > { %9227 = vmatmul.mubr.msk.f32.gmra.mrb[22].mxu0 %vm284_vm1, %v11155_v57 }
  0x5c   : > { %9229 = vmatprep.mubr.msk.f32.mxu0 %vm284_vm1, %v11157_v58 }
  0x5f   : > { %9230 = vmatmul.mubr.msk.f32.gmra.mrb[24].mxu0 %vm284_vm1, %v11163_v59 }
  0x60   : > { %9232 = vmatprep.mubr.msk.f32.mxu0 %vm284_vm1, %v11165_v60 }
  0x63   : > { %9233 = vmatmul.mubr.msk.f32.gmra.mrb[26].mxu0 %vm284_vm1, %v11171_v61 }
  0x64   : > { %9235 = vmatprep.mubr.msk.f32.mxu0 %vm284_vm1, %v11173_v62 }
  0x67   : > { %9236 = vmatmul.mubr.msk.f32.gmra.mrb[28].mxu0 %vm284_vm1, %v11179_v63  ;;  %v11347_v63 = vld [vmem:[#allocation2 + $0x32] sm:$0xff] }
  0x68   : > { %9238 = vmatprep.mubr.msk.f32.mxu0 %vm284_vm1, %v11181_v0  ;;  %v11345_v0 = vld [vmem:[#allocation2 + $0x22] sm:$0xff]  ;;  %13251 = vst [vmem:[#allocation42_spill] sm:$0xff] %v11347_v63 }
  0x69   : > { %13250 = vst [vmem:[#allocation41_spill] sm:$0xff] %v11345_v0 }
  0x6b   : > { %9239 = vmatmul.mubr.msk.f32.gmra.mrb[30].mxu0 %vm284_vm1, %v11187_v2  ;;  %v11338_v2 = vld [vmem:[%s13058_s1 + $0x10] sm:$0xf] }
  0x6c   : > { %9243 = vmatprep.mubr.msk.f32.mxu0 %vm284_vm1, %v373_v7  ;;  %v11214_v7 = vld [vmem:[#allocation2 + $0x38] sm:$0xff] }
  0x6f   : > { %9244 = vmatmul.mubr.msk.f32.vlgmr.msra.gmra.mrb[0].mxu0 %vm284_vm1, %v374_v8  ;;  %v11216_v8 = vld [vmem:[#allocation2 + $0x48] sm:$0xff] }
  0x70   : > { %9292 = vmatpush3.msk.msra.mxu0 %vm536_vm0, %v10923_v6  ;;  %9246 = vmatprep.mubr.msk.f32.mxu0 %vm284_vm1, %v11192_v1  ;;  %v11222_v6 = vld [vmem:[#allocation2 + $0x50] sm:$0xff] }
  0x71   : > { %9341 = vmatprep.subr.msk.mxu0 %vm536_vm0, %v11197_v42 }
  0x73   : > { %9247 = vmatmul.mubr.msk.f32.gmra.mrb[2].mxu0 %vm284_vm1, %v11204_v41 }
  0x74   : > { %9249 = vmatprep.mubr.msk.f32.mxu0 %vm284_vm1, %v11206_v40 }
  0x77   : > { %9250 = vmatmul.mubr.msk.f32.gmra.mrb[4].mxu0 %vm284_vm1, %v11214_v7 }
  0x78   : > { %9252 = vmatprep.mubr.msk.f32.mxu0 %vm284_vm1, %v11216_v8 }
  0x7b   : > { %9253 = vmatmul.mubr.msk.f32.gmra.mrb[6].mxu0 %vm284_vm1, %v11222_v6 }
  0x7c   : > { %9255 = vmatprep.mubr.msk.f32.mxu0 %vm284_vm1, %v11224_v39 }
  0x7f   : > { %9256 = vmatmul.mubr.msk.f32.gmra.mrb[8].mxu0 %vm284_vm1, %v11230_v38 }
  0x80   : > { %9258 = vmatprep.mubr.msk.f32.mxu0 %vm284_vm1, %v11232_v37 }
  0x83   : > { %9259 = vmatmul.mubr.msk.f32.gmra.mrb[10].mxu0 %vm284_vm1, %v11238_v32 }
  0x84   : > { %9261 = vmatprep.mubr.msk.f32.mxu0 %vm284_vm1, %v11240_v31 }
  0x87   : > { %9262 = vmatmul.mubr.msk.f32.gmra.mrb[12].mxu0 %vm284_vm1, %v11246_v27 }
  0x88   : > { %9264 = vmatprep.mubr.msk.f32.mxu0 %vm284_vm1, %v11248_v26 }
  0x8b   : > { %9265 = vmatmul.mubr.msk.f32.gmra.mrb[14].mxu0 %vm284_vm1, %v11254_v25 }
  0x8c   : > { %9267 = vmatprep.mubr.msk.f32.mxu0 %vm284_vm1, %v11256_v24 }
  0x8f   : > { %9268 = vmatmul.mubr.msk.f32.gmra.mrb[16].mxu0 %vm284_vm1, %v11262_v23 }
  0x90   : > { %9270 = vmatprep.mubr.msk.f32.mxu0 %vm284_vm1, %v11264_v22 }
  0x93   : > { %9271 = vmatmul.mubr.msk.f32.gmra.mrb[18].mxu0 %vm284_vm1, %v11270_v21 }
  0x94   : > { %9273 = vmatprep.mubr.msk.f32.mxu0 %vm284_vm1, %v11272_v20 }
  0x97   : > { %9274 = vmatmul.mubr.msk.f32.gmra.mrb[20].mxu0 %vm284_vm1, %v11278_v19 }
  0x98   : > { %9276 = vmatprep.mubr.msk.f32.mxu0 %vm284_vm1, %v11280_v18 }
  0x9b   : > { %9277 = vmatmul.mubr.msk.f32.gmra.mrb[22].mxu0 %vm284_vm1, %v11286_v17 }
  0x9c   : > { %9279 = vmatprep.mubr.msk.f32.mxu0 %vm284_vm1, %v11288_v16 }
  0x9f   : > { %9280 = vmatmul.mubr.msk.f32.gmra.mrb[24].mxu0 %vm284_vm1, %v11294_v15 }
  0xa0   : > { %9282 = vmatprep.mubr.msk.f32.mxu0 %vm284_vm1, %v11296_v14 }
  0xa3   : > { %9283 = vmatmul.mubr.msk.f32.gmra.mrb[26].mxu0 %vm284_vm1, %v11302_v13 }
  0xa4   : > { %9285 = vmatprep.mubr.msk.f32.mxu0 %vm284_vm1, %v11304_v12 }
  0xa7   : > { %9286 = vmatmul.mubr.msk.f32.gmra.mrb[28].mxu0 %vm284_vm1, %v11320_v9 }
  0xa8   : > { %9288 = vmatprep.mubr.msk.f32.mxu0 %vm284_vm1, %v11322_v5 }
  0xab   : > { %9289 = vmatmul.mubr.msk.f32.gmra.mrb[30].mxu0 %vm284_vm1, %v11328_v11 }
  0xac   : > { %9293 = vmatprep.mubr.msk.f32.mxu0 %vm284_vm1, %v1089_v4  ;;  %v11355_v4 = vld [vmem:[#allocation2 + $0x3a] sm:$0xff] }
  0xad   : > { %13252 = vst [vmem:[#allocation43_spill] sm:$0xff] %v11355_v4 }
  0xaf   : > { %9294 = vmatmul.mubr.msk.f32.vlgmr.msra.gmra.mrb[0].mxu0 %vm284_vm1, %v1090_v10  ;;  %v11357_v10 = vld [vmem:[#allocation2 + $0x4a] sm:$0xff] }
  0xb0   : > { %9342 = vmatpush3.msk.msra.mxu0 %vm536_vm0, %v11197_v42  ;;  %9296 = vmatprep.mubr.msk.f32.mxu0 %vm284_vm1, %v11333_v3  ;;  %13253 = vst [vmem:[#allocation44_spill] sm:$0xff] %v11357_v10  ;;  %v11363_v42 = vld [vmem:[#allocation2 + $0x52] sm:$0xff]  ;;  %v11365_v3 = vld [vmem:[#allocation2 + $0x62] sm:$0xff] }
  0xb1   : > { %9391 = vmatprep.subr.msk.mxu0 %vm536_vm0, %v11338_v2  ;;  %13254 = vst [vmem:[#allocation45_spill] sm:$0xff] %v11363_v42  ;;  %13255 = vst [vmem:[#allocation46_spill] sm:$0xff] %v11365_v3 }
  0xb3   : > { %9297 = vmatmul.mubr.msk.f32.gmra.mrb[2].mxu0 %vm284_vm1, %v11345_v0  ;;  %v11373_v0 = vld [vmem:[#allocation2 + $0x7a] sm:$0xff] }
  0xb4   : > { %9299 = vmatprep.mubr.msk.f32.mxu0 %vm284_vm1, %v11347_v63  ;;  %v11371_v63 = vld [vmem:[#allocation2 + $0x6a] sm:$0xff]  ;;  %13257 = vst [vmem:[#allocation48_spill] sm:$0xff] %v11373_v0 }
  0xb5   : > { %13256 = vst [vmem:[#allocation47_spill] sm:$0xff] %v11371_v63 }
  0xb7   : > { %9300 = vmatmul.mubr.msk.f32.gmra.mrb[4].mxu0 %vm284_vm1, %v11355_v4  ;;  %v11381_v4 = vld [vmem:[#allocation2 + $0x92] sm:$0xff] }
  0xb8   : > { %9302 = vmatprep.mubr.msk.f32.mxu0 %vm284_vm1, %v11357_v10  ;;  %v11379_v10 = vld [vmem:[#allocation2 + $0x82] sm:$0xff]  ;;  %13259 = vst [vmem:[#allocation50_spill] sm:$0xff] %v11381_v4 }
  0xb9   : > { %13258 = vst [vmem:[#allocation49_spill] sm:$0xff] %v11379_v10 }
  0xbb   : > { %9303 = vmatmul.mubr.msk.f32.gmra.mrb[6].mxu0 %vm284_vm1, %v11363_v42  ;;  %v11389_v42 = vld [vmem:[#allocation2 + $0xaa] sm:$0xff] }
  0xbc   : > { %9305 = vmatprep.mubr.msk.f32.mxu0 %vm284_vm1, %v11365_v3  ;;  %v11387_v3 = vld [vmem:[#allocation2 + $0x9a] sm:$0xff]  ;;  %13261 = vst [vmem:[#allocation52_spill] sm:$0xff] %v11389_v42 }
  0xbd   : > { %13260 = vst [vmem:[#allocation51_spill] sm:$0xff] %v11387_v3 }
  0xbf   : > { %9306 = vmatmul.mubr.msk.f32.gmra.mrb[8].mxu0 %vm284_vm1, %v11371_v63  ;;  %v11397_v63 = vld [vmem:[#allocation2 + $0xc2] sm:$0xff] }
  0xc0   : > { %9308 = vmatprep.mubr.msk.f32.mxu0 %vm284_vm1, %v11373_v0  ;;  %v11395_v0 = vld [vmem:[#allocation2 + $0xb2] sm:$0xff]  ;;  %13263 = vst [vmem:[#allocation54_spill] sm:$0xff] %v11397_v63 }
  0xc1   : > { %13262 = vst [vmem:[#allocation53_spill] sm:$0xff] %v11395_v0 }
  0xc3   : > { %9309 = vmatmul.mubr.msk.f32.gmra.mrb[10].mxu0 %vm284_vm1, %v11379_v10  ;;  %v11405_v10 = vld [vmem:[#allocation2 + $0xda] sm:$0xff] }
  0xc4   : > { %9311 = vmatprep.mubr.msk.f32.mxu0 %vm284_vm1, %v11381_v4  ;;  %v11403_v4 = vld [vmem:[#allocation2 + $0xca] sm:$0xff]  ;;  %13265 = vst [vmem:[#allocation56_spill] sm:$0xff] %v11405_v10 }
  0xc5   : > { %13264 = vst [vmem:[#allocation55_spill] sm:$0xff] %v11403_v4 }
  0xc7   : > { %9312 = vmatmul.mubr.msk.f32.gmra.mrb[12].mxu0 %vm284_vm1, %v11387_v3  ;;  %v11413_v3 = vld [vmem:[#allocation2 + $0xf2] sm:$0xff] }
  0xc8   : > { %9314 = vmatprep.mubr.msk.f32.mxu0 %vm284_vm1, %v11389_v42  ;;  %v11411_v42 = vld [vmem:[#allocation2 + $0xe2] sm:$0xff]  ;;  %13267 = vst [vmem:[#allocation58_spill] sm:$0xff] %v11413_v3 }
  0xc9   : > { %13266 = vst [vmem:[#allocation57_spill] sm:$0xff] %v11411_v42 }
  0xcb   : > { %9315 = vmatmul.mubr.msk.f32.gmra.mrb[14].mxu0 %vm284_vm1, %v11395_v0  ;;  %v11421_v0 = vld [vmem:[#allocation2 + $0x10a] sm:$0xff] }
  0xcc   : > { %9317 = vmatprep.mubr.msk.f32.mxu0 %vm284_vm1, %v11397_v63  ;;  %v11419_v63 = vld [vmem:[#allocation2 + $0xfa] sm:$0xff]  ;;  %13269 = vst [vmem:[#allocation60_spill] sm:$0xff] %v11421_v0 }
  0xcd   : > { %13268 = vst [vmem:[#allocation59_spill] sm:$0xff] %v11419_v63 }
  0xcf   : > { %9318 = vmatmul.mubr.msk.f32.gmra.mrb[16].mxu0 %vm284_vm1, %v11403_v4  ;;  %v11429_v4 = vld [vmem:[#allocation2 + $0x122] sm:$0xff] }
  0xd0   : > { %9320 = vmatprep.mubr.msk.f32.mxu0 %vm284_vm1, %v11405_v10  ;;  %v11427_v10 = vld [vmem:[#allocation2 + $0x112] sm:$0xff]  ;;  %13271 = vst [vmem:[#allocation62_spill] sm:$0xff] %v11429_v4 }
  0xd1   : > { %13270 = vst [vmem:[#allocation61_spill] sm:$0xff] %v11427_v10 }
  0xd3   : > { %9321 = vmatmul.mubr.msk.f32.gmra.mrb[18].mxu0 %vm284_vm1, %v11411_v42  ;;  %v11437_v42 = vld [vmem:[#allocation2 + $0x13a] sm:$0xff] }
  0xd4   : > { %9323 = vmatprep.mubr.msk.f32.mxu0 %vm284_vm1, %v11413_v3  ;;  %v11435_v3 = vld [vmem:[#allocation2 + $0x12a] sm:$0xff]  ;;  %13272 = vst [vmem:[#allocation63_spill] sm:$0xff] %v11437_v42 }
  0xd7   : > { %9324 = vmatmul.mubr.msk.f32.gmra.mrb[20].mxu0 %vm284_vm1, %v11419_v63  ;;  %v11445_v63 = vld [vmem:[#allocation2 + $0x152] sm:$0xff] }
  0xd8   : > { %9326 = vmatprep.mubr.msk.f32.mxu0 %vm284_vm1, %v11421_v0  ;;  %v11443_v0 = vld [vmem:[#allocation2 + $0x142] sm:$0xff]  ;;  %13273 = vst [vmem:[#allocation64_spill] sm:$0xff] %v11445_v63 }
  0xdb   : > { %9327 = vmatmul.mubr.msk.f32.gmra.mrb[22].mxu0 %vm284_vm1, %v11427_v10  ;;  %v11453_v10 = vld [vmem:[#allocation2 + $0x16a] sm:$0xff] }
  0xdc   : > { %9329 = vmatprep.mubr.msk.f32.mxu0 %vm284_vm1, %v11429_v4  ;;  %v11451_v4 = vld [vmem:[#allocation2 + $0x15a] sm:$0xff]  ;;  %13274 = vst [vmem:[#allocation65_spill] sm:$0xff] %v11453_v10 }
  0xdf   : > { %9330 = vmatmul.mubr.msk.f32.gmra.mrb[24].mxu0 %vm284_vm1, %v11435_v3 }
  0xe0   : > { %9332 = vmatprep.mubr.msk.f32.mxu0 %vm284_vm1, %v11437_v42  ;;  %v11459_v42 = vld [vmem:[#allocation2 + $0x172] sm:$0xff] }
  0xe3   : > { %9333 = vmatmul.mubr.msk.f32.gmra.mrb[26].mxu0 %vm284_vm1, %v11443_v0 }
  0xe4   : > { %9335 = vmatprep.mubr.msk.f32.mxu0 %vm284_vm1, %v11445_v63  ;;  %v8093_v63 = vld [vmem:[%s13058_s1 + $0x14] sm:$0xf] }
  0xe7   : > { %9336 = vmatmul.mubr.msk.f32.gmra.mrb[28].mxu0 %vm284_vm1, %v11451_v4 }
  0xe8   : > { %9338 = vmatprep.mubr.msk.f32.mxu0 %vm284_vm1, %v11453_v10 }
  0xeb   : > { %9339 = vmatmul.mubr.msk.f32.gmra.mrb[30].mxu0 %vm284_vm1, %v11459_v42 }
  0xec   : > { %9343 = vmatprep.mubr.msk.f32.mxu0 %vm284_vm1, %v11192_v1  ;;  %v11527_v1 = vld [vmem:[#allocation2 + $0x180] sm:$0xff] }
  0xef   : > { %9344 = vmatmul.mubr.msk.f32.vlgmr.msra.gmra.mrb[0].mxu0 %vm284_vm1, %v11204_v41  ;;  %v11533_v41 = vld [vmem:[#allocation2 + $0x188] sm:$0xff] }
  0xf0   : > { %9392 = vmatpush3.msk.msra.mxu0 %vm536_vm0, %v11338_v2  ;;  %9346 = vmatprep.mubr.msk.f32.mxu0 %vm284_vm1, %v11206_v40  ;;  %v8127_v2 = vld [vmem:[%s13058_s1 + $0x18] sm:$0xf] }
  0xf1   : > { %9441 = vmatprep.subr.msk.mxu0 %vm536_vm0, %v8093_v63 }
  0xf3   : > { %9347 = vmatmul.mubr.msk.f32.gmra.mrb[2].mxu0 %vm284_vm1, %v11214_v7 }
  0xf4   : > { %9349 = vmatprep.mubr.msk.f32.mxu0 %vm284_vm1, %v11216_v8 }
  0xf7   : > { %9350 = vmatmul.mubr.msk.f32.gmra.mrb[4].mxu0 %vm284_vm1, %v11222_v6 }
  0xf8   : > { %9352 = vmatprep.mubr.msk.f32.mxu0 %vm284_vm1, %v11224_v39 }
  0xfb   : > { %9353 = vmatmul.mubr.msk.f32.gmra.mrb[6].mxu0 %vm284_vm1, %v11230_v38 }
  0xfc   : > { %9355 = vmatprep.mubr.msk.f32.mxu0 %vm284_vm1, %v11232_v37 }
  0xff   : > { %9356 = vmatmul.mubr.msk.f32.gmra.mrb[8].mxu0 %vm284_vm1, %v11238_v32 }
 0x100   : > { %9358 = vmatprep.mubr.msk.f32.mxu0 %vm284_vm1, %v11240_v31 }
 0x103   : > { %9359 = vmatmul.mubr.msk.f32.gmra.mrb[10].mxu0 %vm284_vm1, %v11246_v27 }
 0x104   : > { %9361 = vmatprep.mubr.msk.f32.mxu0 %vm284_vm1, %v11248_v26 }
 0x107   : > { %9362 = vmatmul.mubr.msk.f32.gmra.mrb[12].mxu0 %vm284_vm1, %v11254_v25 }
 0x108   : > { %9364 = vmatprep.mubr.msk.f32.mxu0 %vm284_vm1, %v11256_v24 }
 0x10b   : > { %9365 = vmatmul.mubr.msk.f32.gmra.mrb[14].mxu0 %vm284_vm1, %v11262_v23 }
 0x10c   : > { %9367 = vmatprep.mubr.msk.f32.mxu0 %vm284_vm1, %v11264_v22 }
 0x10f   : > { %9368 = vmatmul.mubr.msk.f32.gmra.mrb[16].mxu0 %vm284_vm1, %v11270_v21 }
 0x110   : > { %9370 = vmatprep.mubr.msk.f32.mxu0 %vm284_vm1, %v11272_v20 }
 0x113   : > { %9371 = vmatmul.mubr.msk.f32.gmra.mrb[18].mxu0 %vm284_vm1, %v11278_v19 }
 0x114   : > { %9373 = vmatprep.mubr.msk.f32.mxu0 %vm284_vm1, %v11280_v18 }
 0x117   : > { %9374 = vmatmul.mubr.msk.f32.gmra.mrb[20].mxu0 %vm284_vm1, %v11286_v17 }
 0x118   : > { %9376 = vmatprep.mubr.msk.f32.mxu0 %vm284_vm1, %v11288_v16 }
 0x11b   : > { %9377 = vmatmul.mubr.msk.f32.gmra.mrb[22].mxu0 %vm284_vm1, %v11294_v15 }
 0x11c   : > { %9379 = vmatprep.mubr.msk.f32.mxu0 %vm284_vm1, %v11296_v14 }
 0x11f   : > { %9380 = vmatmul.mubr.msk.f32.gmra.mrb[24].mxu0 %vm284_vm1, %v11302_v13 }
 0x120   : > { %9382 = vmatprep.mubr.msk.f32.mxu0 %vm284_vm1, %v11304_v12 }
 0x123   : > { %9383 = vmatmul.mubr.msk.f32.gmra.mrb[26].mxu0 %vm284_vm1, %v11320_v9 }
 0x124   : > { %9385 = vmatprep.mubr.msk.f32.mxu0 %vm284_vm1, %v11322_v5 }
 0x127   : > { %9386 = vmatmul.mubr.msk.f32.gmra.mrb[28].mxu0 %vm284_vm1, %v11328_v11 }
 0x128   : > { %9388 = vmatprep.mubr.msk.f32.mxu0 %vm284_vm1, %v11527_v1 }
 0x12b   : > { %9389 = vmatmul.mubr.msk.f32.gmra.mrb[30].mxu0 %vm284_vm1, %v11533_v41 }
 0x12c   : > { %9393 = vmatprep.mubr.msk.f32.mxu0 %vm284_vm1, %v11025_v28  ;;  %v13275_v28 = vld [vmem:[#allocation35_spill] sm:$0xff] }
 0x12f   : > { %9394 = vmatmul.mubr.msk.f32.vlgmr.msra.gmra.mrb[0].mxu0 %vm284_vm1, %v11027_v29  ;;  %v13276_v29 = vld [vmem:[#allocation36_spill] sm:$0xff] }
 0x130   : > { %9442 = vmatpush3.msk.msra.mxu0 %vm536_vm0, %v8093_v63  ;;  %9396 = vmatprep.mubr.msk.f32.mxu0 %vm284_vm1, %v11029_v30  ;;  %v11600_v30 = vld [vmem:[#allocation2 + $0x181] sm:$0xff]  ;;  %v8161_v63 = vld [vmem:[%s13058_s1 + $0x1c] sm:$0xf] }
 0x131   : > { %9491 = vmatprep.subr.msk.mxu0 %vm536_vm0, %v8127_v2  ;;  %13277 = vst [vmem:[#allocation66_spill] sm:$0xff] %v11600_v30 }
 0x133   : > { %9397 = vmatmul.mubr.msk.f32.gmra.mrb[2].mxu0 %vm284_vm1, %v11053_v33  ;;  %v13278_v33 = vld [vmem:[#allocation37_spill] sm:$0xff] }
 0x134   : > { %9399 = vmatprep.mubr.msk.f32.mxu0 %vm284_vm1, %v11055_v34  ;;  %v11606_v34 = vld [vmem:[#allocation2 + $0x189] sm:$0xff] }
 0x135   : > { %13279 = vst [vmem:[#allocation67_spill] sm:$0xff] %v11606_v34 }
 0x137   : > { %9400 = vmatmul.mubr.msk.f32.gmra.mrb[4].mxu0 %vm284_vm1, %v11061_v35  ;;  %v13280_v35 = vld [vmem:[#allocation40_spill] sm:$0xff] }
 0x138   : > { %9402 = vmatprep.mubr.msk.f32.mxu0 %vm284_vm1, %v11063_v36 }
 0x13b   : > { %9403 = vmatmul.mubr.msk.f32.gmra.mrb[6].mxu0 %vm284_vm1, %v11095_v43 }
 0x13c   : > { %9405 = vmatprep.mubr.msk.f32.mxu0 %vm284_vm1, %v11101_v44 }
 0x13f   : > { %9406 = vmatmul.mubr.msk.f32.gmra.mrb[8].mxu0 %vm284_vm1, %v11107_v45 }
 0x140   : > { %9408 = vmatprep.mubr.msk.f32.mxu0 %vm284_vm1, %v11109_v46 }
 0x143   : > { %9409 = vmatmul.mubr.msk.f32.gmra.mrb[10].mxu0 %vm284_vm1, %v11115_v47 }
 0x144   : > { %9411 = vmatprep.mubr.msk.f32.mxu0 %vm284_vm1, %v11117_v48 }
 0x147   : > { %9412 = vmatmul.mubr.msk.f32.gmra.mrb[12].mxu0 %vm284_vm1, %v11123_v49 }
 0x148   : > { %9414 = vmatprep.mubr.msk.f32.mxu0 %vm284_vm1, %v11125_v50 }
 0x14b   : > { %9415 = vmatmul.mubr.msk.f32.gmra.mrb[14].mxu0 %vm284_vm1, %v11131_v51 }
 0x14c   : > { %9417 = vmatprep.mubr.msk.f32.mxu0 %vm284_vm1, %v11133_v52 }
 0x14f   : > { %9418 = vmatmul.mubr.msk.f32.gmra.mrb[16].mxu0 %vm284_vm1, %v11139_v53 }
 0x150   : > { %9420 = vmatprep.mubr.msk.f32.mxu0 %vm284_vm1, %v11141_v54 }
 0x153   : > { %9421 = vmatmul.mubr.msk.f32.gmra.mrb[18].mxu0 %vm284_vm1, %v11147_v55 }
 0x154   : > { %9423 = vmatprep.mubr.msk.f32.mxu0 %vm284_vm1, %v11149_v56 }
 0x157   : > { %9424 = vmatmul.mubr.msk.f32.gmra.mrb[20].mxu0 %vm284_vm1, %v11155_v57 }
 0x158   : > { %9426 = vmatprep.mubr.msk.f32.mxu0 %vm284_vm1, %v11157_v58 }
 0x15b   : > { %9427 = vmatmul.mubr.msk.f32.gmra.mrb[22].mxu0 %vm284_vm1, %v11163_v59 }
 0x15c   : > { %9429 = vmatprep.mubr.msk.f32.mxu0 %vm284_vm1, %v11165_v60 }
 0x15f   : > { %9430 = vmatmul.mubr.msk.f32.gmra.mrb[24].mxu0 %vm284_vm1, %v11171_v61 }
 0x160   : > { %9432 = vmatprep.mubr.msk.f32.mxu0 %vm284_vm1, %v11173_v62  ;;  %v13290_v62 = vld [vmem:[#allocation50_spill] sm:$0xff] }
 0x163   : > { %9433 = vmatmul.mubr.msk.f32.gmra.mrb[26].mxu0 %vm284_vm1, %v13275_v28  ;;  %v13286_v28 = vld [vmem:[#allocation46_spill] sm:$0xff] }
 0x164   : > { %9435 = vmatprep.mubr.msk.f32.mxu0 %vm284_vm1, %v13276_v29  ;;  %v13281_v29 = vld [vmem:[#allocation41_spill] sm:$0xff] }
 0x167   : > { %9436 = vmatmul.mubr.msk.f32.gmra.mrb[28].mxu0 %vm284_vm1, %v13278_v33  ;;  %v13282_v33 = vld [vmem:[#allocation42_spill] sm:$0xff] }
 0x168   : > { %9438 = vmatprep.mubr.msk.f32.mxu0 %vm284_vm1, %v11600_v30  ;;  %v13283_v30 = vld [vmem:[#allocation43_spill] sm:$0xff] }
 0x16b   : > { %9439 = vmatmul.mubr.msk.f32.gmra.mrb[30].mxu0 %vm284_vm1, %v11606_v34  ;;  %v13284_v34 = vld [vmem:[#allocation44_spill] sm:$0xff] }
 0x16c   : > { %9443 = vmatprep.mubr.msk.f32.mxu0 %vm284_vm1, %v13280_v35  ;;  %v13285_v35 = vld [vmem:[#allocation45_spill] sm:$0xff] }
 0x16f   : > { %9444 = vmatmul.mubr.msk.f32.vlgmr.msra.gmra.mrb[0].mxu0 %vm284_vm1, %v13281_v29  ;;  %v13287_v29 = vld [vmem:[#allocation47_spill] sm:$0xff] }
 0x170   : > { %9492 = vmatpush3.msk.msra.mxu0 %vm536_vm0, %v8127_v2  ;;  %9446 = vmatprep.mubr.msk.f32.mxu0 %vm284_vm1, %v13282_v33  ;;  %v13288_v2 = vld [vmem:[#allocation48_spill] sm:$0xff]  ;;  %v13289_v33 = vld [vmem:[#allocation49_spill] sm:$0xff] }
 0x171   : > { %9541 = vmatprep.subr.msk.mxu0 %vm536_vm0, %v8161_v63 }
 0x173   : > { %9447 = vmatmul.mubr.msk.f32.gmra.mrb[2].mxu0 %vm284_vm1, %v13283_v30  ;;  %v13291_v30 = vld [vmem:[#allocation51_spill] sm:$0xff] }
 0x174   : > { %9449 = vmatprep.mubr.msk.f32.mxu0 %vm284_vm1, %v13284_v34  ;;  %v13292_v34 = vld [vmem:[#allocation52_spill] sm:$0xff] }
 0x177   : > { %9450 = vmatmul.mubr.msk.f32.gmra.mrb[4].mxu0 %vm284_vm1, %v13285_v35  ;;  %v13293_v35 = vld [vmem:[#allocation53_spill] sm:$0xff] }
 0x178   : > { %9452 = vmatprep.mubr.msk.f32.mxu0 %vm284_vm1, %v13286_v28  ;;  %v13294_v28 = vld [vmem:[#allocation54_spill] sm:$0xff] }
 0x17b   : > { %9453 = vmatmul.mubr.msk.f32.gmra.mrb[6].mxu0 %vm284_vm1, %v13287_v29  ;;  %v13295_v29 = vld [vmem:[#allocation55_spill] sm:$0xff] }
 0x17c   : > { %9455 = vmatprep.mubr.msk.f32.mxu0 %vm284_vm1, %v13288_v2  ;;  %v13296_v2 = vld [vmem:[#allocation56_spill] sm:$0xff] }
 0x17f   : > { %9456 = vmatmul.mubr.msk.f32.gmra.mrb[8].mxu0 %vm284_vm1, %v13289_v33  ;;  %v13297_v33 = vld [vmem:[#allocation57_spill] sm:$0xff] }
 0x180   : > { %9458 = vmatprep.mubr.msk.f32.mxu0 %vm284_vm1, %v13290_v62  ;;  %v13298_v62 = vld [vmem:[#allocation58_spill] sm:$0xff] }
 0x183   : > { %9459 = vmatmul.mubr.msk.f32.gmra.mrb[10].mxu0 %vm284_vm1, %v13291_v30  ;;  %v13299_v30 = vld [vmem:[#allocation59_spill] sm:$0xff] }
 0x184   : > { %9461 = vmatprep.mubr.msk.f32.mxu0 %vm284_vm1, %v13292_v34  ;;  %v13300_v34 = vld [vmem:[#allocation60_spill] sm:$0xff] }
 0x187   : > { %9462 = vmatmul.mubr.msk.f32.gmra.mrb[12].mxu0 %vm284_vm1, %v13293_v35  ;;  %v13301_v35 = vld [vmem:[#allocation61_spill] sm:$0xff] }
 0x188   : > { %9464 = vmatprep.mubr.msk.f32.mxu0 %vm284_vm1, %v13294_v28  ;;  %v13302_v28 = vld [vmem:[#allocation62_spill] sm:$0xff] }
 0x18b   : > { %9465 = vmatmul.mubr.msk.f32.gmra.mrb[14].mxu0 %vm284_vm1, %v13295_v29 }
 0x18c   : > { %9467 = vmatprep.mubr.msk.f32.mxu0 %vm284_vm1, %v13296_v2  ;;  %v13303_v2 = vld [vmem:[#allocation63_spill] sm:$0xff] }
 0x18f   : > { %9468 = vmatmul.mubr.msk.f32.gmra.mrb[16].mxu0 %vm284_vm1, %v13297_v33 }
 0x190   : > { %9470 = vmatprep.mubr.msk.f32.mxu0 %vm284_vm1, %v13298_v62  ;;  %v13304_v62 = vld [vmem:[#allocation64_spill] sm:$0xff] }
 0x193   : > { %9471 = vmatmul.mubr.msk.f32.gmra.mrb[18].mxu0 %vm284_vm1, %v13299_v30 }
 0x194   : > { %9473 = vmatprep.mubr.msk.f32.mxu0 %vm284_vm1, %v13300_v34 }
 0x197   : > { %9474 = vmatmul.mubr.msk.f32.gmra.mrb[20].mxu0 %vm284_vm1, %v13301_v35  ;;  %v11673_v35 = vld [vmem:[#allocation2 + $0x182] sm:$0xff] }
 0x198   : > { %9476 = vmatprep.mubr.msk.f32.mxu0 %vm284_vm1, %v13302_v28 }
 0x19b   : > { %9477 = vmatmul.mubr.msk.f32.gmra.mrb[22].mxu0 %vm284_vm1, %v11435_v3 }
 0x19c   : > { %9479 = vmatprep.mubr.msk.f32.mxu0 %vm284_vm1, %v13303_v2  ;;  %v11679_v2 = vld [vmem:[#allocation2 + $0x18a] sm:$0xff] }
 0x19f   : > { %9480 = vmatmul.mubr.msk.f32.gmra.mrb[24].mxu0 %vm284_vm1, %v11443_v0 }
 0x1a0   : > { %9482 = vmatprep.mubr.msk.f32.mxu0 %vm284_vm1, %v13304_v62 }
 0x1a3   : > { %9483 = vmatmul.mubr.msk.f32.gmra.mrb[26].mxu0 %vm284_vm1, %v11451_v4 }
 0x1a4   : > { %9485 = vmatprep.mubr.msk.f32.mxu0 %vm284_vm1, %v11453_v10  ;;  %v8195_v10 = vld [vmem:[%s13058_s1 + $0x20] sm:$0xf] }
 0x1a7   : > { %9486 = vmatmul.mubr.msk.f32.gmra.mrb[28].mxu0 %vm284_vm1, %v11459_v42 }
 0x1a8   : > { %9488 = vmatprep.mubr.msk.f32.mxu0 %vm284_vm1, %v11673_v35 }
 0x1ab   : > { %9489 = vmatmul.mubr.msk.f32.gmra.mrb[30].mxu0 %vm284_vm1, %v11679_v2 }
 0x1ac   : > { %9493 = vmatprep.mubr.msk.f32.mxu0 %vm284_vm1, %v11206_v40  ;;  %v13322_v40 = vld [vmem:[#allocation53_spill] sm:$0xff] }
 0x1af   : > { %9494 = vmatmul.mubr.msk.f32.vlgmr.msra.gmra.mrb[0].mxu0 %vm284_vm1, %v11214_v7 }
 0x1b0   : > { %9542 = vmatpush3.msk.msra.mxu0 %vm536_vm0, %v8161_v63  ;;  %9496 = vmatprep.mubr.msk.f32.mxu0 %vm284_vm1, %v11216_v8 }
 0x1b1   : > { %9591 = vmatprep.subr.msk.mxu0 %vm536_vm0, %v8195_v10 }
 0x1b3   : > { %9497 = vmatmul.mubr.msk.f32.gmra.mrb[2].mxu0 %vm284_vm1, %v11222_v6 }
 0x1b4   : > { %9499 = vmatprep.mubr.msk.f32.mxu0 %vm284_vm1, %v11224_v39  ;;  %v13321_v39 = vld [vmem:[#allocation52_spill] sm:$0xff] }
 0x1b7   : > { %9500 = vmatmul.mubr.msk.f32.gmra.mrb[4].mxu0 %vm284_vm1, %v11230_v38  ;;  %v13320_v38 = vld [vmem:[#allocation51_spill] sm:$0xff] }
 0x1b8   : > { %9502 = vmatprep.mubr.msk.f32.mxu0 %vm284_vm1, %v11232_v37  ;;  %v13319_v37 = vld [vmem:[#allocation50_spill] sm:$0xff] }
 0x1bb   : > { %9503 = vmatmul.mubr.msk.f32.gmra.mrb[6].mxu0 %vm284_vm1, %v11238_v32  ;;  %v13317_v32 = vld [vmem:[#allocation48_spill] sm:$0xff] }
 0x1bc   : > { %9505 = vmatprep.mubr.msk.f32.mxu0 %vm284_vm1, %v11240_v31  ;;  %v13316_v31 = vld [vmem:[#allocation47_spill] sm:$0xff] }
 0x1bf   : > { %9506 = vmatmul.mubr.msk.f32.gmra.mrb[8].mxu0 %vm284_vm1, %v11246_v27  ;;  %v13315_v27 = vld [vmem:[#allocation46_spill] sm:$0xff] }
 0x1c0   : > { %9508 = vmatprep.mubr.msk.f32.mxu0 %vm284_vm1, %v11248_v26  ;;  %v13314_v26 = vld [vmem:[#allocation45_spill] sm:$0xff] }
 0x1c3   : > { %9509 = vmatmul.mubr.msk.f32.gmra.mrb[10].mxu0 %vm284_vm1, %v11254_v25  ;;  %v13313_v25 = vld [vmem:[#allocation44_spill] sm:$0xff] }
 0x1c4   : > { %9511 = vmatprep.mubr.msk.f32.mxu0 %vm284_vm1, %v11256_v24  ;;  %v13312_v24 = vld [vmem:[#allocation43_spill] sm:$0xff] }
 0x1c7   : > { %9512 = vmatmul.mubr.msk.f32.gmra.mrb[12].mxu0 %vm284_vm1, %v11262_v23  ;;  %v13311_v23 = vld [vmem:[#allocation42_spill] sm:$0xff] }
 0x1c8   : > { %9514 = vmatprep.mubr.msk.f32.mxu0 %vm284_vm1, %v11264_v22  ;;  %v3071_v22 = vld [vmem:[#allocation2 + $0x1a1] sm:$0xff] }
 0x1cb   : > { %9515 = vmatmul.mubr.msk.f32.gmra.mrb[14].mxu0 %vm284_vm1, %v11270_v21  ;;  %v13310_v21 = vld [vmem:[#allocation67_spill] sm:$0xff] }
 0x1cc   : > { %9517 = vmatprep.mubr.msk.f32.mxu0 %vm284_vm1, %v11272_v20  ;;  %v3070_v20 = vld [vmem:[#allocation2 + $0x199] sm:$0xff] }
 0x1cf   : > { %9518 = vmatmul.mubr.msk.f32.gmra.mrb[16].mxu0 %vm284_vm1, %v11278_v19  ;;  %v13309_v19 = vld [vmem:[#allocation66_spill] sm:$0xff] }
 0x1d0   : > { %9520 = vmatprep.mubr.msk.f32.mxu0 %vm284_vm1, %v11280_v18  ;;  %v13308_v18 = vld [vmem:[#allocation37_spill] sm:$0xff] }
 0x1d3   : > { %9521 = vmatmul.mubr.msk.f32.gmra.mrb[18].mxu0 %vm284_vm1, %v11286_v17  ;;  %v13307_v17 = vld [vmem:[#allocation36_spill] sm:$0xff] }
 0x1d4   : > { %9523 = vmatprep.mubr.msk.f32.mxu0 %vm284_vm1, %v11288_v16  ;;  %v13306_v16 = vld [vmem:[#allocation35_spill] sm:$0xff] }
 0x1d7   : > { %9524 = vmatmul.mubr.msk.f32.gmra.mrb[20].mxu0 %vm284_vm1, %v11294_v15  ;;  %v2680_v15 = vld [vmem:[#allocation2 + $0x198] sm:$0xff] }
 0x1d8   : > { %9526 = vmatprep.mubr.msk.f32.mxu0 %vm284_vm1, %v11296_v14  ;;  %v13305_v14 = vld [vmem:[#allocation34_spill] sm:$0xff] }
 0x1db   : > { %9527 = vmatmul.mubr.msk.f32.gmra.mrb[22].mxu0 %vm284_vm1, %v11302_v13  ;;  %v2681_v13 = vld [vmem:[#allocation2 + $0x1a0] sm:$0xff] }
 0x1dc   : > { %9529 = vmatprep.mubr.msk.f32.mxu0 %vm284_vm1, %v11304_v12  ;;  %v3040_v12 = vld [vmem:[#allocation2 + $0x31] sm:$0xff] }
 0x1df   : > { %9530 = vmatmul.mubr.msk.f32.gmra.mrb[24].mxu0 %vm284_vm1, %v11320_v9  ;;  %v3041_v9 = vld [vmem:[#allocation2 + $0x39] sm:$0xff] }
 0x1e0   : > { %9532 = vmatprep.mubr.msk.f32.mxu0 %vm284_vm1, %v11322_v5  ;;  %v3042_v5 = vld [vmem:[#allocation2 + $0x49] sm:$0xff] }
 0x1e3   : > { %9533 = vmatmul.mubr.msk.f32.gmra.mrb[26].mxu0 %vm284_vm1, %v11328_v11  ;;  %v3043_v11 = vld [vmem:[#allocation2 + $0x51] sm:$0xff] }
 0x1e4   : > { %9535 = vmatprep.mubr.msk.f32.mxu0 %vm284_vm1, %v11527_v1 }
 0x1e7   : > { %9536 = vmatmul.mubr.msk.f32.gmra.mrb[28].mxu0 %vm284_vm1, %v11533_v41 }
 0x1e8   : > { %9538 = vmatprep.mubr.msk.f32.mxu0 %vm284_vm1, %v2680_v15 }
 0x1eb   : > { %9539 = vmatmul.mubr.msk.f32.gmra.mrb[30].mxu0 %vm284_vm1, %v2681_v13 }
 0x1ec   : > { %9543 = vmatprep.mubr.msk.f32.mxu0 %vm284_vm1, %v3040_v12 }
 0x1ef   : > { %9544 = vmatmul.mubr.msk.f32.vlgmr.msra.gmra.mrb[0].mxu0 %vm284_vm1, %v3041_v9 }
 0x1f0   : > { %9592 = vmatpush3.msk.msra.mxu0 %vm536_vm0, %v8195_v10  ;;  %9546 = vmatprep.mubr.msk.f32.mxu0 %vm284_vm1, %v3042_v5 }
 0x1f3   : > { %9547 = vmatmul.mubr.msk.f32.gmra.mrb[2].mxu0 %vm284_vm1, %v3043_v11 }
 0x1f4   : > { %9549 = vmatprep.mubr.msk.f32.mxu0 %vm284_vm1, %v11063_v36  ;;  %v13318_v36 = vld [vmem:[#allocation49_spill] sm:$0xff] }
 0x1f7   : > { %9550 = vmatmul.mubr.msk.f32.gmra.mrb[4].mxu0 %vm284_vm1, %v11095_v43  ;;  %v13323_v43 = vld [vmem:[#allocation54_spill] sm:$0xff] }
 0x1f8   : > { %9552 = vmatprep.mubr.msk.f32.mxu0 %vm284_vm1, %v11101_v44  ;;  %v13324_v44 = vld [vmem:[#allocation56_spill] sm:$0xff] }
 0x1fb   : > { %9553 = vmatmul.mubr.msk.f32.gmra.mrb[6].mxu0 %vm284_vm1, %v11107_v45  ;;  %v13325_v45 = vld [vmem:[#allocation58_spill] sm:$0xff] }
 0x1fc   : > { %9555 = vmatprep.mubr.msk.f32.mxu0 %vm284_vm1, %v11109_v46  ;;  %v13326_v46 = vld [vmem:[#allocation61_spill] sm:$0xff] }
 0x1ff   : > { %9556 = vmatmul.mubr.msk.f32.gmra.mrb[8].mxu0 %vm284_vm1, %v11115_v47  ;;  %v13327_v47 = vld [vmem:[#allocation63_spill] sm:$0xff] }
 0x200   : > { %9558 = vmatprep.mubr.msk.f32.mxu0 %vm284_vm1, %v11117_v48  ;;  %v13328_v48 = vld [vmem:[#allocation65_spill] sm:$0xff] }
 0x203   : > { %9559 = vmatmul.mubr.msk.f32.gmra.mrb[10].mxu0 %vm284_vm1, %v11123_v49  ;;  %v3461_v49 = vld [vmem:[#allocation2 + $0x1a2] sm:$0xff] }
 0x204   : > { %9561 = vmatprep.mubr.msk.f32.mxu0 %vm284_vm1, %v11125_v50  ;;  %v13329_v50 = vmov 0.0  }
 0x205   : > { %3897 = vst.msk [vmem:[#allocation3 + $0x20] sm:$0xff] %vm3891_vm3, %v13329_v50  ;;  %3892 = vst.msk [vmem:[#allocation3] sm:$0xff] %vm3891_vm3, %v13329_v50 }
 0x206   : > { %3893 = vst.msk [vmem:[#allocation3 + $0x8] sm:$0xff] %vm3891_vm3, %v13329_v50  ;;  %3896 = vst.msk [vmem:[#allocation3 + $0x18] sm:$0xff] %vm3891_vm3, %v13329_v50 }
 0x207   : > { %9562 = vmatmul.mubr.msk.f32.gmra.mrb[12].mxu0 %vm284_vm1, %v11131_v51  ;;  %3899 = vst.msk [vmem:[#allocation3 + $0x30] sm:$0xff] %vm3891_vm3, %v13329_v50  ;;  %3900 = vst.msk [vmem:[#allocation3 + $0x38] sm:$0xff] %vm3891_vm3, %v13329_v50  ;;  %v8230_v51 = vld [vmem:[%s13059_s2 + $0x8] sm:$0xff] }
 0x208   : > { %9564 = vmatprep.mubr.msk.f32.mxu0 %vm284_vm1, %v11133_v52  ;;  %3902 = vst.msk [vmem:[#allocation3 + $0x48] sm:$0xff] %vm3891_vm3, %v13329_v50  ;;  %3903 = vst.msk [vmem:[#allocation3 + $0x50] sm:$0xff] %vm3891_vm3, %v13329_v50  ;;  %9641 = vmatprep.subr.mxu0 %v8230_v51 }
 0x209   : > { %3905 = vst.msk [vmem:[#allocation3 + $0x60] sm:$0xff] %vm3891_vm3, %v13329_v50  ;;  %3906 = vst.msk [vmem:[#allocation3 + $0x68] sm:$0xff] %vm3891_vm3, %v13329_v50  ;;  %10141 = vmatprep.subr.mxu1 %v8230_v51 }
 0x20a   : > { %3908 = vst.msk [vmem:[#allocation3 + $0x78] sm:$0xff] %vm3891_vm3, %v13329_v50  ;;  %3909 = vst.msk [vmem:[#allocation3 + $0x80] sm:$0xff] %vm3891_vm3, %v13329_v50  ;;  %10142 = vmatpush3.msra.mxu1 %v8230_v51 }
 0x20b   : > { %9565 = vmatmul.mubr.msk.f32.gmra.mrb[14].mxu0 %vm284_vm1, %v11139_v53  ;;  %3911 = vst.msk [vmem:[#allocation3 + $0x90] sm:$0xff] %vm3891_vm3, %v13329_v50  ;;  %3912 = vst.msk [vmem:[#allocation3 + $0x98] sm:$0xff] %vm3891_vm3, %v13329_v50 }
 0x20c   : > { %9567 = vmatprep.mubr.msk.f32.mxu0 %vm284_vm1, %v11141_v54  ;;  %3914 = vst.msk [vmem:[#allocation3 + $0xa8] sm:$0xff] %vm3891_vm3, %v13329_v50  ;;  %3915 = vst.msk [vmem:[#allocation3 + $0xb0] sm:$0xff] %vm3891_vm3, %v13329_v50  ;;  %v11987_v54 = vld [vmem:[%s13059_s2] sm:$0xff] }
 0x20d   : > { %3917 = vst.msk [vmem:[#allocation3 + $0xc0] sm:$0xff] %vm3891_vm3, %v13329_v50  ;;  %3918 = vst.msk [vmem:[#allocation3 + $0xc8] sm:$0xff] %vm3891_vm3, %v13329_v50  ;;  %v4013_v52 = vld [vmem:[#allocation3 + $0x1] sm:$0xff]  ;;  %9691 = vmatprep.subr.mxu1 %v11987_v54 }
 0x20e   : > { %3920 = vst.msk [vmem:[#allocation3 + $0xd8] sm:$0xff] %vm3891_vm3, %v13329_v50  ;;  %3921 = vst.msk [vmem:[#allocation3 + $0xe0] sm:$0xff] %vm3891_vm3, %v13329_v50 }
 0x20f   : > { %9568 = vmatmul.mubr.msk.f32.gmra.mrb[16].mxu0 %vm284_vm1, %v11147_v55  ;;  %3923 = vst.msk [vmem:[#allocation3 + $0xf0] sm:$0xff] %vm3891_vm3, %v13329_v50  ;;  %3924 = vst.msk [vmem:[#allocation3 + $0xf8] sm:$0xff] %vm3891_vm3, %v13329_v50  ;;  %v11993_v55 = vld [vmem:[%s13060_s3] ss:$0 sm:$0xff] }
 0x210   : > { %9570 = vmatprep.mubr.msk.f32.mxu0 %vm284_vm1, %v11149_v56  ;;  %3926 = vst.msk [vmem:[#allocation3 + $0x108] sm:$0xff] %vm3891_vm3, %v13329_v50  ;;  %3927 = vst.msk [vmem:[#allocation3 + $0x110] sm:$0xff] %vm3891_vm3, %v13329_v50 }
 0x211   : > { %3929 = vst.msk [vmem:[#allocation3 + $0x120] sm:$0xff] %vm3891_vm3, %v13329_v50  ;;  %3930 = vst.msk [vmem:[#allocation3 + $0x128] sm:$0xff] %vm3891_vm3, %v13329_v50 }
 0x212   : > { %3932 = vst.msk [vmem:[#allocation3 + $0x138] sm:$0xff] %vm3891_vm3, %v13329_v50  ;;  %3933 = vst.msk [vmem:[#allocation3 + $0x140] sm:$0xff] %vm3891_vm3, %v13329_v50 }
 0x213   : > { %9571 = vmatmul.mubr.msk.f32.gmra.mrb[18].mxu0 %vm284_vm1, %v11155_v57  ;;  %3935 = vst.msk [vmem:[#allocation3 + $0x150] sm:$0xff] %vm3891_vm3, %v13329_v50  ;;  %3936 = vst.msk [vmem:[#allocation3 + $0x158] sm:$0xff] %vm3891_vm3, %v13329_v50 }
 0x214   : > { %9573 = vmatprep.mubr.msk.f32.mxu0 %vm284_vm1, %v11157_v58  ;;  %3938 = vst.msk [vmem:[#allocation3 + $0x168] sm:$0xff] %vm3891_vm3, %v13329_v50  ;;  %3939 = vst.msk [vmem:[#allocation3 + $0x170] sm:$0xff] %vm3891_vm3, %v13329_v50 }
 0x215   : > { %3941 = vst.msk [vmem:[#allocation3 + $0x180] sm:$0xff] %vm3891_vm3, %v13329_v50  ;;  %3942 = vst.msk [vmem:[#allocation3 + $0x188] sm:$0xff] %vm3891_vm3, %v13329_v50 }
 0x216   : > { %3944 = vst.msk [vmem:[#allocation3 + $0x198] sm:$0xff] %vm3891_vm3, %v13329_v50  ;;  %3945 = vst.msk [vmem:[#allocation3 + $0x1a0] sm:$0xff] %vm3891_vm3, %v13329_v50 }
 0x217   : > { %9574 = vmatmul.mubr.msk.f32.gmra.mrb[20].mxu0 %vm284_vm1, %v11163_v59  ;;  %3898 = vst.msk [vmem:[#allocation3 + $0x28] sm:$0x3] %vm3894_vm4, %v13329_v50  ;;  %3895 = vst.msk [vmem:[#allocation3 + $0x10] sm:$0x3] %vm3894_vm4, %v13329_v50 }
 0x218   : > { %9576 = vmatprep.mubr.msk.f32.mxu0 %vm284_vm1, %v11165_v60  ;;  %3901 = vst.msk [vmem:[#allocation3 + $0x40] sm:$0x3] %vm3894_vm4, %v13329_v50  ;;  %3904 = vst.msk [vmem:[#allocation3 + $0x58] sm:$0x3] %vm3894_vm4, %v13329_v50 }
 0x219   : > { %3907 = vst.msk [vmem:[#allocation3 + $0x70] sm:$0x3] %vm3894_vm4, %v13329_v50  ;;  %3910 = vst.msk [vmem:[#allocation3 + $0x88] sm:$0x3] %vm3894_vm4, %v13329_v50 }
 0x21a   : > { %3913 = vst.msk [vmem:[#allocation3 + $0xa0] sm:$0x3] %vm3894_vm4, %v13329_v50  ;;  %3916 = vst.msk [vmem:[#allocation3 + $0xb8] sm:$0x3] %vm3894_vm4, %v13329_v50 }
 0x21b   : > { %9577 = vmatmul.mubr.msk.f32.gmra.mrb[22].mxu0 %vm284_vm1, %v11171_v61  ;;  %3919 = vst.msk [vmem:[#allocation3 + $0xd0] sm:$0x3] %vm3894_vm4, %v13329_v50  ;;  %3922 = vst.msk [vmem:[#allocation3 + $0xe8] sm:$0x3] %vm3894_vm4, %v13329_v50 }
 0x21c   : > { %9579 = vmatprep.mubr.msk.f32.mxu0 %vm284_vm1, %v13305_v14  ;;  %3925 = vst.msk [vmem:[#allocation3 + $0x100] sm:$0x3] %vm3894_vm4, %v13329_v50  ;;  %3928 = vst.msk [vmem:[#allocation3 + $0x118] sm:$0x3] %vm3894_vm4, %v13329_v50 }
 0x21d   : > { %3931 = vst.msk [vmem:[#allocation3 + $0x130] sm:$0x3] %vm3894_vm4, %v13329_v50  ;;  %3934 = vst.msk [vmem:[#allocation3 + $0x148] sm:$0x3] %vm3894_vm4, %v13329_v50 }
 0x21e   : > { %3937 = vst.msk [vmem:[#allocation3 + $0x160] sm:$0x3] %vm3894_vm4, %v13329_v50  ;;  %3940 = vst.msk [vmem:[#allocation3 + $0x178] sm:$0x3] %vm3894_vm4, %v13329_v50  ;;  %v4014_v53 = vld [vmem:[#allocation3 + $0x9] sm:$0xff] }
 0x21f   : > { %9580 = vmatmul.mubr.msk.f32.gmra.mrb[24].mxu0 %vm284_vm1, %v13306_v16  ;;  %3943 = vst.msk [vmem:[#allocation3 + $0x190] sm:$0x3] %vm3894_vm4, %v13329_v50  ;;  %3946 = vst.msk [vmem:[#allocation3 + $0x1a8] sm:$0x3] %vm3894_vm4, %v13329_v50 }
 0x220   : > { %9582 = vmatprep.mubr.msk.f32.mxu0 %vm284_vm1, %v13307_v17 }
 0x223   : > { %9583 = vmatmul.mubr.msk.f32.gmra.mrb[26].mxu0 %vm284_vm1, %v13308_v18 }
 0x224   : > { %9585 = vmatprep.mubr.msk.f32.mxu0 %vm284_vm1, %v13309_v19 }
 0x227   : > { %9586 = vmatmul.mubr.msk.f32.gmra.mrb[28].mxu0 %vm284_vm1, %v13310_v21 }
 0x228   : > { %9588 = vmatprep.mubr.msk.f32.mxu0 %vm284_vm1, %v3070_v20 }
 0x22b   : > { %9589 = vmatmul.mubr.msk.f32.gmra.mrb[30].mxu0 %vm284_vm1, %v3071_v22 }
 0x22c   : > { %9593 = vmatprep.mubr.msk.f32.mxu0 %vm284_vm1, %v13311_v23 }
 0x22f   : > { %9594 = vmatmul.mubr.msk.f32.vlgmr.msra.gmra.mrb[0].mxu0 %vm284_vm1, %v13312_v24 }
 0x230   : > { %9596 = vmatprep.mubr.msk.f32.mxu0 %vm284_vm1, %v13313_v25  ;;  %9642 = vmatpush3.msra.mxu0 %v8230_v51 }
 0x233   : > { %9597 = vmatmul.mubr.msk.f32.gmra.mrb[2].mxu0 %vm284_vm1, %v13314_v26 }
 0x234   : > { %9599 = vmatprep.mubr.msk.f32.mxu0 %vm284_vm1, %v13315_v27 }
 0x237   : > { %9600 = vmatmul.mubr.msk.f32.gmra.mrb[4].mxu0 %vm284_vm1, %v13316_v31 }
 0x238   : > { %9602 = vmatprep.mubr.msk.f32.mxu0 %vm284_vm1, %v13317_v32 }
 0x23b   : > { %9603 = vmatmul.mubr.msk.f32.gmra.mrb[6].mxu0 %vm284_vm1, %v13318_v36 }
 0x23c   : > { %9605 = vmatprep.mubr.msk.f32.mxu0 %vm284_vm1, %v13319_v37 }
 0x23f   : > { %9606 = vmatmul.mubr.msk.f32.gmra.mrb[8].mxu0 %vm284_vm1, %v13320_v38 }
 0x240   : > { %9608 = vmatprep.mubr.msk.f32.mxu0 %vm284_vm1, %v13321_v39 }
 0x243   : > { %9609 = vmatmul.mubr.msk.f32.gmra.mrb[10].mxu0 %vm284_vm1, %v13322_v40 }
 0x244   : > { %9611 = vmatprep.mubr.msk.f32.mxu0 %vm284_vm1, %v13323_v43 }
 0x247   : > { %9612 = vmatmul.mubr.msk.f32.gmra.mrb[12].mxu0 %vm284_vm1, %v13295_v29 }
 0x248   : > { %9614 = vmatprep.mubr.msk.f32.mxu0 %vm284_vm1, %v13324_v44 }
 0x24b   : > { %9615 = vmatmul.mubr.msk.f32.gmra.mrb[14].mxu0 %vm284_vm1, %v13297_v33 }
 0x24c   : > { %9617 = vmatprep.mubr.msk.f32.mxu0 %vm284_vm1, %v13325_v45 }
 0x24f   : > { %9618 = vmatmul.mubr.msk.f32.gmra.mrb[16].mxu0 %vm284_vm1, %v13299_v30 }
 0x250   : > { %9620 = vmatprep.mubr.msk.f32.mxu0 %vm284_vm1, %v13300_v34 }
 0x253   : > { %9621 = vmatmul.mubr.msk.f32.gmra.mrb[18].mxu0 %vm284_vm1, %v13326_v46 }
 0x254   : > { %9623 = vmatprep.mubr.msk.f32.mxu0 %vm284_vm1, %v13302_v28 }
 0x257   : > { %9624 = vmatmul.mubr.msk.f32.gmra.mrb[20].mxu0 %vm284_vm1, %v11435_v3  ;;  %v3460_v3 = vld [vmem:[#allocation2 + $0x19a] sm:$0xff] }
 0x258   : > { %9626 = vmatprep.mubr.msk.f32.mxu0 %vm284_vm1, %v13327_v47 }
 0x25b   : > { %9627 = vmatmul.mubr.msk.f32.gmra.mrb[22].mxu0 %vm284_vm1, %v11443_v0 }
 0x25c   : > { %9629 = vmatprep.mubr.msk.f32.mxu0 %vm284_vm1, %v13304_v62 }
 0x25f   : > { %9630 = vmatmul.mubr.msk.f32.gmra.mrb[24].mxu0 %vm284_vm1, %v11451_v4 }
 0x260   : > { %9632 = vmatprep.mubr.msk.f32.mxu0 %vm284_vm1, %v13328_v48 }
 0x263   : > { %9633 = vmatmul.mubr.msk.f32.gmra.mrb[26].mxu0 %vm284_vm1, %v11459_v42 }
 0x264   : > { %9635 = vmatprep.mubr.msk.f32.mxu0 %vm284_vm1, %v11673_v35 }
 0x267   : > { %9636 = vmatmul.mubr.msk.f32.gmra.mrb[28].mxu0 %vm284_vm1, %v11679_v2 }
 0x268   : > { %9638 = vmatprep.mubr.msk.f32.mxu0 %vm284_vm1, %v3460_v3 }
 0x26b   : > { %9639 = vmatmul.mubr.msk.f32.gmra.mrb[30].mxu0 %vm284_vm1, %v3461_v49 }
 0x26c   : > { %9643 = vmatprep.mubr.msk.f32.mxu0 %vm3891_vm3, %v4013_v52 }
 0x26f   : > { %9644 = vmatmul.mubr.msk.f32.vlgmr.msra.gmra.mrb[32].mxu0 %vm3891_vm3, %v4014_v53 }
 0x302   : > { %v9595_v56 = vpop.f32.mrb[0].mxu0 }
 0x303   : > { %v3828_v57 = vadd.f32 %v9595_v56, %v11993_v55  ;;  %v3629_v58 = vpop.f32.mrb[1].mxu0 }
 0x304   : > { %v3827_v59 = vadd.f32 %v11993_v55, %v3629_v58 }
 0x305   : > { %v3860_v60 = vmax.f32 %v3828_v57, 0.0 }
 0x306   : > { %v3859_v61 = vmax.f32 %v3827_v59, 0.0  ;;  %v9598_v62 = vpop.f32.mrb[2].mxu0 }
 0x307   : > { %3949 = vst.msk [vmem:[#allocation3 + $0x21] sm:$0xff] %vm3891_vm3, %v3860_v60  ;;  %v3830_v0 = vadd.f32 %v9598_v62, %v11993_v55  ;;  %v3639_v7 = vpop.f32.mrb[3].mxu0 }
 0x308   : > { %3948 = vst.msk [vmem:[#allocation3 + $0x19] sm:$0xff] %vm3891_vm3, %v3859_v61  ;;  %v3829_v8 = vadd.f32 %v11993_v55, %v3639_v7 }
 0x309   : > { %v3862_v6 = vmax.f32 %v3830_v0, 0.0 }
 0x30a   : > { %v3861_v4 = vmax.f32 %v3829_v8, 0.0  ;;  %v9601_v10 = vpop.f32.mrb[4].mxu0 }
 0x30b   : > { %3951 = vst.msk [vmem:[#allocation3 + $0x39] sm:$0xff] %vm3891_vm3, %v3862_v6  ;;  %v3832_v42 = vadd.f32 %v9601_v10, %v11993_v55  ;;  %v3649_v1 = vpop.f32.mrb[5].mxu0 }
 0x30c   : > { %3950 = vst.msk [vmem:[#allocation3 + $0x31] sm:$0xff] %vm3891_vm3, %v3861_v4  ;;  %v3831_v41 = vadd.f32 %v11993_v55, %v3649_v1 }
 0x30d   : > { %v3864_v28 = vmax.f32 %v3832_v42, 0.0 }
 0x30e   : > { %v3863_v30 = vmax.f32 %v3831_v41, 0.0  ;;  %v9604_v33 = vpop.f32.mrb[6].mxu0  ;;  %v12013_v2 = vld [vmem:[#allocation3 + $0x21] sm:$0xff] }
 0x30f   : > { %3953 = vst.msk [vmem:[#allocation3 + $0x51] sm:$0xff] %vm3891_vm3, %v3864_v28  ;;  %v3834_v34 = vadd.f32 %v9604_v33, %v11993_v55  ;;  %v3659_v63 = vpop.f32.mrb[7].mxu0  ;;  %v12007_v35 = vld [vmem:[#allocation3 + $0x19] sm:$0xff] }
 0x310   : > { %3952 = vst.msk [vmem:[#allocation3 + $0x49] sm:$0xff] %vm3891_vm3, %v3863_v30  ;;  %v3833_v29 = vadd.f32 %v11993_v55, %v3659_v63  ;;  %9646 = vmatprep.mubr.msk.f32.mxu0 %vm3891_vm3, %v12007_v35  ;;  %v12102_v33 = vld [vmem:[%s13059_s2 + $0x10] sm:$0xff] }
 0x311   : > { %v3866_v15 = vmax.f32 %v3834_v34, 0.0  ;;  %9647 = vmatmul.mubr.msk.f32.gmra.mrb[34].mxu0 %vm3891_vm3, %v12013_v2 }
 0x312   : > { %v3865_v13 = vmax.f32 %v3833_v29, 0.0  ;;  %v9607_v12 = vpop.f32.mrb[8].mxu0  ;;  %v12025_v16 = vld [vmem:[#allocation3 + $0x39] sm:$0xff] }
 0x313   : > { %3955 = vst.msk [vmem:[#allocation3 + $0x69] sm:$0xff] %vm3891_vm3, %v3866_v15  ;;  %v3836_v9 = vadd.f32 %v9607_v12, %v11993_v55  ;;  %v3669_v5 = vpop.f32.mrb[9].mxu0  ;;  %v12019_v11 = vld [vmem:[#allocation3 + $0x31] sm:$0xff] }
 0x314   : > { %3954 = vst.msk [vmem:[#allocation3 + $0x61] sm:$0xff] %vm3891_vm3, %v3865_v13  ;;  %v3835_v14 = vadd.f32 %v11993_v55, %v3669_v5  ;;  %9649 = vmatprep.mubr.msk.f32.mxu0 %vm3891_vm3, %v12019_v11 }
 0x315   : > { %v3868_v17 = vmax.f32 %v3836_v9, 0.0  ;;  %9650 = vmatmul.mubr.msk.f32.gmra.mrb[36].mxu0 %vm3891_vm3, %v12025_v16 }
 0x316   : > { %v3867_v18 = vmax.f32 %v3835_v14, 0.0  ;;  %v9610_v19 = vpop.f32.mrb[10].mxu0  ;;  %v12037_v24 = vld [vmem:[#allocation3 + $0x51] sm:$0xff] }
 0x317   : > { %3957 = vst.msk [vmem:[#allocation3 + $0x81] sm:$0xff] %vm3891_vm3, %v3868_v17  ;;  %v3838_v20 = vadd.f32 %v9610_v19, %v11993_v55  ;;  %v3679_v21 = vpop.f32.mrb[11].mxu0  ;;  %v12031_v22 = vld [vmem:[#allocation3 + $0x49] sm:$0xff] }
 0x318   : > { %3956 = vst.msk [vmem:[#allocation3 + $0x79] sm:$0xff] %vm3891_vm3, %v3867_v18  ;;  %v3837_v23 = vadd.f32 %v11993_v55, %v3679_v21  ;;  %9652 = vmatprep.mubr.msk.f32.mxu0 %vm3891_vm3, %v12031_v22 }
 0x319   : > { %v3870_v25 = vmax.f32 %v3838_v20, 0.0  ;;  %9653 = vmatmul.mubr.msk.f32.gmra.mrb[38].mxu0 %vm3891_vm3, %v12037_v24 }
 0x31a   : > { %v3869_v26 = vmax.f32 %v3837_v23, 0.0  ;;  %v9613_v27 = vpop.f32.mrb[12].mxu0  ;;  %v12049_v38 = vld [vmem:[#allocation3 + $0x69] sm:$0xff] }
 0x31b   : > { %3959 = vst.msk [vmem:[#allocation3 + $0x99] sm:$0xff] %vm3891_vm3, %v3870_v25  ;;  %v3840_v31 = vadd.f32 %v9613_v27, %v11993_v55  ;;  %v3689_v32 = vpop.f32.mrb[13].mxu0  ;;  %v12043_v36 = vld [vmem:[#allocation3 + $0x61] sm:$0xff] }
 0x31c   : > { %3958 = vst.msk [vmem:[#allocation3 + $0x91] sm:$0xff] %vm3891_vm3, %v3869_v26  ;;  %v3839_v37 = vadd.f32 %v11993_v55, %v3689_v32  ;;  %9655 = vmatprep.mubr.msk.f32.mxu0 %vm3891_vm3, %v12043_v36 }
 0x31d   : > { %v3872_v39 = vmax.f32 %v3840_v31, 0.0  ;;  %9656 = vmatmul.mubr.msk.f32.gmra.mrb[40].mxu0 %vm3891_vm3, %v12049_v38 }
 0x31e   : > { %v3871_v40 = vmax.f32 %v3839_v37, 0.0  ;;  %v9616_v43 = vpop.f32.mrb[14].mxu0  ;;  %v12061_v48 = vld [vmem:[#allocation3 + $0x81] sm:$0xff] }
 0x31f   : > { %3961 = vst.msk [vmem:[#allocation3 + $0xb1] sm:$0xff] %vm3891_vm3, %v3872_v39  ;;  %v3842_v44 = vadd.f32 %v9616_v43, %v11993_v55  ;;  %v3699_v45 = vpop.f32.mrb[15].mxu0  ;;  %v12055_v46 = vld [vmem:[#allocation3 + $0x79] sm:$0xff] }
 0x320   : > { %3960 = vst.msk [vmem:[#allocation3 + $0xa9] sm:$0xff] %vm3891_vm3, %v3871_v40  ;;  %v3841_v47 = vadd.f32 %v11993_v55, %v3699_v45  ;;  %9658 = vmatprep.mubr.msk.f32.mxu0 %vm3891_vm3, %v12055_v46 }
 0x321   : > { %v3874_v3 = vmax.f32 %v3842_v44, 0.0  ;;  %9659 = vmatmul.mubr.msk.f32.gmra.mrb[42].mxu0 %vm3891_vm3, %v12061_v48 }
 0x322   : > { %v3873_v49 = vmax.f32 %v3841_v47, 0.0  ;;  %v9619_v50 = vpop.f32.mrb[16].mxu0  ;;  %v12073_v57 = vld [vmem:[#allocation3 + $0x99] sm:$0xff] }
 0x323   : > { %3963 = vst.msk [vmem:[#allocation3 + $0xc9] sm:$0xff] %vm3891_vm3, %v3874_v3  ;;  %v3844_v51 = vadd.f32 %v9619_v50, %v11993_v55  ;;  %v3709_v52 = vpop.f32.mrb[17].mxu0  ;;  %v12067_v53 = vld [vmem:[#allocation3 + $0x91] sm:$0xff] }
 0x324   : > { %3962 = vst.msk [vmem:[#allocation3 + $0xc1] sm:$0xff] %vm3891_vm3, %v3873_v49  ;;  %v3843_v56 = vadd.f32 %v11993_v55, %v3709_v52  ;;  %9661 = vmatprep.mubr.msk.f32.mxu0 %vm3891_vm3, %v12067_v53 }
 0x325   : > { %v3876_v58 = vmax.f32 %v3844_v51, 0.0  ;;  %9662 = vmatmul.mubr.msk.f32.gmra.mrb[44].mxu0 %vm3891_vm3, %v12073_v57 }
 0x326   : > { %v3875_v59 = vmax.f32 %v3843_v56, 0.0  ;;  %v9622_v60 = vpop.f32.mrb[18].mxu0  ;;  %v12085_v8 = vld [vmem:[#allocation3 + $0xb1] sm:$0xff] }
 0x327   : > { %3965 = vst.msk [vmem:[#allocation3 + $0xe1] sm:$0xff] %vm3891_vm3, %v3876_v58  ;;  %v3846_v61 = vadd.f32 %v9622_v60, %v11993_v55  ;;  %v3719_v62 = vpop.f32.mrb[19].mxu0  ;;  %v12079_v0 = vld [vmem:[#allocation3 + $0xa9] sm:$0xff] }
 0x328   : > { %3964 = vst.msk [vmem:[#allocation3 + $0xd9] sm:$0xff] %vm3891_vm3, %v3875_v59  ;;  %v3845_v7 = vadd.f32 %v11993_v55, %v3719_v62  ;;  %9664 = vmatprep.mubr.msk.f32.mxu0 %vm3891_vm3, %v12079_v0 }
 0x329   : > { %v3878_v6 = vmax.f32 %v3846_v61, 0.0  ;;  %9665 = vmatmul.mubr.msk.f32.gmra.mrb[46].mxu0 %vm3891_vm3, %v12085_v8 }
 0x32a   : > { %v3877_v4 = vmax.f32 %v3845_v7, 0.0  ;;  %v9625_v10 = vpop.f32.mrb[20].mxu0  ;;  %v12097_v30 = vld [vmem:[#allocation3 + $0xc9] sm:$0xff] }
 0x32b   : > { %3967 = vst.msk [vmem:[#allocation3 + $0xf9] sm:$0xff] %vm3891_vm3, %v3878_v6  ;;  %v3848_v42 = vadd.f32 %v9625_v10, %v11993_v55  ;;  %v3729_v1 = vpop.f32.mrb[21].mxu0  ;;  %v12091_v41 = vld [vmem:[#allocation3 + $0xc1] sm:$0xff] }
 0x32c   : > { %3966 = vst.msk [vmem:[#allocation3 + $0xf1] sm:$0xff] %vm3891_vm3, %v3877_v4  ;;  %v3847_v28 = vadd.f32 %v11993_v55, %v3729_v1  ;;  %9667 = vmatprep.mubr.msk.f32.mxu1 %vm3891_vm3, %v12091_v41  ;;  %v3980_v1 = vld [vmem:[#allocation3] sm:$0xff] }
 0x32d   : > { %v3880_v34 = vmax.f32 %v3848_v42, 0.0  ;;  %9668 = vmatmul.mubr.msk.f32.vlgmr.msra.gmra.mrb[0].mxu1 %vm3891_vm3, %v12097_v30 }
 0x32e   : > { %v3879_v63 = vmax.f32 %v3847_v28, 0.0  ;;  %9692 = vmatpush3.msra.mxu1 %v11987_v54  ;;  %v9628_v29 = vpop.f32.mrb[22].mxu0  ;;  %v12116_v5 = vld [vmem:[#allocation3 + $0xe1] sm:$0xff] }
 0x32f   : > { %3969 = vst.msk [vmem:[#allocation3 + $0x111] sm:$0xff] %vm3891_vm3, %v3880_v34  ;;  %v3850_v15 = vadd.f32 %v9628_v29, %v11993_v55  ;;  %v3739_v13 = vpop.f32.mrb[23].mxu0  ;;  %v12109_v12 = vld [vmem:[#allocation3 + $0xd9] sm:$0xff]  ;;  %9741 = vmatprep.subr.mxu1 %v12102_v33  ;;  %v3981_v34 = vld [vmem:[#allocation3 + $0x8] sm:$0xff] }
 0x330   : > { %3968 = vst.msk [vmem:[#allocation3 + $0x109] sm:$0xff] %vm3891_vm3, %v3879_v63  ;;  %v3849_v9 = vadd.f32 %v11993_v55, %v3739_v13  ;;  %9670 = vmatprep.mubr.msk.f32.mxu1 %vm3891_vm3, %v12109_v12  ;;  %v12190_v63 = vld [vmem:[%s13059_s2 + $0x18] sm:$0xff]  ;;  %v12193_v29 = vld [vmem:[#allocation3 + $0x18] sm:$0xff]  ;;  %v12203_v13 = vld [vmem:[#allocation3 + $0x30] sm:$0xff] }
 0x331   : > { %v3882_v54 = vmax.f32 %v3850_v15, 0.0  ;;  %9671 = vmatmul.mubr.msk.f32.gmra.mrb[2].mxu1 %vm3891_vm3, %v12116_v5  ;;  %v12199_v15 = vld [vmem:[#allocation3 + $0x20] sm:$0xff] }
 0x332   : > { %v3881_v14 = vmax.f32 %v3849_v9, 0.0  ;;  %v9631_v17 = vpop.f32.mrb[24].mxu0  ;;  %v12128_v23 = vld [vmem:[#allocation3 + $0xf9] sm:$0xff] }
 0x333   : > { %3971 = vst.msk [vmem:[#allocation3 + $0x129] sm:$0xff] %vm3891_vm3, %v3882_v54  ;;  %v3852_v18 = vadd.f32 %v9631_v17, %v11993_v55  ;;  %v3749_v19 = vpop.f32.mrb[25].mxu0  ;;  %v12122_v20 = vld [vmem:[#allocation3 + $0xf1] sm:$0xff]  ;;  %v12223_v17 = vld [vmem:[#allocation3 + $0x68] sm:$0xff] }
 0x334   : > { %3970 = vst.msk [vmem:[#allocation3 + $0x121] sm:$0xff] %vm3891_vm3, %v3881_v14  ;;  %v3851_v21 = vadd.f32 %v11993_v55, %v3749_v19  ;;  %9673 = vmatprep.mubr.msk.f32.mxu1 %vm3891_vm3, %v12122_v20  ;;  %v12207_v9 = vld [vmem:[#allocation3 + $0x38] sm:$0xff]  ;;  %v12215_v54 = vld [vmem:[#allocation3 + $0x50] sm:$0xff]  ;;  %v12219_v14 = vld [vmem:[#allocation3 + $0x60] sm:$0xff] }
 0x335   : > { %v3884_v25 = vmax.f32 %v3852_v18, 0.0  ;;  %9674 = vmatmul.mubr.msk.f32.gmra.mrb[4].mxu1 %vm3891_vm3, %v12128_v23  ;;  %v12227_v18 = vld [vmem:[#allocation3 + $0x78] sm:$0xff]  ;;  %v12231_v19 = vld [vmem:[#allocation3 + $0x80] sm:$0xff] }
 0x336   : > { %v3883_v26 = vmax.f32 %v3851_v21, 0.0  ;;  %v9634_v27 = vpop.f32.mrb[26].mxu0  ;;  %v12140_v40 = vld [vmem:[#allocation3 + $0x111] sm:$0xff]  ;;  %13332 = vst [vmem:[#allocation55_spill] sm:$0xff] %v12231_v19 }
 0x337   : > { %3973 = vst.msk [vmem:[#allocation3 + $0x141] sm:$0xff] %vm3891_vm3, %v3884_v25  ;;  %v3854_v31 = vadd.f32 %v9634_v27, %v11993_v55  ;;  %v3759_v32 = vpop.f32.mrb[27].mxu0  ;;  %v12134_v37 = vld [vmem:[#allocation3 + $0x109] sm:$0xff]  ;;  %v12243_v27 = vld [vmem:[#allocation3 + $0x98] sm:$0xff] }
 0x338   : > { %3972 = vst.msk [vmem:[#allocation3 + $0x139] sm:$0xff] %vm3891_vm3, %v3883_v26  ;;  %v3853_v39 = vadd.f32 %v11993_v55, %v3759_v32  ;;  %9676 = vmatprep.mubr.msk.f32.mxu1 %vm3891_vm3, %v12134_v37  ;;  %v12235_v21 = vld [vmem:[#allocation3 + $0x90] sm:$0xff] }
 0x339   : > { %v3886_v43 = vmax.f32 %v3854_v31, 0.0  ;;  %9677 = vmatmul.mubr.msk.f32.gmra.mrb[6].mxu1 %vm3891_vm3, %v12140_v40  ;;  %v12247_v31 = vld [vmem:[#allocation3 + $0xa8] sm:$0xff]  ;;  %v12251_v32 = vld [vmem:[#allocation3 + $0xb0] sm:$0xff] }
 0x33a   : > { %v3885_v44 = vmax.f32 %v3853_v39, 0.0  ;;  %v9637_v45 = vpop.f32.mrb[28].mxu0  ;;  %v12152_v51 = vld [vmem:[#allocation3 + $0x129] sm:$0xff]  ;;  %13335 = vst [vmem:[#allocation60_spill] sm:$0xff] %v12247_v31  ;;  %v12255_v39 = vld [vmem:[#allocation3 + $0xc0] sm:$0xff] }
 0x33b   : > { %3975 = vst.msk [vmem:[#allocation3 + $0x159] sm:$0xff] %vm3891_vm3, %v3886_v43  ;;  %v3856_v47 = vadd.f32 %v9637_v45, %v11993_v55  ;;  %v3769_v3 = vpop.f32.mrb[29].mxu0  ;;  %v12146_v49 = vld [vmem:[#allocation3 + $0x121] sm:$0xff] }
 0x33c   : > { %3974 = vst.msk [vmem:[#allocation3 + $0x151] sm:$0xff] %vm3891_vm3, %v3885_v44  ;;  %v3855_v50 = vadd.f32 %v11993_v55, %v3769_v3  ;;  %9679 = vmatprep.mubr.msk.f32.mxu1 %vm3891_vm3, %v12146_v49  ;;  %v12259_v43 = vld [vmem:[#allocation3 + $0xc8] sm:$0xff]  ;;  %v12263_v44 = vld [vmem:[#allocation3 + $0xd8] sm:$0xff]  ;;  %v12267_v45 = vld [vmem:[#allocation3 + $0xe0] sm:$0xff] }
 0x33d   : > { %v3888_v52 = vmax.f32 %v3856_v47, 0.0  ;;  %9680 = vmatmul.mubr.msk.f32.gmra.mrb[8].mxu1 %vm3891_vm3, %v12152_v51  ;;  %v12271_v47 = vld [vmem:[#allocation3 + $0xf0] sm:$0xff]  ;;  %v12275_v3 = vld [vmem:[#allocation3 + $0xf8] sm:$0xff] }
 0x33e   : > { %v3887_v56 = vmax.f32 %v3855_v50, 0.0  ;;  %v9640_v58 = vpop.f32.mrb[30].mxu0  ;;  %v12164_v7 = vld [vmem:[#allocation3 + $0x141] sm:$0xff] }
 0x33f   : > { %3977 = vst.msk [vmem:[#allocation3 + $0x171] sm:$0xff] %vm3891_vm3, %v3888_v52  ;;  %v3858_v59 = vadd.f32 %v9640_v58, %v11993_v55  ;;  %v3779_v60 = vpop.f32.mrb[31].mxu0  ;;  %v12158_v61 = vld [vmem:[#allocation3 + $0x139] sm:$0xff]  ;;  %v12279_v50 = vld [vmem:[#allocation3 + $0x108] sm:$0xff]  ;;  %v12283_v52 = vld [vmem:[#allocation3 + $0x110] sm:$0xff] }
 0x340   : > { %3976 = vst.msk [vmem:[#allocation3 + $0x169] sm:$0xff] %vm3891_vm3, %v3887_v56  ;;  %v3857_v62 = vadd.f32 %v11993_v55, %v3779_v60  ;;  %9682 = vmatprep.mubr.msk.f32.mxu1 %vm3891_vm3, %v12158_v61  ;;  %v12287_v56 = vld [vmem:[#allocation3 + $0x120] sm:$0xff]  ;;  %v12291_v58 = vld [vmem:[#allocation3 + $0x128] sm:$0xff] }
 0x341   : > { %v3890_v6 = vmax.f32 %v3858_v59, 0.0  ;;  %9683 = vmatmul.mubr.msk.f32.gmra.mrb[10].mxu1 %vm3891_vm3, %v12164_v7  ;;  %v12295_v59 = vld [vmem:[#allocation3 + $0x138] sm:$0xff]  ;;  %v12299_v60 = vld [vmem:[#allocation3 + $0x140] sm:$0xff] }
 0x342   : > { %v3889_v4 = vmax.f32 %v3857_v62, 0.0  ;;  %v12174_v55 = vld [vmem:[#allocation3 + $0x159] sm:$0xff]  ;;  %v12237_v25 = vpop.f32.mrb[32].mxu0 }
 0x343   : > { %3979 = vst.msk [vmem:[#allocation3 + $0x189] sm:$0xff] %vm3891_vm3, %v3890_v6  ;;  %v12169_v10 = vld [vmem:[#allocation3 + $0x151] sm:$0xff]  ;;  %13333 = vst [vmem:[#allocation57_spill] sm:$0xff] %v12237_v25  ;;  %v12241_v26 = vpop.f32.mrb[33].mxu0 }
 0x344   : > { %3978 = vst.msk [vmem:[#allocation3 + $0x181] sm:$0xff] %vm3891_vm3, %v3889_v4  ;;  %9685 = vmatprep.mubr.msk.f32.mxu1 %vm3891_vm3, %v12169_v10  ;;  %13334 = vst [vmem:[#allocation59_spill] sm:$0xff] %v12241_v26  ;;  %v12303_v62 = vld [vmem:[#allocation3 + $0x150] sm:$0xff]  ;;  %v12307_v6 = vld [vmem:[#allocation3 + $0x158] sm:$0xff] }
 0x345   : > { %9686 = vmatmul.mubr.msk.f32.gmra.mrb[12].mxu1 %vm3891_vm3, %v12174_v55  ;;  %v4690_v26 = vld [vmem:[#allocation3 + $0xa] sm:$0xff] }
 0x346   : > { %v12182_v28 = vld [vmem:[#allocation3 + $0x171] sm:$0xff] }
 0x347   : > { %v12178_v42 = vld [vmem:[#allocation3 + $0x169] sm:$0xff]  ;;  %13331 = vst [vmem:[#allocation41_spill] sm:$0xff] %v12182_v28 }
 0x348   : > { %13330 = vst [vmem:[#allocation40_spill] sm:$0xff] %v12178_v42  ;;  %9688 = vmatprep.mubr.msk.f32.mxu1 %vm3891_vm3, %v12178_v42  ;;  %v12311_v4 = vld [vmem:[#allocation3 + $0x168] sm:$0xff]  ;;  %v12323_v25 = vld [vmem:[%s13059_s2 + $0x20] sm:$0xff] }
 0x349   : > { %9689 = vmatmul.mubr.msk.f32.gmra.mrb[14].mxu1 %vm3891_vm3, %v12182_v28  ;;  %v12326_v28 = vld [vmem:[#allocation3 + $0x1a] sm:$0xff]  ;;  %v12332_v42 = vld [vmem:[#allocation3 + $0x22] sm:$0xff] }
 0x34a   : > { %9693 = vmatprep.mubr.msk.f32.mxu1 %vm3891_vm3, %v3980_v1  ;;  %v4689_v1 = vld [vmem:[#allocation3 + $0x2] sm:$0xff]  ;;  %13336 = vst [vmem:[#allocation62_spill] sm:$0xff] %v12326_v28  ;;  %13337 = vst [vmem:[#allocation64_spill] sm:$0xff] %v12332_v42 }
 0x34d   : > { %9694 = vmatmul.mubr.msk.f32.vlgmr.msra.gmra.mrb[16].mxu1 %vm3891_vm3, %v3981_v34  ;;  %v12315_v34 = vld [vmem:[#allocation3 + $0x170] sm:$0xff] }
 0x34e   : > { %9742 = vmatpush3.msra.mxu1 %v12102_v33  ;;  %9696 = vmatprep.mubr.msk.f32.mxu1 %vm3891_vm3, %v12193_v29  ;;  %v12211_v33 = vld [vmem:[#allocation3 + $0x48] sm:$0xff] }
 0x34f   : > { %9791 = vmatprep.subr.mxu1 %v12190_v63 }
 0x351   : > { %9697 = vmatmul.mubr.msk.f32.gmra.mrb[18].mxu1 %vm3891_vm3, %v12199_v15 }
 0x352   : > { %9699 = vmatprep.mubr.msk.f32.mxu1 %vm3891_vm3, %v12203_v13 }
 0x355   : > { %9700 = vmatmul.mubr.msk.f32.gmra.mrb[20].mxu1 %vm3891_vm3, %v12207_v9 }
 0x356   : > { %9702 = vmatprep.mubr.msk.f32.mxu1 %vm3891_vm3, %v12211_v33 }
 0x359   : > { %9703 = vmatmul.mubr.msk.f32.gmra.mrb[22].mxu1 %vm3891_vm3, %v12215_v54 }
 0x35a   : > { %9705 = vmatprep.mubr.msk.f32.mxu1 %vm3891_vm3, %v12219_v14 }
 0x35d   : > { %9706 = vmatmul.mubr.msk.f32.gmra.mrb[24].mxu1 %vm3891_vm3, %v12223_v17 }
 0x35e   : > { %9708 = vmatprep.mubr.msk.f32.mxu1 %vm3891_vm3, %v12227_v18 }
 0x361   : > { %9709 = vmatmul.mubr.msk.f32.gmra.mrb[26].mxu1 %vm3891_vm3, %v12231_v19 }
 0x362   : > { %9711 = vmatprep.mubr.msk.f32.mxu1 %vm3891_vm3, %v12235_v21 }
 0x365   : > { %9712 = vmatmul.mubr.msk.f32.gmra.mrb[28].mxu1 %vm3891_vm3, %v12243_v27 }
 0x366   : > { %9714 = vmatprep.mubr.msk.f32.mxu1 %vm3891_vm3, %v12247_v31 }
 0x369   : > { %9715 = vmatmul.mubr.msk.f32.gmra.mrb[30].mxu1 %vm3891_vm3, %v12251_v32 }
 0x36a   : > { %9717 = vmatprep.mubr.msk.f32.mxu1 %vm3891_vm3, %v12255_v39 }
 0x36d   : > { %9718 = vmatmul.mubr.msk.f32.gmra.mrb[0].mxu1 %vm3891_vm3, %v12259_v43 }
 0x36e   : > { %9720 = vmatprep.mubr.msk.f32.mxu1 %vm3891_vm3, %v12263_v44 }
 0x371   : > { %9721 = vmatmul.mubr.msk.f32.gmra.mrb[2].mxu1 %vm3891_vm3, %v12267_v45 }
 0x372   : > { %9723 = vmatprep.mubr.msk.f32.mxu1 %vm3891_vm3, %v12271_v47 }
 0x375   : > { %9724 = vmatmul.mubr.msk.f32.gmra.mrb[4].mxu1 %vm3891_vm3, %v12275_v3 }
 0x376   : > { %9726 = vmatprep.mubr.msk.f32.mxu1 %vm3891_vm3, %v12279_v50 }
 0x379   : > { %9727 = vmatmul.mubr.msk.f32.gmra.mrb[6].mxu1 %vm3891_vm3, %v12283_v52 }
 0x37a   : > { %9729 = vmatprep.mubr.msk.f32.mxu1 %vm3891_vm3, %v12287_v56 }
 0x37d   : > { %9730 = vmatmul.mubr.msk.f32.gmra.mrb[8].mxu1 %vm3891_vm3, %v12291_v58 }
 0x37e   : > { %9732 = vmatprep.mubr.msk.f32.mxu1 %vm3891_vm3, %v12295_v59 }
 0x381   : > { %9733 = vmatmul.mubr.msk.f32.gmra.mrb[10].mxu1 %vm3891_vm3, %v12299_v60 }
 0x382   : > { %9735 = vmatprep.mubr.msk.f32.mxu1 %vm3891_vm3, %v12303_v62 }
 0x385   : > { %9736 = vmatmul.mubr.msk.f32.gmra.mrb[12].mxu1 %vm3891_vm3, %v12307_v6 }
 0x386   : > { %9738 = vmatprep.mubr.msk.f32.mxu1 %vm3891_vm3, %v12311_v4 }
 0x389   : > { %9739 = vmatmul.mubr.msk.f32.gmra.mrb[14].mxu1 %vm3891_vm3, %v12315_v34 }
 0x38a   : > { %9743 = vmatprep.mubr.msk.f32.mxu1 %vm3891_vm3, %v4689_v1  ;;  %v12336_v1 = vld [vmem:[#allocation3 + $0x32] sm:$0xff] }
 0x38b   : > { %13338 = vst [vmem:[#allocation34_spill] sm:$0xff] %v12336_v1 }
 0x38d   : > { %9744 = vmatmul.mubr.msk.f32.vlgmr.msra.gmra.mrb[16].mxu1 %vm3891_vm3, %v4690_v26  ;;  %v12340_v26 = vld [vmem:[#allocation3 + $0x3a] sm:$0xff] }
 0x38e   : > { %9792 = vmatpush3.msra.mxu1 %v12190_v63  ;;  %9746 = vmatprep.mubr.msk.f32.mxu1 %vm3891_vm3, %v12326_v28  ;;  %13339 = vst [vmem:[#allocation35_spill] sm:$0xff] %v12340_v26  ;;  %v12344_v63 = vld [vmem:[#allocation3 + $0x4a] sm:$0xff]  ;;  %v12348_v28 = vld [vmem:[#allocation3 + $0x52] sm:$0xff] }
 0x38f   : > { %9841 = vmatprep.subr.mxu1 %v12323_v25  ;;  %13340 = vst [vmem:[#allocation36_spill] sm:$0xff] %v12344_v63  ;;  %13341 = vst [vmem:[#allocation37_spill] sm:$0xff] %v12348_v28 }
 0x391   : > { %9747 = vmatmul.mubr.msk.f32.gmra.mrb[18].mxu1 %vm3891_vm3, %v12332_v42  ;;  %v12352_v42 = vld [vmem:[#allocation3 + $0x62] sm:$0xff] }
 0x392   : > { %9749 = vmatprep.mubr.msk.f32.mxu1 %vm3891_vm3, %v12336_v1  ;;  %13342 = vst [vmem:[#allocation66_spill] sm:$0xff] %v12352_v42  ;;  %v12356_v1 = vld [vmem:[#allocation3 + $0x6a] sm:$0xff] }
 0x393   : > { %13343 = vst [vmem:[#allocation67_spill] sm:$0xff] %v12356_v1 }
 0x395   : > { %9750 = vmatmul.mubr.msk.f32.gmra.mrb[20].mxu1 %vm3891_vm3, %v12340_v26  ;;  %v12360_v26 = vld [vmem:[#allocation3 + $0x7a] sm:$0xff] }
 0x396   : > { %9752 = vmatprep.mubr.msk.f32.mxu1 %vm3891_vm3, %v12344_v63  ;;  %13344 = vst [vmem:[#allocation42_spill] sm:$0xff] %v12360_v26  ;;  %v12364_v63 = vld [vmem:[#allocation3 + $0x82] sm:$0xff] }
 0x397   : > { %13345 = vst [vmem:[#allocation43_spill] sm:$0xff] %v12364_v63 }
 0x399   : > { %9753 = vmatmul.mubr.msk.f32.gmra.mrb[22].mxu1 %vm3891_vm3, %v12348_v28  ;;  %v12368_v28 = vld [vmem:[#allocation3 + $0x92] sm:$0xff] }
 0x39a   : > { %9755 = vmatprep.mubr.msk.f32.mxu1 %vm3891_vm3, %v12352_v42  ;;  %13346 = vst [vmem:[#allocation44_spill] sm:$0xff] %v12368_v28  ;;  %v12372_v42 = vld [vmem:[#allocation3 + $0x9a] sm:$0xff] }
 0x39b   : > { %13347 = vst [vmem:[#allocation45_spill] sm:$0xff] %v12372_v42 }
 0x39d   : > { %9756 = vmatmul.mubr.msk.f32.gmra.mrb[24].mxu1 %vm3891_vm3, %v12356_v1  ;;  %v12376_v1 = vld [vmem:[#allocation3 + $0xaa] sm:$0xff] }
 0x39e   : > { %9758 = vmatprep.mubr.msk.f32.mxu1 %vm3891_vm3, %v12360_v26  ;;  %13348 = vst [vmem:[#allocation46_spill] sm:$0xff] %v12376_v1  ;;  %v12380_v26 = vld [vmem:[#allocation3 + $0xb2] sm:$0xff] }
 0x39f   : > { %13349 = vst [vmem:[#allocation47_spill] sm:$0xff] %v12380_v26 }
 0x3a1   : > { %9759 = vmatmul.mubr.msk.f32.gmra.mrb[26].mxu1 %vm3891_vm3, %v12364_v63  ;;  %v12384_v63 = vld [vmem:[#allocation3 + $0xc2] sm:$0xff] }
 0x3a2   : > { %9761 = vmatprep.mubr.msk.f32.mxu1 %vm3891_vm3, %v12368_v28  ;;  %13350 = vst [vmem:[#allocation48_spill] sm:$0xff] %v12384_v63  ;;  %v12388_v28 = vld [vmem:[#allocation3 + $0xca] sm:$0xff] }
 0x3a3   : > { %13351 = vst [vmem:[#allocation49_spill] sm:$0xff] %v12388_v28 }
 0x3a5   : > { %9762 = vmatmul.mubr.msk.f32.gmra.mrb[28].mxu1 %vm3891_vm3, %v12372_v42  ;;  %v12392_v42 = vld [vmem:[#allocation3 + $0xda] sm:$0xff] }
 0x3a6   : > { %9764 = vmatprep.mubr.msk.f32.mxu1 %vm3891_vm3, %v12376_v1  ;;  %13352 = vst [vmem:[#allocation50_spill] sm:$0xff] %v12392_v42  ;;  %v12396_v1 = vld [vmem:[#allocation3 + $0xe2] sm:$0xff] }
 0x3a7   : > { %13353 = vst [vmem:[#allocation51_spill] sm:$0xff] %v12396_v1 }
 0x3a9   : > { %9765 = vmatmul.mubr.msk.f32.gmra.mrb[30].mxu1 %vm3891_vm3, %v12380_v26  ;;  %v12400_v26 = vld [vmem:[#allocation3 + $0xf2] sm:$0xff] }
 0x3aa   : > { %9767 = vmatprep.mubr.msk.f32.mxu1 %vm3891_vm3, %v12384_v63  ;;  %13354 = vst [vmem:[#allocation52_spill] sm:$0xff] %v12400_v26  ;;  %v12404_v63 = vld [vmem:[#allocation3 + $0xfa] sm:$0xff] }
 0x3ab   : > { %13355 = vst [vmem:[#allocation53_spill] sm:$0xff] %v12404_v63 }
 0x3ad   : > { %9768 = vmatmul.mubr.msk.f32.gmra.mrb[0].mxu1 %vm3891_vm3, %v12388_v28  ;;  %v12408_v28 = vld [vmem:[#allocation3 + $0x10a] sm:$0xff] }
 0x3ae   : > { %9770 = vmatprep.mubr.msk.f32.mxu1 %vm3891_vm3, %v12392_v42  ;;  %13356 = vst [vmem:[#allocation54_spill] sm:$0xff] %v12408_v28  ;;  %v12412_v42 = vld [vmem:[#allocation3 + $0x112] sm:$0xff] }
 0x3af   : > { %13357 = vst [vmem:[#allocation56_spill] sm:$0xff] %v12412_v42 }
 0x3b1   : > { %9771 = vmatmul.mubr.msk.f32.gmra.mrb[2].mxu1 %vm3891_vm3, %v12396_v1  ;;  %v12416_v1 = vld [vmem:[#allocation3 + $0x122] sm:$0xff] }
 0x3b2   : > { %9773 = vmatprep.mubr.msk.f32.mxu1 %vm3891_vm3, %v12400_v26  ;;  %13358 = vst [vmem:[#allocation58_spill] sm:$0xff] %v12416_v1  ;;  %v12420_v26 = vld [vmem:[#allocation3 + $0x12a] sm:$0xff] }
 0x3b3   : > { %13359 = vst [vmem:[#allocation61_spill] sm:$0xff] %v12420_v26 }
 0x3b5   : > { %9774 = vmatmul.mubr.msk.f32.gmra.mrb[4].mxu1 %vm3891_vm3, %v12404_v63  ;;  %v12424_v63 = vld [vmem:[#allocation3 + $0x13a] sm:$0xff] }
 0x3b6   : > { %9776 = vmatprep.mubr.msk.f32.mxu1 %vm3891_vm3, %v12408_v28  ;;  %13360 = vst [vmem:[#allocation63_spill] sm:$0xff] %v12424_v63  ;;  %v12428_v28 = vld [vmem:[#allocation3 + $0x142] sm:$0xff] }
 0x3b9   : > { %9777 = vmatmul.mubr.msk.f32.gmra.mrb[6].mxu1 %vm3891_vm3, %v12412_v42  ;;  %v12432_v42 = vld [vmem:[#allocation3 + $0x152] sm:$0xff] }
 0x3ba   : > { %9779 = vmatprep.mubr.msk.f32.mxu1 %vm3891_vm3, %v12416_v1  ;;  %13361 = vst [vmem:[#allocation65_spill] sm:$0xff] %v12432_v42  ;;  %v12436_v1 = vld [vmem:[#allocation3 + $0x15a] sm:$0xff] }
 0x3bd   : > { %9780 = vmatmul.mubr.msk.f32.gmra.mrb[8].mxu1 %vm3891_vm3, %v12420_v26  ;;  %v12440_v26 = vld [vmem:[#allocation3 + $0x16a] sm:$0xff] }
 0x3be   : > { %9782 = vmatprep.mubr.msk.f32.mxu1 %vm3891_vm3, %v12424_v63  ;;  %13362 = vst [vmem:[#allocation68_spill] sm:$0xff] %v12440_v26  ;;  %v12444_v63 = vld [vmem:[#allocation3 + $0x172] sm:$0xff] }
 0x3c1   : > { %9783 = vmatmul.mubr.msk.f32.gmra.mrb[10].mxu1 %vm3891_vm3, %v12428_v28 }
 0x3c2   : > { %9785 = vmatprep.mubr.msk.f32.mxu1 %vm3891_vm3, %v12432_v42  ;;  %v8394_v42 = vld [vmem:[%s13059_s2 + $0x28] sm:$0xff] }
 0x3c5   : > { %9786 = vmatmul.mubr.msk.f32.gmra.mrb[12].mxu1 %vm3891_vm3, %v12436_v1 }
 0x3c6   : > { %9788 = vmatprep.mubr.msk.f32.mxu1 %vm3891_vm3, %v12440_v26 }
 0x3c9   : > { %9789 = vmatmul.mubr.msk.f32.gmra.mrb[14].mxu1 %vm3891_vm3, %v12444_v63 }
 0x3ca   : > { %9793 = vmatprep.mubr.msk.f32.mxu1 %vm3891_vm3, %v12193_v29 }
 0x3cd   : > { %9794 = vmatmul.mubr.msk.f32.vlgmr.msra.gmra.mrb[16].mxu1 %vm3891_vm3, %v12199_v15 }
 0x3ce   : > { %9842 = vmatpush3.msra.mxu1 %v12323_v25  ;;  %9796 = vmatprep.mubr.msk.f32.mxu1 %vm3891_vm3, %v12203_v13 }
 0x3cf   : > { %9891 = vmatprep.subr.mxu1 %v8394_v42 }
 0x3d1   : > { %9797 = vmatmul.mubr.msk.f32.gmra.mrb[18].mxu1 %vm3891_vm3, %v12207_v9 }
 0x3d2   : > { %9799 = vmatprep.mubr.msk.f32.mxu1 %vm3891_vm3, %v12211_v33 }
 0x3d5   : > { %9800 = vmatmul.mubr.msk.f32.gmra.mrb[20].mxu1 %vm3891_vm3, %v12215_v54 }
 0x3d6   : > { %9802 = vmatprep.mubr.msk.f32.mxu1 %vm3891_vm3, %v12219_v14 }
 0x3d9   : > { %9803 = vmatmul.mubr.msk.f32.gmra.mrb[22].mxu1 %vm3891_vm3, %v12223_v17 }
 0x3da   : > { %9805 = vmatprep.mubr.msk.f32.mxu1 %vm3891_vm3, %v12227_v18 }
 0x3dd   : > { %9806 = vmatmul.mubr.msk.f32.gmra.mrb[24].mxu1 %vm3891_vm3, %v12231_v19 }
 0x3de   : > { %9808 = vmatprep.mubr.msk.f32.mxu1 %vm3891_vm3, %v12235_v21 }
 0x3e1   : > { %9809 = vmatmul.mubr.msk.f32.gmra.mrb[26].mxu1 %vm3891_vm3, %v12243_v27 }
 0x3e2   : > { %9811 = vmatprep.mubr.msk.f32.mxu1 %vm3891_vm3, %v12247_v31 }
 0x3e4   : > { %v12478_v29 = vpop.f32.mrb[34].mxu0 }
 0x3e5   : > { %13363 = vst [vmem:[#allocation69_spill] sm:$0xff] %v12478_v29  ;;  %v12480_v15 = vpop.f32.mrb[35].mxu0  ;;  %9812 = vmatmul.mubr.msk.f32.gmra.mrb[28].mxu1 %vm3891_vm3, %v12251_v32 }
 0x3e6   : > { %13364 = vst [vmem:[#allocation70_spill] sm:$0xff] %v12480_v15  ;;  %9814 = vmatprep.mubr.msk.f32.mxu1 %vm3891_vm3, %v12255_v39 }
 0x3e8   : > { %v12486_v25 = vpop.f32.mrb[36].mxu0 }
 0x3e9   : > { %13365 = vst [vmem:[#allocation71_spill] sm:$0xff] %v12486_v25  ;;  %v12488_v19 = vpop.f32.mrb[37].mxu0  ;;  %9815 = vmatmul.mubr.msk.f32.gmra.mrb[30].mxu1 %vm3891_vm3, %v12259_v43 }
 0x3ea   : > { %13366 = vst [vmem:[#allocation72_spill] sm:$0xff] %v12488_v19  ;;  %9817 = vmatprep.mubr.msk.f32.mxu1 %vm3891_vm3, %v12263_v44 }
 0x3ec   : > { %v12494_v31 = vpop.f32.mrb[38].mxu0 }
 0x3ed   : > { %13367 = vst [vmem:[#allocation73_spill] sm:$0xff] %v12494_v31  ;;  %v12496_v29 = vpop.f32.mrb[39].mxu0  ;;  %9818 = vmatmul.mubr.msk.f32.gmra.mrb[0].mxu1 %vm3891_vm3, %v12267_v45 }
 0x3ee   : > { %13368 = vst [vmem:[#allocation74_spill] sm:$0xff] %v12496_v29  ;;  %9820 = vmatprep.mubr.msk.f32.mxu1 %vm3891_vm3, %v12271_v47 }
 0x3f0   : > { %v12502_v15 = vpop.f32.mrb[40].mxu0 }
 0x3f1   : > { %13369 = vst [vmem:[#allocation75_spill] sm:$0xff] %v12502_v15  ;;  %v12504_v25 = vpop.f32.mrb[41].mxu0  ;;  %9821 = vmatmul.mubr.msk.f32.gmra.mrb[2].mxu1 %vm3891_vm3, %v12275_v3 }
 0x3f2   : > { %13370 = vst [vmem:[#allocation76_spill] sm:$0xff] %v12504_v25  ;;  %9823 = vmatprep.mubr.msk.f32.mxu1 %vm3891_vm3, %v12279_v50 }
 0x3f4   : > { %v12510_v19 = vpop.f32.mrb[42].mxu0 }
 0x3f5   : > { %13371 = vst [vmem:[#allocation77_spill] sm:$0xff] %v12510_v19  ;;  %v12512_v31 = vpop.f32.mrb[43].mxu0  ;;  %9824 = vmatmul.mubr.msk.f32.gmra.mrb[4].mxu1 %vm3891_vm3, %v12283_v52 }
 0x3f6   : > { %13372 = vst [vmem:[#allocation78_spill] sm:$0xff] %v12512_v31  ;;  %9826 = vmatprep.mubr.msk.f32.mxu1 %vm3891_vm3, %v12287_v56  ;;  %v13399_v31 = vld [vmem:[#allocation54_spill] sm:$0xff] }
 0x3f8   : > { %v12518_v29 = vpop.f32.mrb[44].mxu0 }
 0x3f9   : > { %13373 = vst [vmem:[#allocation79_spill] sm:$0xff] %v12518_v29  ;;  %v12520_v15 = vpop.f32.mrb[45].mxu0  ;;  %9827 = vmatmul.mubr.msk.f32.gmra.mrb[6].mxu1 %vm3891_vm3, %v12291_v58  ;;  %v13398_v29 = vld [vmem:[#allocation53_spill] sm:$0xff] }
 0x3fa   : > { %13374 = vst [vmem:[#allocation80_spill] sm:$0xff] %v12520_v15  ;;  %9829 = vmatprep.mubr.msk.f32.mxu1 %vm3891_vm3, %v12295_v59  ;;  %v12540_v15 = vld [vmem:[#allocation3 + $0x180] sm:$0xff] }
 0x3fc   : > { %v12526_v25 = vpop.f32.mrb[46].mxu0 }
 0x3fd   : > { %13375 = vst [vmem:[#allocation81_spill] sm:$0xff] %v12526_v25  ;;  %v12528_v19 = vpop.f32.mrb[47].mxu0  ;;  %9830 = vmatmul.mubr.msk.f32.gmra.mrb[8].mxu1 %vm3891_vm3, %v12299_v60  ;;  %v8427_v25 = vld [vmem:[%s13059_s2 + $0x30] sm:$0xff] }
 0x3fe   : > { %13376 = vst [vmem:[#allocation82_spill] sm:$0xff] %v12528_v19  ;;  %9832 = vmatprep.mubr.msk.f32.mxu1 %vm3891_vm3, %v12303_v62  ;;  %v12544_v19 = vld [vmem:[#allocation3 + $0x188] sm:$0xff] }
 0x401   : > { %9833 = vmatmul.mubr.msk.f32.gmra.mrb[10].mxu1 %vm3891_vm3, %v12307_v6 }
 0x402   : > { %9835 = vmatprep.mubr.msk.f32.mxu1 %vm3891_vm3, %v12311_v4 }
 0x405   : > { %9836 = vmatmul.mubr.msk.f32.gmra.mrb[12].mxu1 %vm3891_vm3, %v12315_v34 }
 0x406   : > { %9838 = vmatprep.mubr.msk.f32.mxu1 %vm3891_vm3, %v12540_v15 }
 0x409   : > { %9839 = vmatmul.mubr.msk.f32.gmra.mrb[14].mxu1 %vm3891_vm3, %v12544_v19 }
 0x40a   : > { %9843 = vmatprep.mubr.msk.f32.mxu1 %vm3891_vm3, %v12007_v35  ;;  %v13377_v35 = vld [vmem:[#allocation40_spill] sm:$0xff] }
 0x40d   : > { %9844 = vmatmul.mubr.msk.f32.vlgmr.msra.gmra.mrb[16].mxu1 %vm3891_vm3, %v12013_v2  ;;  %v13378_v2 = vld [vmem:[#allocation41_spill] sm:$0xff] }
 0x40e   : > { %9892 = vmatpush3.msra.mxu1 %v8394_v42  ;;  %9846 = vmatprep.mubr.msk.f32.mxu1 %vm3891_vm3, %v12019_v11  ;;  %v12611_v11 = vld [vmem:[#allocation3 + $0x181] sm:$0xff]  ;;  %v13394_v42 = vld [vmem:[#allocation49_spill] sm:$0xff] }
 0x40f   : > { %9941 = vmatprep.subr.mxu1 %v8427_v25 }
 0x411   : > { %9847 = vmatmul.mubr.msk.f32.gmra.mrb[18].mxu1 %vm3891_vm3, %v12025_v16  ;;  %v12615_v16 = vld [vmem:[#allocation3 + $0x189] sm:$0xff] }
 0x412   : > { %9849 = vmatprep.mubr.msk.f32.mxu1 %vm3891_vm3, %v12031_v22  ;;  %v13379_v22 = vld [vmem:[#allocation62_spill] sm:$0xff] }
 0x415   : > { %9850 = vmatmul.mubr.msk.f32.gmra.mrb[20].mxu1 %vm3891_vm3, %v12037_v24  ;;  %v8460_v24 = vld [vmem:[%s13059_s2 + $0x38] sm:$0xff] }
 0x416   : > { %9852 = vmatprep.mubr.msk.f32.mxu1 %vm3891_vm3, %v12043_v36  ;;  %v13380_v36 = vld [vmem:[#allocation64_spill] sm:$0xff] }
 0x419   : > { %9853 = vmatmul.mubr.msk.f32.gmra.mrb[22].mxu1 %vm3891_vm3, %v12049_v38  ;;  %v13381_v38 = vld [vmem:[#allocation34_spill] sm:$0xff] }
 0x41a   : > { %9855 = vmatprep.mubr.msk.f32.mxu1 %vm3891_vm3, %v12055_v46  ;;  %v13382_v46 = vld [vmem:[#allocation35_spill] sm:$0xff] }
 0x41d   : > { %9856 = vmatmul.mubr.msk.f32.gmra.mrb[24].mxu1 %vm3891_vm3, %v12061_v48  ;;  %v13383_v48 = vld [vmem:[#allocation36_spill] sm:$0xff] }
 0x41e   : > { %9858 = vmatprep.mubr.msk.f32.mxu1 %vm3891_vm3, %v12067_v53  ;;  %v13384_v53 = vld [vmem:[#allocation37_spill] sm:$0xff] }
 0x421   : > { %9859 = vmatmul.mubr.msk.f32.gmra.mrb[26].mxu1 %vm3891_vm3, %v12073_v57  ;;  %v13385_v57 = vld [vmem:[#allocation66_spill] sm:$0xff] }
 0x422   : > { %9861 = vmatprep.mubr.msk.f32.mxu1 %vm3891_vm3, %v12079_v0  ;;  %v13386_v0 = vld [vmem:[#allocation67_spill] sm:$0xff] }
 0x425   : > { %9862 = vmatmul.mubr.msk.f32.gmra.mrb[28].mxu1 %vm3891_vm3, %v12085_v8  ;;  %v13387_v8 = vld [vmem:[#allocation42_spill] sm:$0xff] }
 0x426   : > { %9864 = vmatprep.mubr.msk.f32.mxu1 %vm3891_vm3, %v12091_v41  ;;  %v13388_v41 = vld [vmem:[#allocation43_spill] sm:$0xff] }
 0x429   : > { %9865 = vmatmul.mubr.msk.f32.gmra.mrb[30].mxu1 %vm3891_vm3, %v12097_v30  ;;  %v13389_v30 = vld [vmem:[#allocation44_spill] sm:$0xff] }
 0x42a   : > { %9867 = vmatprep.mubr.msk.f32.mxu1 %vm3891_vm3, %v12109_v12  ;;  %v13390_v12 = vld [vmem:[#allocation45_spill] sm:$0xff] }
 0x42d   : > { %9868 = vmatmul.mubr.msk.f32.gmra.mrb[0].mxu1 %vm3891_vm3, %v12116_v5  ;;  %v13391_v5 = vld [vmem:[#allocation46_spill] sm:$0xff] }
 0x42e   : > { %9870 = vmatprep.mubr.msk.f32.mxu1 %vm3891_vm3, %v12122_v20  ;;  %v13392_v20 = vld [vmem:[#allocation47_spill] sm:$0xff] }
 0x431   : > { %9871 = vmatmul.mubr.msk.f32.gmra.mrb[2].mxu1 %vm3891_vm3, %v12128_v23  ;;  %v13393_v23 = vld [vmem:[#allocation48_spill] sm:$0xff] }
 0x432   : > { %9873 = vmatprep.mubr.msk.f32.mxu1 %vm3891_vm3, %v12134_v37 }
 0x435   : > { %9874 = vmatmul.mubr.msk.f32.gmra.mrb[4].mxu1 %vm3891_vm3, %v12140_v40 }
 0x436   : > { %9876 = vmatprep.mubr.msk.f32.mxu1 %vm3891_vm3, %v12146_v49 }
 0x439   : > { %9877 = vmatmul.mubr.msk.f32.gmra.mrb[6].mxu1 %vm3891_vm3, %v12152_v51 }
 0x43a   : > { %9879 = vmatprep.mubr.msk.f32.mxu1 %vm3891_vm3, %v12158_v61 }
 0x43d   : > { %9880 = vmatmul.mubr.msk.f32.gmra.mrb[8].mxu1 %vm3891_vm3, %v12164_v7 }
 0x43e   : > { %9882 = vmatprep.mubr.msk.f32.mxu1 %vm3891_vm3, %v12169_v10 }
 0x441   : > { %9883 = vmatmul.mubr.msk.f32.gmra.mrb[10].mxu1 %vm3891_vm3, %v12174_v55 }
 0x442   : > { %9885 = vmatprep.mubr.msk.f32.mxu1 %vm3891_vm3, %v13377_v35 }
 0x445   : > { %9886 = vmatmul.mubr.msk.f32.gmra.mrb[12].mxu1 %vm3891_vm3, %v13378_v2 }
 0x446   : > { %9888 = vmatprep.mubr.msk.f32.mxu1 %vm3891_vm3, %v12611_v11 }
 0x449   : > { %9889 = vmatmul.mubr.msk.f32.gmra.mrb[14].mxu1 %vm3891_vm3, %v12615_v16 }
 0x44a   : > { %9893 = vmatprep.mubr.msk.f32.mxu1 %vm3891_vm3, %v13379_v22  ;;  %v13396_v22 = vld [vmem:[#allocation51_spill] sm:$0xff] }
 0x44d   : > { %9894 = vmatmul.mubr.msk.f32.vlgmr.msra.gmra.mrb[16].mxu1 %vm3891_vm3, %v13380_v36  ;;  %v13397_v36 = vld [vmem:[#allocation52_spill] sm:$0xff] }
 0x44e   : > { %9942 = vmatpush3.msra.mxu1 %v8427_v25  ;;  %9896 = vmatprep.mubr.msk.f32.mxu1 %vm3891_vm3, %v13381_v38  ;;  %v13395_v25 = vld [vmem:[#allocation50_spill] sm:$0xff] }
 0x44f   : > { %9991 = vmatprep.subr.mxu1 %v8460_v24 }
 0x451   : > { %9897 = vmatmul.mubr.msk.f32.gmra.mrb[18].mxu1 %vm3891_vm3, %v13382_v46 }
 0x452   : > { %9899 = vmatprep.mubr.msk.f32.mxu1 %vm3891_vm3, %v13383_v48 }
 0x455   : > { %9900 = vmatmul.mubr.msk.f32.gmra.mrb[20].mxu1 %vm3891_vm3, %v13384_v53 }
 0x456   : > { %9902 = vmatprep.mubr.msk.f32.mxu1 %vm3891_vm3, %v13385_v57 }
 0x459   : > { %9903 = vmatmul.mubr.msk.f32.gmra.mrb[22].mxu1 %vm3891_vm3, %v13386_v0 }
 0x45a   : > { %9905 = vmatprep.mubr.msk.f32.mxu1 %vm3891_vm3, %v13387_v8 }
 0x45d   : > { %9906 = vmatmul.mubr.msk.f32.gmra.mrb[24].mxu1 %vm3891_vm3, %v13388_v41 }
 0x45e   : > { %9908 = vmatprep.mubr.msk.f32.mxu1 %vm3891_vm3, %v13389_v30 }
 0x461   : > { %9909 = vmatmul.mubr.msk.f32.gmra.mrb[26].mxu1 %vm3891_vm3, %v13390_v12 }
 0x462   : > { %9911 = vmatprep.mubr.msk.f32.mxu1 %vm3891_vm3, %v13391_v5 }
 0x465   : > { %9912 = vmatmul.mubr.msk.f32.gmra.mrb[28].mxu1 %vm3891_vm3, %v13392_v20  ;;  %v13400_v20 = vld [vmem:[#allocation56_spill] sm:$0xff] }
 0x466   : > { %9914 = vmatprep.mubr.msk.f32.mxu1 %vm3891_vm3, %v13393_v23  ;;  %v13401_v23 = vld [vmem:[#allocation58_spill] sm:$0xff] }
 0x469   : > { %9915 = vmatmul.mubr.msk.f32.gmra.mrb[30].mxu1 %vm3891_vm3, %v13394_v42  ;;  %v13402_v42 = vld [vmem:[#allocation61_spill] sm:$0xff] }
 0x46a   : > { %9917 = vmatprep.mubr.msk.f32.mxu1 %vm3891_vm3, %v13395_v25  ;;  %v13403_v25 = vld [vmem:[#allocation63_spill] sm:$0xff] }
 0x46d   : > { %9918 = vmatmul.mubr.msk.f32.gmra.mrb[0].mxu1 %vm3891_vm3, %v13396_v22 }
 0x46e   : > { %9920 = vmatprep.mubr.msk.f32.mxu1 %vm3891_vm3, %v13397_v36  ;;  %v13404_v36 = vld [vmem:[#allocation65_spill] sm:$0xff] }
 0x471   : > { %9921 = vmatmul.mubr.msk.f32.gmra.mrb[2].mxu1 %vm3891_vm3, %v13398_v29 }
 0x472   : > { %9923 = vmatprep.mubr.msk.f32.mxu1 %vm3891_vm3, %v13399_v31 }
 0x475   : > { %9924 = vmatmul.mubr.msk.f32.gmra.mrb[4].mxu1 %vm3891_vm3, %v13400_v20 }
 0x476   : > { %9926 = vmatprep.mubr.msk.f32.mxu1 %vm3891_vm3, %v13401_v23  ;;  %v12682_v23 = vld [vmem:[#allocation3 + $0x182] sm:$0xff] }
 0x479   : > { %9927 = vmatmul.mubr.msk.f32.gmra.mrb[6].mxu1 %vm3891_vm3, %v13402_v42 }
 0x47a   : > { %9929 = vmatprep.mubr.msk.f32.mxu1 %vm3891_vm3, %v13403_v25  ;;  %v12686_v25 = vld [vmem:[#allocation3 + $0x18a] sm:$0xff] }
 0x47d   : > { %9930 = vmatmul.mubr.msk.f32.gmra.mrb[8].mxu1 %vm3891_vm3, %v12428_v28 }
 0x47e   : > { %9932 = vmatprep.mubr.msk.f32.mxu1 %vm3891_vm3, %v13404_v36 }
 0x481   : > { %9933 = vmatmul.mubr.msk.f32.gmra.mrb[10].mxu1 %vm3891_vm3, %v12436_v1 }
 0x482   : > { %9935 = vmatprep.mubr.msk.f32.mxu1 %vm3891_vm3, %v12440_v26  ;;  %v8493_v26 = vld [vmem:[%s13059_s2 + $0x40] sm:$0xff] }
 0x485   : > { %9936 = vmatmul.mubr.msk.f32.gmra.mrb[12].mxu1 %vm3891_vm3, %v12444_v63 }
 0x486   : > { %9938 = vmatprep.mubr.msk.f32.mxu1 %vm3891_vm3, %v12682_v23 }
 0x489   : > { %9939 = vmatmul.mubr.msk.f32.gmra.mrb[14].mxu1 %vm3891_vm3, %v12686_v25 }
 0x48a   : > { %9943 = vmatprep.mubr.msk.f32.mxu1 %vm3891_vm3, %v12203_v13  ;;  %v13405_v13 = vld [vmem:[#allocation55_spill] sm:$0xff] }
 0x48d   : > { %9944 = vmatmul.mubr.msk.f32.vlgmr.msra.gmra.mrb[16].mxu1 %vm3891_vm3, %v12207_v9  ;;  %v13406_v9 = vld [vmem:[#allocation60_spill] sm:$0xff] }
 0x48e   : > { %9992 = vmatpush3.msra.mxu1 %v8460_v24  ;;  %9946 = vmatprep.mubr.msk.f32.mxu1 %vm3891_vm3, %v12211_v33  ;;  %v6268_v33 = vld [vmem:[#allocation3 + $0x198] sm:$0xff]  ;;  %v13426_v24 = vld [vmem:[#allocation15_spill] sm:$0xff] }
 0x48f   : > { %10041 = vmatprep.subr.mxu1 %v8493_v26 }
 0x491   : > { %9947 = vmatmul.mubr.msk.f32.gmra.mrb[18].mxu1 %vm3891_vm3, %v12215_v54  ;;  %v6269_v54 = vld [vmem:[#allocation3 + $0x1a0] sm:$0xff] }
 0x492   : > { %9949 = vmatprep.mubr.msk.f32.mxu1 %vm3891_vm3, %v12219_v14  ;;  %v6625_v14 = vld [vmem:[#allocation3 + $0x31] sm:$0xff] }
 0x495   : > { %9950 = vmatmul.mubr.msk.f32.gmra.mrb[20].mxu1 %vm3891_vm3, %v12223_v17  ;;  %v6626_v17 = vld [vmem:[#allocation3 + $0x39] sm:$0xff] }
 0x496   : > { %9952 = vmatprep.mubr.msk.f32.mxu1 %vm3891_vm3, %v12227_v18  ;;  %v7438_v18 = vld [vmem:[%s13062_s5] sm:$0xf] }
 0x499   : > { %9953 = vmatmul.mubr.msk.f32.gmra.mrb[22].mxu1 %vm3891_vm3, %v13405_v13  ;;  %v13444_v13 = vld [vmem:[#allocation33_spill] sm:$0xff] }
 0x49a   : > { %9955 = vmatprep.mubr.msk.f32.mxu1 %vm3891_vm3, %v12235_v21  ;;  %v6627_v21 = vld [vmem:[#allocation3 + $0x49] sm:$0xff] }
 0x49d   : > { %9956 = vmatmul.mubr.msk.f32.gmra.mrb[24].mxu1 %vm3891_vm3, %v12243_v27  ;;  %v6629_v27 = vld [vmem:[#allocation3 + $0x61] sm:$0xff] }
 0x49e   : > { %9958 = vmatprep.mubr.msk.f32.mxu1 %vm3891_vm3, %v13406_v9  ;;  %v13445_v9 = vld [vmem:[#allocation38_spill] sm:$0xff] }
 0x4a1   : > { %9959 = vmatmul.mubr.msk.f32.gmra.mrb[26].mxu1 %vm3891_vm3, %v12251_v32  ;;  %v6630_v32 = vld [vmem:[#allocation3 + $0x69] sm:$0xff] }
 0x4a2   : > { %9961 = vmatprep.mubr.msk.f32.mxu1 %vm3891_vm3, %v12255_v39  ;;  %v6631_v39 = vld [vmem:[#allocation3 + $0x79] sm:$0xff] }
 0x4a5   : > { %9962 = vmatmul.mubr.msk.f32.gmra.mrb[28].mxu1 %vm3891_vm3, %v12259_v43  ;;  %v6632_v43 = vld [vmem:[#allocation3 + $0x81] sm:$0xff] }
 0x4a6   : > { %9964 = vmatprep.mubr.msk.f32.mxu1 %vm3891_vm3, %v12263_v44  ;;  %v6633_v44 = vld [vmem:[#allocation3 + $0x91] sm:$0xff] }
 0x4a9   : > { %9965 = vmatmul.mubr.msk.f32.gmra.mrb[30].mxu1 %vm3891_vm3, %v12267_v45  ;;  %v6634_v45 = vld [vmem:[#allocation3 + $0x99] sm:$0xff] }
 0x4aa   : > { %9967 = vmatprep.mubr.msk.f32.mxu1 %vm3891_vm3, %v12271_v47  ;;  %v6635_v47 = vld [vmem:[#allocation3 + $0xa9] sm:$0xff] }
 0x4ad   : > { %9968 = vmatmul.mubr.msk.f32.gmra.mrb[0].mxu1 %vm3891_vm3, %v12275_v3  ;;  %v6636_v3 = vld [vmem:[#allocation3 + $0xb1] sm:$0xff] }
 0x4ae   : > { %9970 = vmatprep.mubr.msk.f32.mxu1 %vm3891_vm3, %v12279_v50  ;;  %v6637_v50 = vld [vmem:[#allocation3 + $0xc1] sm:$0xff] }
 0x4b1   : > { %9971 = vmatmul.mubr.msk.f32.gmra.mrb[2].mxu1 %vm3891_vm3, %v12283_v52  ;;  %v6638_v52 = vld [vmem:[#allocation3 + $0xc9] sm:$0xff] }
 0x4b2   : > { %9973 = vmatprep.mubr.msk.f32.mxu1 %vm3891_vm3, %v12287_v56  ;;  %v6639_v56 = vld [vmem:[#allocation3 + $0xd9] sm:$0xff] }
 0x4b5   : > { %9974 = vmatmul.mubr.msk.f32.gmra.mrb[4].mxu1 %vm3891_vm3, %v12291_v58  ;;  %v6640_v58 = vld [vmem:[#allocation3 + $0xe1] sm:$0xff] }
 0x4b6   : > { %9976 = vmatprep.mubr.msk.f32.mxu1 %vm3891_vm3, %v12295_v59  ;;  %v6641_v59 = vld [vmem:[#allocation3 + $0xf1] sm:$0xff] }
 0x4b9   : > { %9977 = vmatmul.mubr.msk.f32.gmra.mrb[6].mxu1 %vm3891_vm3, %v12299_v60  ;;  %v6642_v60 = vld [vmem:[#allocation3 + $0xf9] sm:$0xff] }
 0x4ba   : > { %9979 = vmatprep.mubr.msk.f32.mxu1 %vm3891_vm3, %v12303_v62  ;;  %v13413_v62 = vld [vmem:[#allocation63_spill] sm:$0xff] }
 0x4bd   : > { %9980 = vmatmul.mubr.msk.f32.gmra.mrb[8].mxu1 %vm3891_vm3, %v12307_v6  ;;  %v7042_v6 = vld [vmem:[#allocation3 + $0x19a] sm:$0xff] }
 0x4be   : > { %9982 = vmatprep.mubr.msk.f32.mxu1 %vm3891_vm3, %v12311_v4  ;;  %v13415_v4 = vld [vmem:[#allocation4_spill] sm:$0xff] }
 0x4c1   : > { %9983 = vmatmul.mubr.msk.f32.gmra.mrb[10].mxu1 %vm3891_vm3, %v12315_v34  ;;  %v13416_v34 = vld [vmem:[#allocation5_spill] sm:$0xff] }
 0x4c2   : > { %9985 = vmatprep.mubr.msk.f32.mxu1 %vm3891_vm3, %v12540_v15  ;;  %v13421_v15 = vld [vmem:[#allocation10_spill] sm:$0xff] }
 0x4c5   : > { %9986 = vmatmul.mubr.msk.f32.gmra.mrb[12].mxu1 %vm3891_vm3, %v12544_v19  ;;  %v6628_v19 = vld [vmem:[#allocation3 + $0x51] sm:$0xff] }
 0x4c6   : > { %9988 = vmatprep.mubr.msk.f32.mxu1 %vm3891_vm3, %v6268_v33  ;;  %v13446_v33 = vld [vmem:[#allocation39_spill] sm:$0xff] }
 0x4c9   : > { %9989 = vmatmul.mubr.msk.f32.gmra.mrb[14].mxu1 %vm3891_vm3, %v6269_v54  ;;  %v12933_v54 = vld [vmem:[%s13061_s4] ss:$0 sm:$0xff] }
 0x4ca   : > { %9993 = vmatprep.mubr.msk.f32.mxu1 %vm3891_vm3, %v6625_v14  ;;  %v13447_v14 = vld [vmem:[#allocation57_spill] sm:$0xff] }
 0x4cd   : > { %9994 = vmatmul.mubr.msk.f32.vlgmr.msra.gmra.mrb[16].mxu1 %vm3891_vm3, %v6626_v17  ;;  %v10143_v17 = vadd.f32 %v13447_v14, %v12933_v54 }
 0x4ce   : > { %10042 = vmatpush3.msra.mxu1 %v8493_v26  ;;  %9996 = vmatprep.mubr.msk.f32.mxu1 %vm3891_vm3, %v6627_v21  ;;  %v13418_v26 = vld [vmem:[#allocation7_spill] sm:$0xff] }
 0x4cf   : > { %10091 = vmatprep.subr.msk.mxu1 %vm536_vm0, %v7438_v18 }
 0x4d1   : > { %9997 = vmatmul.mubr.msk.f32.gmra.mrb[18].mxu1 %vm3891_vm3, %v6628_v19 }
 0x4d2   : > { %9999 = vmatprep.mubr.msk.f32.mxu1 %vm3891_vm3, %v6629_v27 }
 0x4d5   : > { %10000 = vmatmul.mubr.msk.f32.gmra.mrb[20].mxu1 %vm3891_vm3, %v6630_v32 }
 0x4d6   : > { %10002 = vmatprep.mubr.msk.f32.mxu1 %vm3891_vm3, %v6631_v39 }
 0x4d9   : > { %10003 = vmatmul.mubr.msk.f32.gmra.mrb[22].mxu1 %vm3891_vm3, %v6632_v43  ;;  %v13449_v43 = vld [vmem:[#allocation69_spill] sm:$0xff] }
 0x4da   : > { %10005 = vmatprep.mubr.msk.f32.mxu1 %vm3891_vm3, %v6633_v44  ;;  %v10147_v44 = vadd.f32 %v13449_v43, %v12933_v54  ;;  %v13462_v43 = vld [vmem:[#allocation82_spill] sm:$0xff] }
 0x4dd   : > { %10006 = vmatmul.mubr.msk.f32.gmra.mrb[24].mxu1 %vm3891_vm3, %v6634_v45 }
 0x4de   : > { %10008 = vmatprep.mubr.msk.f32.mxu1 %vm3891_vm3, %v6635_v47  ;;  %v13450_v47 = vld [vmem:[#allocation70_spill] sm:$0xff] }
 0x4e1   : > { %10009 = vmatmul.mubr.msk.f32.gmra.mrb[26].mxu1 %vm3891_vm3, %v6636_v3  ;;  %v10149_v3 = vadd.f32 %v12933_v54, %v13450_v47 }
 0x4e2   : > { %10011 = vmatprep.mubr.msk.f32.mxu1 %vm3891_vm3, %v6637_v50 }
 0x4e5   : > { %10012 = vmatmul.mubr.msk.f32.gmra.mrb[28].mxu1 %vm3891_vm3, %v6638_v52 }
 0x4e6   : > { %10014 = vmatprep.mubr.msk.f32.mxu1 %vm3891_vm3, %v6639_v56 }
 0x4e9   : > { %10015 = vmatmul.mubr.msk.f32.gmra.mrb[30].mxu1 %vm3891_vm3, %v6640_v58 }
 0x4ea   : > { %10017 = vmatprep.mubr.msk.f32.mxu1 %vm3891_vm3, %v6641_v59 }
 0x4ed   : > { %10018 = vmatmul.mubr.msk.f32.gmra.mrb[0].mxu1 %vm3891_vm3, %v6642_v60  ;;  %v13451_v60 = vld [vmem:[#allocation71_spill] sm:$0xff] }
 0x4ee   : > { %10020 = vmatprep.mubr.msk.f32.mxu1 %vm3891_vm3, %v12134_v37  ;;  %v6655_v37 = vld [vmem:[#allocation3 + $0x199] sm:$0xff] }
 0x4f1   : > { %10021 = vmatmul.mubr.msk.f32.gmra.mrb[2].mxu1 %vm3891_vm3, %v12140_v40  ;;  %v6656_v40 = vld [vmem:[#allocation3 + $0x1a1] sm:$0xff] }
 0x4f2   : > { %10023 = vmatprep.mubr.msk.f32.mxu1 %vm3891_vm3, %v12146_v49  ;;  %v13407_v49 = vld [vmem:[#allocation47_spill] sm:$0xff] }
 0x4f5   : > { %10024 = vmatmul.mubr.msk.f32.gmra.mrb[4].mxu1 %vm3891_vm3, %v12152_v51  ;;  %v13408_v51 = vld [vmem:[#allocation48_spill] sm:$0xff] }
 0x4f6   : > { %10026 = vmatprep.mubr.msk.f32.mxu1 %vm3891_vm3, %v12158_v61  ;;  %v13409_v61 = vld [vmem:[#allocation49_spill] sm:$0xff] }
 0x4f9   : > { %10027 = vmatmul.mubr.msk.f32.gmra.mrb[6].mxu1 %vm3891_vm3, %v12164_v7  ;;  %v13410_v7 = vld [vmem:[#allocation50_spill] sm:$0xff] }
 0x4fa   : > { %10029 = vmatprep.mubr.msk.f32.mxu1 %vm3891_vm3, %v12169_v10  ;;  %v13411_v10 = vld [vmem:[#allocation52_spill] sm:$0xff] }
 0x4fd   : > { %10030 = vmatmul.mubr.msk.f32.gmra.mrb[8].mxu1 %vm3891_vm3, %v12174_v55  ;;  %v13412_v55 = vld [vmem:[#allocation58_spill] sm:$0xff] }
 0x4fe   : > { %10032 = vmatprep.mubr.msk.f32.mxu1 %vm3891_vm3, %v13377_v35  ;;  %v13422_v35 = vld [vmem:[#allocation11_spill] sm:$0xff] }
 0x501   : > { %10033 = vmatmul.mubr.msk.f32.gmra.mrb[10].mxu1 %vm3891_vm3, %v13378_v2  ;;  %v13423_v2 = vld [vmem:[#allocation12_spill] sm:$0xff] }
 0x502   : > { %10035 = vmatprep.mubr.msk.f32.mxu1 %vm3891_vm3, %v12611_v11  ;;  %v13424_v11 = vld [vmem:[#allocation13_spill] sm:$0xff] }
 0x505   : > { %10036 = vmatmul.mubr.msk.f32.gmra.mrb[12].mxu1 %vm3891_vm3, %v12615_v16  ;;  %v13425_v16 = vld [vmem:[#allocation14_spill] sm:$0xff] }
 0x506   : > { %10038 = vmatprep.mubr.msk.f32.mxu1 %vm3891_vm3, %v6655_v37  ;;  %v10151_v37 = vadd.f32 %v13451_v60, %v12933_v54 }
 0x509   : > { %10039 = vmatmul.mubr.msk.f32.gmra.mrb[14].mxu1 %vm3891_vm3, %v6656_v40 }
 0x50a   : > { %10043 = vmatprep.mubr.msk.f32.mxu1 %vm3891_vm3, %v13381_v38  ;;  %v13427_v38 = vld [vmem:[#allocation16_spill] sm:$0xff] }
 0x50d   : > { %10044 = vmatmul.mubr.msk.f32.vlgmr.msra.gmra.mrb[16].mxu1 %vm3891_vm3, %v13382_v46  ;;  %v13428_v46 = vld [vmem:[#allocation17_spill] sm:$0xff] }
 0x50e   : > { %10092 = vmatpush3.msk.msra.mxu1 %vm536_vm0, %v7438_v18  ;;  %10046 = vmatprep.mubr.msk.f32.mxu1 %vm3891_vm3, %v13383_v48  ;;  %v13429_v48 = vld [vmem:[#allocation18_spill] sm:$0xff]  ;;  %v13448_v18 = vld [vmem:[#allocation59_spill] sm:$0xff] }
 0x50f   : > { %v10145_v21 = vadd.f32 %v12933_v54, %v13448_v18 }
 0x511   : > { %10047 = vmatmul.mubr.msk.f32.gmra.mrb[18].mxu1 %vm3891_vm3, %v13384_v53  ;;  %v13430_v53 = vld [vmem:[#allocation19_spill] sm:$0xff] }
 0x512   : > { %10049 = vmatprep.mubr.msk.f32.mxu1 %vm3891_vm3, %v13385_v57  ;;  %v13431_v57 = vld [vmem:[#allocation20_spill] sm:$0xff] }
 0x515   : > { %10050 = vmatmul.mubr.msk.f32.gmra.mrb[20].mxu1 %vm3891_vm3, %v13386_v0  ;;  %v13432_v0 = vld [vmem:[#allocation21_spill] sm:$0xff] }
 0x516   : > { %10052 = vmatprep.mubr.msk.f32.mxu1 %vm3891_vm3, %v13387_v8  ;;  %v13433_v8 = vld [vmem:[#allocation22_spill] sm:$0xff] }
 0x519   : > { %10053 = vmatmul.mubr.msk.f32.gmra.mrb[22].mxu1 %vm3891_vm3, %v13388_v41  ;;  %v13434_v41 = vld [vmem:[#allocation23_spill] sm:$0xff] }
 0x51a   : > { %10055 = vmatprep.mubr.msk.f32.mxu1 %vm3891_vm3, %v13389_v30  ;;  %v13435_v30 = vld [vmem:[#allocation24_spill] sm:$0xff] }
 0x51d   : > { %10056 = vmatmul.mubr.msk.f32.gmra.mrb[24].mxu1 %vm3891_vm3, %v13390_v12  ;;  %v13436_v12 = vld [vmem:[#allocation25_spill] sm:$0xff] }
 0x51e   : > { %10058 = vmatprep.mubr.msk.f32.mxu1 %vm3891_vm3, %v13391_v5  ;;  %v13437_v5 = vld [vmem:[#allocation26_spill] sm:$0xff] }
 0x521   : > { %10059 = vmatmul.mubr.msk.f32.gmra.mrb[26].mxu1 %vm3891_vm3, %v13407_v49  ;;  %v13452_v49 = vld [vmem:[#allocation72_spill] sm:$0xff] }
 0x522   : > { %10061 = vmatprep.mubr.msk.f32.mxu1 %vm3891_vm3, %v13408_v51  ;;  %v10153_v51 = vadd.f32 %v12933_v54, %v13452_v49 }
 0x525   : > { %10062 = vmatmul.mubr.msk.f32.gmra.mrb[28].mxu1 %vm3891_vm3, %v13409_v61 }
 0x526   : > { %10064 = vmatprep.mubr.msk.f32.mxu1 %vm3891_vm3, %v13410_v7 }
 0x529   : > { %10065 = vmatmul.mubr.msk.f32.gmra.mrb[30].mxu1 %vm3891_vm3, %v13396_v22  ;;  %v13442_v22 = vld [vmem:[#allocation31_spill] sm:$0xff] }
 0x52a   : > { %10067 = vmatprep.mubr.msk.f32.mxu1 %vm3891_vm3, %v13411_v10 }
 0x52d   : > { %10068 = vmatmul.mubr.msk.f32.gmra.mrb[0].mxu1 %vm3891_vm3, %v13398_v29  ;;  %v13420_v29 = vld [vmem:[#allocation9_spill] sm:$0xff] }
 0x52e   : > { %10070 = vmatprep.mubr.msk.f32.mxu1 %vm3891_vm3, %v13399_v31  ;;  %v13414_v31 = vld [vmem:[#allocation68_spill] sm:$0xff] }
 0x531   : > { %10071 = vmatmul.mubr.msk.f32.gmra.mrb[2].mxu1 %vm3891_vm3, %v13400_v20  ;;  %v13438_v20 = vld [vmem:[#allocation27_spill] sm:$0xff] }
 0x532   : > { %10073 = vmatprep.mubr.msk.f32.mxu1 %vm3891_vm3, %v13412_v55 }
 0x535   : > { %10074 = vmatmul.mubr.msk.f32.gmra.mrb[4].mxu1 %vm3891_vm3, %v13402_v42  ;;  %v13440_v42 = vld [vmem:[#allocation29_spill] sm:$0xff] }
 0x536   : > { %10076 = vmatprep.mubr.msk.f32.mxu1 %vm3891_vm3, %v13413_v62 }
 0x539   : > { %10077 = vmatmul.mubr.msk.f32.gmra.mrb[6].mxu1 %vm3891_vm3, %v12428_v28  ;;  %v7043_v28 = vld [vmem:[#allocation3 + $0x1a2] sm:$0xff] }
 0x53a   : > { %10079 = vmatprep.mubr.msk.f32.mxu1 %vm3891_vm3, %v13404_v36  ;;  %v13443_v36 = vld [vmem:[#allocation32_spill] sm:$0xff] }
 0x53d   : > { %10080 = vmatmul.mubr.msk.f32.gmra.mrb[8].mxu1 %vm3891_vm3, %v12436_v1  ;;  %v13417_v1 = vld [vmem:[#allocation6_spill] sm:$0xff] }
 0x53e   : > { %10082 = vmatprep.mubr.msk.f32.mxu1 %vm3891_vm3, %v13414_v31  ;;  %v13453_v31 = vld [vmem:[#allocation73_spill] sm:$0xff] }
 0x541   : > { %10083 = vmatmul.mubr.msk.f32.gmra.mrb[10].mxu1 %vm3891_vm3, %v12444_v63  ;;  %v13419_v63 = vld [vmem:[#allocation8_spill] sm:$0xff] }
 0x542   : > { %10085 = vmatprep.mubr.msk.f32.mxu1 %vm3891_vm3, %v12682_v23  ;;  %v13439_v23 = vld [vmem:[#allocation28_spill] sm:$0xff] }
 0x545   : > { %10086 = vmatmul.mubr.msk.f32.gmra.mrb[12].mxu1 %vm3891_vm3, %v12686_v25  ;;  %v13441_v25 = vld [vmem:[#allocation30_spill] sm:$0xff] }
 0x546   : > { %10088 = vmatprep.mubr.msk.f32.mxu1 %vm3891_vm3, %v7042_v6  ;;  %v10155_v6 = vadd.f32 %v13453_v31, %v12933_v54 }
 0x549   : > { %10089 = vmatmul.mubr.msk.f32.gmra.mrb[14].mxu1 %vm3891_vm3, %v7043_v28 }
 0x54a   : > { %10093 = vmatprep.mubr.msk.f32.mxu1 %vm284_vm1, %v13415_v4  ;;  %v13454_v4 = vld [vmem:[#allocation74_spill] sm:$0xff] }
 0x54d   : > { %10094 = vmatmul.mubr.msk.f32.vlgmr.msra.gmra.mrb[16].mxu1 %vm284_vm1, %v13416_v34  ;;  %v10157_v34 = vadd.f32 %v12933_v54, %v13454_v4 }
 0x54e   : > { %10096 = vmatprep.mubr.msk.f32.mxu1 %vm284_vm1, %v13417_v1 }
 0x551   : > { %10097 = vmatmul.mubr.msk.f32.gmra.mrb[18].mxu1 %vm284_vm1, %v13418_v26 }
 0x552   : > { %10099 = vmatprep.mubr.msk.f32.mxu1 %vm284_vm1, %v13419_v63 }
 0x555   : > { %10100 = vmatmul.mubr.msk.f32.gmra.mrb[20].mxu1 %vm284_vm1, %v13420_v29 }
 0x556   : > { %10102 = vmatprep.mubr.msk.f32.mxu1 %vm284_vm1, %v13421_v15 }
 0x559   : > { %10103 = vmatmul.mubr.msk.f32.gmra.mrb[22].mxu1 %vm284_vm1, %v13422_v35  ;;  %v13455_v35 = vld [vmem:[#allocation75_spill] sm:$0xff] }
 0x55a   : > { %10105 = vmatprep.mubr.msk.f32.mxu1 %vm284_vm1, %v13423_v2  ;;  %v10159_v2 = vadd.f32 %v13455_v35, %v12933_v54 }
 0x55d   : > { %10106 = vmatmul.mubr.msk.f32.gmra.mrb[24].mxu1 %vm284_vm1, %v13424_v11 }
 0x55e   : > { %10108 = vmatprep.mubr.msk.f32.mxu1 %vm284_vm1, %v13425_v16  ;;  %v13456_v16 = vld [vmem:[#allocation76_spill] sm:$0xff] }
 0x561   : > { %10109 = vmatmul.mubr.msk.f32.gmra.mrb[26].mxu1 %vm284_vm1, %v13426_v24  ;;  %v10161_v24 = vadd.f32 %v12933_v54, %v13456_v16 }
 0x562   : > { %10111 = vmatprep.mubr.msk.f32.mxu1 %vm284_vm1, %v13427_v38 }
 0x565   : > { %10112 = vmatmul.mubr.msk.f32.gmra.mrb[28].mxu1 %vm284_vm1, %v13428_v46 }
 0x566   : > { %10114 = vmatprep.mubr.msk.f32.mxu1 %vm284_vm1, %v13429_v48 }
 0x569   : > { %10115 = vmatmul.mubr.msk.f32.gmra.mrb[30].mxu1 %vm284_vm1, %v13430_v53 }
 0x56a   : > { %10117 = vmatprep.mubr.msk.f32.mxu1 %vm284_vm1, %v13431_v57 }
 0x56d   : > { %10118 = vmatmul.mubr.msk.f32.gmra.mrb[0].mxu1 %vm284_vm1, %v13432_v0  ;;  %v13457_v0 = vld [vmem:[#allocation77_spill] sm:$0xff] }
 0x56e   : > { %10120 = vmatprep.mubr.msk.f32.mxu1 %vm284_vm1, %v13433_v8  ;;  %v10163_v8 = vadd.f32 %v13457_v0, %v12933_v54 }
 0x571   : > { %10121 = vmatmul.mubr.msk.f32.gmra.mrb[2].mxu1 %vm284_vm1, %v13434_v41 }
 0x572   : > { %10123 = vmatprep.mubr.msk.f32.mxu1 %vm284_vm1, %v13435_v30  ;;  %v13458_v30 = vld [vmem:[#allocation78_spill] sm:$0xff] }
 0x575   : > { %10124 = vmatmul.mubr.msk.f32.gmra.mrb[4].mxu1 %vm284_vm1, %v13436_v12  ;;  %v10165_v12 = vadd.f32 %v12933_v54, %v13458_v30 }
 0x576   : > { %10126 = vmatprep.mubr.msk.f32.mxu1 %vm284_vm1, %v13437_v5 }
 0x579   : > { %10127 = vmatmul.mubr.msk.f32.gmra.mrb[6].mxu1 %vm284_vm1, %v13438_v20 }
 0x57a   : > { %10129 = vmatprep.mubr.msk.f32.mxu1 %vm284_vm1, %v13439_v23 }
 0x57d   : > { %10130 = vmatmul.mubr.msk.f32.gmra.mrb[8].mxu1 %vm284_vm1, %v13440_v42 }
 0x57e   : > { %10132 = vmatprep.mubr.msk.f32.mxu1 %vm284_vm1, %v13441_v25 }
 0x581   : > { %10133 = vmatmul.mubr.msk.f32.gmra.mrb[10].mxu1 %vm284_vm1, %v13442_v22  ;;  %v13459_v22 = vld [vmem:[#allocation79_spill] sm:$0xff] }
 0x582   : > { %10135 = vmatprep.mubr.msk.f32.mxu1 %vm284_vm1, %v13443_v36  ;;  %v10167_v36 = vadd.f32 %v13459_v22, %v12933_v54 }
 0x585   : > { %10136 = vmatmul.mubr.msk.f32.gmra.mrb[12].mxu1 %vm284_vm1, %v13444_v13 }
 0x586   : > { %10138 = vmatprep.mubr.msk.f32.mxu1 %vm284_vm1, %v13445_v9  ;;  %v13460_v9 = vld [vmem:[#allocation80_spill] sm:$0xff] }
 0x589   : > { %10139 = vmatmul.mubr.msk.f32.gmra.mrb[14].mxu1 %vm284_vm1, %v13446_v33  ;;  %v10169_v33 = vadd.f32 %v12933_v54, %v13460_v9 }
 0x620   : > { %v10095_v19 = vpop.f32.mrb[16].mxu1 }
 0x621   : > { %v10144_v27 = vadd.f32 %v10143_v17, %v10095_v19  ;;  %v7604_v32 = vpop.f32.mrb[17].mxu1 }
 0x622   : > { %v10146_v39 = vadd.f32 %v10145_v21, %v7604_v32 }
 0x623   : > { %v7796_v45 = vmax.f32 %v10144_v27, 0.0  ;;  %v13461_v27 = vld [vmem:[#allocation81_spill] sm:$0xff] }
 0x624   : > { %v7795_v50 = vmax.f32 %v10146_v39, 0.0  ;;  %v10098_v52 = vpop.f32.mrb[18].mxu1  ;;  %v10171_v32 = vadd.f32 %v13461_v27, %v12933_v54 }
 0x625   : > { %7829 = vst.msk [vmem:[%s12944_s29 + $0x8] sm:$0xff] %vm7827_vm5, %v7796_v45  ;;  %v10148_v56 = vadd.f32 %v10147_v44, %v10098_v52  ;;  %v7614_v58 = vpop.f32.mrb[19].mxu1  ;;  %v10173_v44 = vadd.f32 %v12933_v54, %v13462_v43 }
 0x626   : > { %7828 = vst.msk [vmem:[%s12944_s29] sm:$0xff] %vm7827_vm5, %v7795_v50  ;;  %v10150_v59 = vadd.f32 %v10149_v3, %v7614_v58 }
 0x627   : > { %v7798_v40 = vmax.f32 %v10148_v56, 0.0 }
 0x628   : > { %v7797_v61 = vmax.f32 %v10150_v59, 0.0  ;;  %v10101_v7 = vpop.f32.mrb[20].mxu1 }
 0x629   : > { %7831 = vst.msk [vmem:[%s12944_s29 + $0x18] sm:$0xff] %vm7827_vm5, %v7798_v40  ;;  %v10152_v10 = vadd.f32 %v10151_v37, %v10101_v7  ;;  %v7624_v55 = vpop.f32.mrb[21].mxu1 }
 0x62a   : > { %7830 = vst.msk [vmem:[%s12944_s29 + $0x10] sm:$0xff] %vm7827_vm5, %v7797_v61  ;;  %v10154_v62 = vadd.f32 %v10153_v51, %v7624_v55 }
 0x62b   : > { %v7800_v28 = vmax.f32 %v10152_v10, 0.0 }
 0x62c   : > { %v7799_v1 = vmax.f32 %v10154_v62, 0.0  ;;  %v10104_v26 = vpop.f32.mrb[22].mxu1 }
 0x62d   : > { %7833 = vst.msk [vmem:[%s12944_s29 + $0x28] sm:$0xff] %vm7827_vm5, %v7800_v28  ;;  %v10156_v63 = vadd.f32 %v10155_v6, %v10104_v26  ;;  %v7634_v29 = vpop.f32.mrb[23].mxu1 }
 0x62e   : > { %7832 = vst.msk [vmem:[%s12944_s29 + $0x20] sm:$0xff] %vm7827_vm5, %v7799_v1  ;;  %v10158_v15 = vadd.f32 %v10157_v34, %v7634_v29 }
 0x62f   : > { %v7802_v11 = vmax.f32 %v10156_v63, 0.0 }
 0x630   : > { %v7801_v38 = vmax.f32 %v10158_v15, 0.0  ;;  %v10107_v46 = vpop.f32.mrb[24].mxu1 }
 0x631   : > { %7835 = vst.msk [vmem:[%s12944_s29 + $0x38] sm:$0xff] %vm7827_vm5, %v7802_v11  ;;  %v10160_v48 = vadd.f32 %v10159_v2, %v10107_v46  ;;  %v7644_v53 = vpop.f32.mrb[25].mxu1 }
 0x632   : > { %7834 = vst.msk [vmem:[%s12944_s29 + $0x30] sm:$0xff] %vm7827_vm5, %v7801_v38  ;;  %v10162_v57 = vadd.f32 %v10161_v24, %v7644_v53 }
 0x633   : > { %v7804_v41 = vmax.f32 %v10160_v48, 0.0 }
 0x634   : > { %v7803_v5 = vmax.f32 %v10162_v57, 0.0  ;;  %v10110_v20 = vpop.f32.mrb[26].mxu1 }
 0x635   : > { %7837 = vst.msk [vmem:[%s12944_s29 + $0x48] sm:$0xff] %vm7827_vm5, %v7804_v41  ;;  %v10164_v23 = vadd.f32 %v10163_v8, %v10110_v20  ;;  %v7654_v42 = vpop.f32.mrb[27].mxu1 }
 0x636   : > { %7836 = vst.msk [vmem:[%s12944_s29 + $0x40] sm:$0xff] %vm7827_vm5, %v7803_v5  ;;  %v10166_v25 = vadd.f32 %v10165_v12, %v7654_v42 }
 0x637   : > { %v7806_v13 = vmax.f32 %v10164_v23, 0.0 }
 0x638   : > { %v7805_v14 = vmax.f32 %v10166_v25, 0.0  ;;  %v10113_v17 = vpop.f32.mrb[28].mxu1 }
 0x639   : > { %7839 = vst.msk [vmem:[%s12944_s29 + $0x58] sm:$0xff] %vm7827_vm5, %v7806_v13  ;;  %v10168_v18 = vadd.f32 %v10167_v36, %v10113_v17  ;;  %v7664_v21 = vpop.f32.mrb[29].mxu1 }
 0x63a   : > { %7838 = vst.msk [vmem:[%s12944_s29 + $0x50] sm:$0xff] %vm7827_vm5, %v7805_v14  ;;  %v10170_v19 = vadd.f32 %v10169_v33, %v7664_v21 }
 0x63b   : > { %v7808_v39 = vmax.f32 %v10168_v18, 0.0 }
 0x63c   : > { %v7807_v45 = vmax.f32 %v10170_v19, 0.0  ;;  %v10116_v47 = vpop.f32.mrb[30].mxu1 }
 0x63d   : > { %7841 = vst.msk [vmem:[%s12944_s29 + $0x68] sm:$0xff] %vm7827_vm5, %v7808_v39  ;;  %v10172_v3 = vadd.f32 %v10171_v32, %v10116_v47  ;;  %v7674_v50 = vpop.f32.mrb[31].mxu1 }
 0x63e   : > { %7840 = vst.msk [vmem:[%s12944_s29 + $0x60] sm:$0xff] %vm7827_vm5, %v7807_v45  ;;  %v10174_v52 = vadd.f32 %v10173_v44, %v7674_v50 }
 0x63f   : > { %v7810_v56 = vmax.f32 %v10172_v3, 0.0 }
 0x640   : > { %v7809_v58 = vmax.f32 %v10174_v52, 0.0  ;;  %v10119_v59 = vpop.f32.mrb[0].mxu1 }
 0x641   : > { %7843 = vst.msk [vmem:[%s12944_s29 + $0x78] sm:$0xff] %vm7827_vm5, %v7810_v56  ;;  %v10175_v60 = vadd.f32 %v10119_v59, %v12933_v54  ;;  %v7684_v37 = vpop.f32.mrb[1].mxu1 }
 0x642   : > { %7842 = vst.msk [vmem:[%s12944_s29 + $0x70] sm:$0xff] %vm7827_vm5, %v7809_v58  ;;  %v10176_v40 = vadd.f32 %v12933_v54, %v7684_v37 }
 0x643   : > { %v7812_v49 = vmax.f32 %v10175_v60, 0.0 }
 0x644   : > { %v7811_v51 = vmax.f32 %v10176_v40, 0.0  ;;  %v10122_v61 = vpop.f32.mrb[2].mxu1 }
 0x645   : > { %7845 = vst.msk [vmem:[%s12944_s29 + $0x88] sm:$0xff] %vm7827_vm5, %v7812_v49  ;;  %v10177_v7 = vadd.f32 %v10122_v61, %v12933_v54  ;;  %v7694_v10 = vpop.f32.mrb[3].mxu1 }
 0x646   : > { %7844 = vst.msk [vmem:[%s12944_s29 + $0x80] sm:$0xff] %vm7827_vm5, %v7811_v51  ;;  %v10178_v55 = vadd.f32 %v12933_v54, %v7694_v10 }
 0x647   : > { %v7814_v62 = vmax.f32 %v10177_v7, 0.0 }
 0x648   : > { %v7813_v31 = vmax.f32 %v10178_v55, 0.0  ;;  %v10125_v6 = vpop.f32.mrb[4].mxu1 }
 0x649   : > { %7847 = vst.msk [vmem:[%s12944_s29 + $0x98] sm:$0xff] %vm7827_vm5, %v7814_v62  ;;  %v10179_v28 = vadd.f32 %v10125_v6, %v12933_v54  ;;  %v7704_v4 = vpop.f32.mrb[5].mxu1 }
 0x64a   : > { %7846 = vst.msk [vmem:[%s12944_s29 + $0x90] sm:$0xff] %vm7827_vm5, %v7813_v31  ;;  %v10180_v34 = vadd.f32 %v12933_v54, %v7704_v4 }
 0x64b   : > { %v7816_v1 = vmax.f32 %v10179_v28, 0.0 }
 0x64c   : > { %v7815_v26 = vmax.f32 %v10180_v34, 0.0  ;;  %v10128_v63 = vpop.f32.mrb[6].mxu1 }
 0x64d   : > { %7849 = vst.msk [vmem:[%s12944_s29 + $0xa8] sm:$0xff] %vm7827_vm5, %v7816_v1  ;;  %v10181_v29 = vadd.f32 %v10128_v63, %v12933_v54  ;;  %v7714_v15 = vpop.f32.mrb[7].mxu1 }
 0x64e   : > { %7848 = vst.msk [vmem:[%s12944_s29 + $0xa0] sm:$0xff] %vm7827_vm5, %v7815_v26  ;;  %v10182_v35 = vadd.f32 %v12933_v54, %v7714_v15 }
 0x64f   : > { %v7818_v2 = vmax.f32 %v10181_v29, 0.0 }
 0x650   : > { %v7817_v11 = vmax.f32 %v10182_v35, 0.0  ;;  %v10131_v16 = vpop.f32.mrb[8].mxu1 }
 0x651   : > { %7851 = vst.msk [vmem:[%s12944_s29 + $0xb8] sm:$0xff] %vm7827_vm5, %v7818_v2  ;;  %v10183_v24 = vadd.f32 %v10131_v16, %v12933_v54  ;;  %v7724_v38 = vpop.f32.mrb[9].mxu1 }
 0x652   : > { %7850 = vst.msk [vmem:[%s12944_s29 + $0xb0] sm:$0xff] %vm7827_vm5, %v7817_v11  ;;  %v10184_v46 = vadd.f32 %v12933_v54, %v7724_v38 }
 0x653   : > { %v7820_v48 = vmax.f32 %v10183_v24, 0.0 }
 0x654   : > { %v7819_v53 = vmax.f32 %v10184_v46, 0.0  ;;  %v10134_v57 = vpop.f32.mrb[10].mxu1 }
 0x655   : > { %7853 = vst.msk [vmem:[%s12944_s29 + $0xc8] sm:$0xff] %vm7827_vm5, %v7820_v48  ;;  %v10185_v0 = vadd.f32 %v10134_v57, %v12933_v54  ;;  %v7734_v8 = vpop.f32.mrb[11].mxu1 }
 0x656   : > { %7852 = vst.msk [vmem:[%s12944_s29 + $0xc0] sm:$0xff] %vm7827_vm5, %v7819_v53  ;;  %v10186_v41 = vadd.f32 %v12933_v54, %v7734_v8 }
 0x657   : > { %v7822_v30 = vmax.f32 %v10185_v0, 0.0 }
 0x658   : > { %v7821_v12 = vmax.f32 %v10186_v41, 0.0  ;;  %v10137_v5 = vpop.f32.mrb[12].mxu1 }
 0x659   : > { %7855 = vst.msk [vmem:[%s12944_s29 + $0xd8] sm:$0xff] %vm7827_vm5, %v7822_v30  ;;  %v10187_v20 = vadd.f32 %v10137_v5, %v12933_v54  ;;  %v7744_v23 = vpop.f32.mrb[13].mxu1 }
 0x65a   : > { %7854 = vst.msk [vmem:[%s12944_s29 + $0xd0] sm:$0xff] %vm7827_vm5, %v7821_v12  ;;  %v10188_v42 = vadd.f32 %v12933_v54, %v7744_v23 }
 0x65b   : > { %v7824_v25 = vmax.f32 %v10187_v20, 0.0 }
 0x65c   : > { %v7823_v22 = vmax.f32 %v10188_v42, 0.0  ;;  %v10140_v36 = vpop.f32.mrb[14].mxu1 }
 0x65d   : > { %7857 = vst.msk [vmem:[%s12944_s29 + $0xe8] sm:$0xff] %vm7827_vm5, %v7824_v25  ;;  %v10189_v13 = vadd.f32 %v10140_v36, %v12933_v54  ;;  %v7754_v9 = vpop.f32.mrb[15].mxu1 }
 0x65e   : > { %7856 = vst.msk [vmem:[%s12944_s29 + $0xe0] sm:$0xff] %vm7827_vm5, %v7823_v22  ;;  %v10190_v33 = vadd.f32 %v12933_v54, %v7754_v9 }
 0x65f   : > { %v7826_v14 = vmax.f32 %v10189_v13, 0.0 }
 0x660   : > { %v7825_v17 = vmax.f32 %v10190_v33, 0.0 }
 0x661   : > { %7859 = vst.msk [vmem:[%s12944_s29 + $0xf8] sm:$0xff] %vm7827_vm5, %v7826_v14 }
 0x662   : > { %7858 = vst.msk [vmem:[%s12944_s29 + $0xf0] sm:$0xff] %vm7827_vm5, %v7825_v17 }
 0x663 PF: > { %s16_s21 = sadd.s32 1, %s10734_s21  }
 0x664   : > { %p13_p4 = scmp.ge.s32.totalorder %s16_s21, 4  }
 0x666   :  { %15 = sbr.rel (!%p13_p4) target bundleno = 1 (0x1), region = 94 }

</bundles_post_ra>
